<compile_context>
chip_gen: v6e
topology: v6e:2x2x1
jax: 0.10.0
libtpu: 0.0.40
codegen_flags: <defaults>
</compile_context>

<pallas_src>
import functools

import jax
import jax.numpy as jnp
from jax.experimental import pallas as pl
from jax.experimental.pallas import tpu as pltpu

EPS = 1e-5        # nn.BatchNorm2d default eps
_PADL = 8         # left halo offset in the conv scratch: keeps the interior
                  # store sublane-aligned (only 1 zero column is needed, the
                  # other 7 are dead space)


@functools.lru_cache(maxsize=None)
def _vmem_limit_bytes():
    """Per-generation VMEM budget: ~3/4 of physical, capped at 112 MiB
    (v5e/v6e: 128 MiB physical -> 96 MiB; v7x: 64 MiB -> 48 MiB)."""
    cap = 64 * 1024 * 1024
    try:
        cap = int(getattr(pltpu.get_tpu_info(), "vmem_capacity_bytes", cap))
    except Exception:
        pass
    return int(min(cap * 3 // 4, 112 * 1024 * 1024))


def _cparams(sem):
    return pltpu.CompilerParams(dimension_semantics=sem,
                                vmem_limit_bytes=_vmem_limit_bytes())


def _pick_h_tile(h):
    """Divisor of H closest to H/4 -> ~4 row tiles per image, so the grid has
    enough steps to pipeline and (on v7x) keep both TensorCores busy."""
    target = max(1, h // 4)
    divisors = [d for d in range(1, h + 1) if h % d == 0]
    return min(divisors, key=lambda d: abs(d - target))


# ------------------------------ Pallas kernels --------------------------------

def _conv3x3_kernel(*refs, th, fuse):
    """One (batch-image, row-tile) step of a 3x3 / stride-1 / pad-1 conv.

    refs (fuse=False): x, w, y, stats, xpad
    refs (fuse=True) : x, scale, shift, w, y, stats, xpad
                       (x = raw previous conv output; affine+ReLU are applied
                        while building the padded image, fusing the previous
                        BatchNorm + ReLU into this conv)

      x     : (H, W, Cin)   f32/bf16   full image (block resident over the H sweep)
      scale : (1, Cin)      f32        previous-BN per-channel scale
      shift : (1, Cin)      f32        previous-BN per-channel shift
      w     : (9, Cin, Cout) bf16      w[kh*3+kw, ci, co]
      y     : (TH*W, Cout)  bf16       conv output rows of this tile
      stats : (2, Cout)     f32        [sum, sum-of-squares] over this tile
      xpad  : (H+2, W+2*PADL, Cin) bf16  scratch: zero halo, image stored at
              rows 1..H, cols PADL..PADL+W-1 (sublane-aligned interior)
    """
    if fuse:
        x_ref, scale_ref, shift_ref, w_ref, y_ref, stats_ref, xpad = refs
    else:
        x_ref, w_ref, y_ref, stats_ref, xpad = refs
        scale_ref = shift_ref = None

    h, w, cin = x_ref.shape
    cout = w_ref.shape[-1]
    hi = pl.program_id(1)

    # Build the zero-padded image in VMEM once per batch element; no padded
    # copy of the activation is ever materialized in HBM.
    @pl.when(hi == 0)
    def _():
        xpad[...] = jnp.zeros_like(xpad)                  # halo rows / columns
        xin = x_ref[...].astype(jnp.float32)
        if fuse:                                          # fused BN + ReLU
            xin = jnp.maximum(xin * scale_ref[...] + shift_ref[...], 0.0)
        xpad[1:h + 1, _PADL:_PADL + w, :] = xin.astype(jnp.bfloat16)

    # 9 accumulated MXU dots (K = Cin each): no (H, W, 9*Cin) im2col scratch
    # and no unaligned lane-slice stores (the Cin < 128 path from the review).
    row0 = hi * th
    acc = jnp.zeros((th * w, cout), jnp.float32)
    for kh in range(3):
        for kw in range(3):
            c0 = _PADL - 1 + kw
            tap = xpad[pl.ds(row0 + kh, th), c0:c0 + w, :]        # (th, W, Cin)
            acc = acc + jnp.dot(tap.reshape(th * w, cin),
                                w_ref[kh * 3 + kw],
                                preferred_element_type=jnp.float32)

    # bf16 intermediate (halves the conv-output HBM stream); BN statistics are
    # taken from the f32 accumulator so they are unaffected by the cast.
    y_ref[...] = acc.astype(y_ref.dtype)
    stats_ref[0:1, :] = jnp.sum(acc, axis=0, keepdims=True)
    stats_ref[1:2, :] = jnp.sum(acc * acc, axis=0, keepdims=True)


def _bn_add_relu_kernel(y_ref, s_ref, t_ref, r_ref, o_ref):
    """out = relu(y * scale + shift + residual)   (lane-dense streamed FMA)."""
    y = y_ref[...].astype(jnp.float32)
    o_ref[...] = jnp.maximum(
        y * s_ref[...] + t_ref[...] + r_ref[...].astype(jnp.float32),
        0.0).astype(o_ref.dtype)


# ------------------------------ conv / BN passes -------------------------------

def _conv3x3_pass(x_nhwc, w9_f32, scale=None, shift=None, *, th):
    """3x3 conv (optionally fused with the previous BN affine + ReLU applied to
    its input) plus per-tile BatchNorm sum / sum-of-squares partials.

    Returns y: (N, H*W, Cout) bf16 and stats: (N*HT, 2, Cout) f32."""
    n, h, w, cin = x_nhwc.shape
    cout = w9_f32.shape[-1]
    ht = h // th
    fuse = scale is not None
    w9 = w9_f32.astype(jnp.bfloat16)

    in_specs = [pl.BlockSpec((None, h, w, cin), lambda ni, hi: (ni, 0, 0, 0))]
    args = [x_nhwc]
    if fuse:
        in_specs += [pl.BlockSpec((1, cin), lambda ni, hi: (0, 0)),
                     pl.BlockSpec((1, cin), lambda ni, hi: (0, 0))]
        args += [scale.reshape(1, cin).astype(jnp.float32),
                 shift.reshape(1, cin).astype(jnp.float32)]
    in_specs.append(pl.BlockSpec((9, cin, cout), lambda ni, hi: (0, 0, 0)))
    args.append(w9)

    y, stats = pl.pallas_call(
        functools.partial(_conv3x3_kernel, th=th, fuse=fuse),
        grid=(n, ht),                 # batch: parallel (megacore); rows: arbitrary
        in_specs=in_specs,
        out_specs=[
            pl.BlockSpec((None, th * w, cout), lambda ni, hi: (ni, hi, 0)),
            pl.BlockSpec((None, 2, cout), lambda ni, hi: (ni * ht + hi, 0, 0)),
        ],
        out_shape=[
            jax.ShapeDtypeStruct((n, h * w, cout), jnp.bfloat16),
            jax.ShapeDtypeStruct((n * ht, 2, cout), jnp.float32),
        ],
        scratch_shapes=[pltpu.VMEM((h + 2, w + 2 * _PADL, cin), jnp.bfloat16)],
        compiler_params=_cparams(("parallel", "arbitrary")),
    )(*args)
    return y, stats


def _bn_scale_shift(stats, gamma, beta, m):
    """Fold per-tile [sum, sumsq] partials into per-channel scale/shift (O(C))."""
    s = jnp.sum(stats.astype(jnp.float32), axis=0)            # (2, C)
    mean = s[0] / m
    var = jnp.maximum(s[1] / m - mean * mean, 0.0)             # biased variance
    scale = gamma * jax.lax.rsqrt(var + EPS)
    shift = beta - mean * scale
    return scale, shift


def _bn_add_relu(y, scale, shift, res, out_dtype=jnp.float32):
    """out = relu(y * scale + shift + residual), streamed over a lane-dense
    (rows, 128) view whenever the channel count folds into the 128-lane axis."""
    m, c = y.shape
    if 128 % c == 0 and (m * c) % 128 == 0:
        lanes = 128
        rows = (m * c) // lanes
        rep = lanes // c
        z = y.reshape(rows, lanes)
        r = res.reshape(rows, lanes)
        s_row = jnp.tile(scale, rep).reshape(1, lanes)
        t_row = jnp.tile(shift, rep).reshape(1, lanes)
    else:                                   # generic layout for odd C
        lanes, rows = c, m
        z, r = y, res
        s_row = scale.reshape(1, c)
        t_row = shift.reshape(1, c)

    tr = rows if rows <= 2048 else 2048
    out = pl.pallas_call(
        _bn_add_relu_kernel,
        grid=(pl.cdiv(rows, tr),),
        in_specs=[pl.BlockSpec((tr, lanes), lambda i: (i, 0)),
                  pl.BlockSpec((1, lanes), lambda i: (0, 0)),
                  pl.BlockSpec((1, lanes), lambda i: (0, 0)),
                  pl.BlockSpec((tr, lanes), lambda i: (i, 0))],
        out_specs=pl.BlockSpec((tr, lanes), lambda i: (i, 0)),
        out_shape=jax.ShapeDtypeStruct((rows, lanes), out_dtype),
        compiler_params=_cparams(("parallel",)),
    )(z, s_row, t_row, r)
    return out.reshape(m, c)


# --------------------------------- forward -------------------------------------

def init_basic_block_params(key, c1, c2):
    """Parameters matching BasicBlock(c1, c2): conv weights stored (9, Cin, Cout)
    with tap index kh*3+kw (HWIO reshaped); BN gamma/beta are (C,)."""
    k1, k2, k3, k4 = jax.random.split(key, 4)
    w1 = (jax.random.normal(k1, (3, 3, c1, c2), jnp.float32)
          * (2.0 / (9 * c1)) ** 0.5).reshape(9, c1, c2)
    w2 = (jax.random.normal(k2, (3, 3, c2, c2), jnp.float32)
          * (2.0 / (9 * c2)) ** 0.5).reshape(9, c2, c2)
    g1 = jax.random.uniform(k3, (c2,), jnp.float32, 0.5, 1.5)
    b1 = jax.random.normal(k4, (c2,), jnp.float32) * 0.1
    g2 = jnp.ones((c2,), jnp.float32)
    b2 = jnp.zeros((c2,), jnp.float32)
    return dict(w1=w1, g1=g1, b1=b1, w2=w2, g2=g2, b2=b2)


def basic_block_forward(x_nchw, params):
    """BasicBlock(c1, c2, s=1, downsample=None) forward (requires c1 == c2)."""
    x = jnp.transpose(x_nchw, (0, 2, 3, 1)).astype(jnp.float32)        # NHWC f32
    n, h, w, c1 = x.shape
    c2 = params["w1"].shape[-1]
    if c1 != c2:
        raise NotImplementedError("stride>1 / downsample (c1 != c2) not supported")
    if w % 8 != 0:
        # The in-kernel (TH, W, C) -> (TH*W, C) reshape is only layout-free when
        # W is a multiple of 8 (explicit check instead of a silent fallback).
        raise NotImplementedError("W must be a multiple of 8")
    m = n * h * w
    th = _pick_h_tile(h)

    # conv1 + per-tile BN batch-statistic partials (y1 kept in bf16)
    y1, st1 = _conv3x3_pass(x, params["w1"], th=th)
    sc1, sh1 = _bn_scale_shift(st1, params["g1"], params["b1"], m)

    # bn1-affine + ReLU fused into conv2's padded-image build (no a1 in HBM)
    y2, st2 = _conv3x3_pass(y1.reshape(n, h, w, c2), params["w2"],
                            scale=sc1, shift=sh1, th=th)
    sc2, sh2 = _bn_scale_shift(st2, params["g2"], params["b2"], m)

    # bn2 affine + identity residual + ReLU, lane-dense epilogue
    out = _bn_add_relu(y2.reshape(m, c2), sc2, sh2, x.reshape(m, c1))
    return jnp.transpose(out.reshape(n, h, w, c2), (0, 3, 1, 2))       # NCHW


# ----------------------------- pure-JAX reference -------------------------------

def _ref_forward(x_nchw, params):
    """XLA reference mirroring the kernel's numerics: bf16 conv operands, f32
    accumulation and batch statistics, bf16 storage of the conv outputs."""
    x = jnp.transpose(x_nchw, (0, 2, 3, 1)).astype(jnp.float32)

    def conv3x3(inp_bf16, w9):
        cin, cout = inp_bf16.shape[-1], w9.shape[-1]
        wk = w9.reshape(3, 3, cin, cout).astype(jnp.bfloat16)
        return jax.lax.conv_general_dilated(
            inp_bf16, wk, (1, 1), ((1, 1), (1, 1)),
            dimension_numbers=("NHWC", "HWIO", "NHWC"),
            preferred_element_type=jnp.float32)

    def bn_affine(y, g, b):
        mean = jnp.mean(y, axis=(0, 1, 2))
        var = jnp.maximum(jnp.mean(y * y, axis=(0, 1, 2)) - mean * mean, 0.0)
        scale = g * jax.lax.rsqrt(var + EPS)
        return scale, b - mean * scale

    y1 = conv3x3(x.astype(jnp.bfloat16), params["w1"])
    sc1, sh1 = bn_affine(y1, params["g1"], params["b1"])
    y1q = y1.astype(jnp.bfloat16).astype(jnp.float32)      # kernel stores y1 bf16
    a1 = jax.nn.relu(y1q * sc1 + sh1).astype(jnp.bfloat16)
    y2 = conv3x3(a1, params["w2"])
    sc2, sh2 = bn_affine(y2, params["g2"], params["b2"])
    y2q = y2.astype(jnp.bfloat16).astype(jnp.float32)      # kernel stores y2 bf16
    out = jax.nn.relu(y2q * sc2 + sh2 + x)
    return jnp.transpose(out, (0, 3, 1, 2))


# ------------------------------------ main --------------------------------------

if __name__ == "__main__":
    key = jax.random.PRNGKey(0)
    kx, kp = jax.random.split(key)

    N, C, H, W = 2, 4, 16, 16                       # c1 == c2 == 4, stride 1
    x = jax.random.normal(kx, (N, C, H, W), jnp.float32)     # NCHW like PyTorch
    params = init_basic_block_params(kp, C, C)

    fwd = jax.jit(basic_block_forward)
    out = jax.block_until_ready(fwd(x, params))
    assert out.shape == (N, C, H, W)

    ref = jax.block_until_ready(_ref_forward(x, params))
    max_err = float(jnp.max(jnp.abs(out - ref)))
    mean_err = float(jnp.mean(jnp.abs(out - ref)))
    # bf16 storage of y1/y2: kernel and reference make independent rounding
    # decisions for values sitting on a bf16 boundary, so the worst-case
    # per-element difference is a couple of bf16 ulps at the largest |y2|;
    # the mean-error check stays tight.
    assert max_err < 5e-2 and mean_err < 2e-3, (max_err, mean_err)

    print("KERNEL_OK")
</pallas_src>

<mosaic_0001>
module attributes {stable_mosaic.version = 11 : i64} {
  func.func @_conv3x3_kernel(%arg0: i32, %arg1: i32, %arg2: memref<1x16x16x4xbf16, #tpu.memory_space<vmem>>, %arg3: memref<1x4xf32, #tpu.memory_space<vmem>>, %arg4: memref<1x4xf32, #tpu.memory_space<vmem>>, %arg5: memref<9x4x4xbf16, #tpu.memory_space<vmem>>, %arg6: memref<1x64x4xbf16, #tpu.memory_space<vmem>>, %arg7: memref<1x2x4xf32, #tpu.memory_space<vmem>>, %arg8: memref<18x32x4xbf16, #tpu.memory_space<vmem>>) attributes {dimension_semantics = [#tpu.dimension_semantics<parallel>, #tpu.dimension_semantics<arbitrary>], iteration_bounds = array<i64: 2, 4>, scalar_prefetch = 0 : i64, scratch_operands = 1 : i64, tpu.core_type = #tpu.core_type<tc>, window_params = [{transform_indices = @transform_0, window_bounds = array<i64: 1, 16, 16, 4>}, {pipeline_mode = #tpu.pipeline_mode<synchronous>, transform_indices = @transform_1, window_bounds = array<i64: 1, 4>}, {pipeline_mode = #tpu.pipeline_mode<synchronous>, transform_indices = @transform_2, window_bounds = array<i64: 1, 4>}, {pipeline_mode = #tpu.pipeline_mode<synchronous>, transform_indices = @transform_3, window_bounds = array<i64: 9, 4, 4>}, {transform_indices = @transform_4, window_bounds = array<i64: 1, 64, 4>}, {transform_indices = @transform_5, window_bounds = array<i64: 1, 2, 4>}]} {
    %c0_i32 = arith.constant 0 : i32
    %0 = arith.cmpi eq, %arg1, %c0_i32 : i32
    %1 = arith.extui %0 : i1 to i32
    %c0_i32_0 = arith.constant 0 : i32
    %2 = arith.cmpi ne, %1, %c0_i32_0 : i32
    scf.if %2 {
      %cst_63 = arith.constant 0.000000e+00 : bf16
      %92 = vector.broadcast %cst_63 : bf16 to vector<18x32x4xbf16>
      %c0_64 = arith.constant 0 : index
      %c0_65 = arith.constant 0 : index
      %c0_66 = arith.constant 0 : index
      %93 = vector.load %arg8[%c0_64, %c0_65, %c0_66] : memref<18x32x4xbf16, #tpu.memory_space<vmem>>, vector<18x32x4xbf16>
      tpu.vector_store %arg8[%c0_64, %c0_65, %c0_66], %92 {strides = array<i32>} : memref<18x32x4xbf16, #tpu.memory_space<vmem>>, vector<18x32x4xbf16>,
      %c0_67 = arith.constant 0 : index
      %c0_68 = arith.constant 0 : index
      %c0_69 = arith.constant 0 : index
      %c0_70 = arith.constant 0 : index
      %94 = vector.load %arg2[%c0_67, %c0_68, %c0_69, %c0_70] : memref<1x16x16x4xbf16, #tpu.memory_space<vmem>>, vector<1x16x16x4xbf16>
      %95 = vector.shape_cast %94 : vector<1x16x16x4xbf16> to vector<16x16x4xbf16>
      %96 = arith.extf %95 : vector<16x16x4xbf16> to vector<16x16x4xf32>
      %c0_71 = arith.constant 0 : index
      %c0_72 = arith.constant 0 : index
      %97 = vector.load %arg3[%c0_71, %c0_72] : memref<1x4xf32, #tpu.memory_space<vmem>>, vector<1x4xf32>
      %98 = vector.shape_cast %97 : vector<1x4xf32> to vector<1x1x4xf32>
      %99 = vector.broadcast %98 : vector<1x1x4xf32> to vector<16x16x4xf32>
      %100 = arith.mulf %96, %99 : vector<16x16x4xf32>
      %c0_73 = arith.constant 0 : index
      %c0_74 = arith.constant 0 : index
      %101 = vector.load %arg4[%c0_73, %c0_74] : memref<1x4xf32, #tpu.memory_space<vmem>>, vector<1x4xf32>
      %102 = vector.shape_cast %101 : vector<1x4xf32> to vector<1x1x4xf32>
      %103 = vector.broadcast %102 : vector<1x1x4xf32> to vector<16x16x4xf32>
      %104 = arith.addf %100, %103 : vector<16x16x4xf32>
      %cst_75 = arith.constant 0.000000e+00 : f32
      %105 = vector.broadcast %cst_75 : f32 to vector<16x16x4xf32>
      %106 = arith.maximumf %104, %105 : vector<16x16x4xf32>
      %107 = arith.truncf %106 : vector<16x16x4xf32> to vector<16x16x4xbf16>
      %c1_76 = arith.constant 1 : index
      %c8_77 = arith.constant 8 : index
      %c0_78 = arith.constant 0 : index
      %108 = vector.load %arg8[%c1_76, %c8_77, %c0_78] : memref<18x32x4xbf16, #tpu.memory_space<vmem>>, vector<16x16x4xbf16>
      tpu.vector_store %arg8[%c1_76, %c8_77, %c0_78], %107 {strides = array<i32>} : memref<18x32x4xbf16, #tpu.memory_space<vmem>>, vector<16x16x4xbf16>,
    } else {
    }
    %c4_i32 = arith.constant 4 : i32
    %3 = arith.muli %arg1, %c4_i32 : i32
    %cst = arith.constant 0.000000e+00 : f32
    %4 = vector.broadcast %cst : f32 to vector<64x4xf32>
    %c0_i32_1 = arith.constant 0 : i32
    %5 = arith.addi %3, %c0_i32_1 : i32
    %6 = arith.index_cast %5 : i32 to index
    %c7 = arith.constant 7 : index
    %c0 = arith.constant 0 : index
    %7 = vector.load %arg8[%6, %c7, %c0] : memref<18x32x4xbf16, #tpu.memory_space<vmem>>, vector<4x16x4xbf16>
    %8 = vector.shape_cast %7 : vector<4x16x4xbf16> to vector<64x4xbf16>
    %c0_2 = arith.constant 0 : index
    %c0_3 = arith.constant 0 : index
    %c0_4 = arith.constant 0 : index
    %9 = vector.load %arg5[%c0_2, %c0_3, %c0_4] : memref<9x4x4xbf16, #tpu.memory_space<vmem>>, vector<1x4x4xbf16>
    %10 = vector.shape_cast %9 : vector<1x4x4xbf16> to vector<4x4xbf16>
    %cst_5 = arith.constant dense<0.000000e+00> : vector<64x4xf32>
    %11 = tpu.matmul %8, %10, %cst_5 {dimension_numbers = #tpu.dot_dimension_numbers<[1], [0], [0], [1], [0, 0, 1, 1], [], []>} : vector<64x4xbf16>, vector<4x4xbf16>, vector<64x4xf32> -> vector<64x4xf32>
    %12 = arith.addf %4, %11 : vector<64x4xf32>
    %c0_i32_6 = arith.constant 0 : i32
    %13 = arith.addi %3, %c0_i32_6 : i32
    %14 = arith.index_cast %13 : i32 to index
    %c8 = arith.constant 8 : index
    %c0_7 = arith.constant 0 : index
    %15 = vector.load %arg8[%14, %c8, %c0_7] : memref<18x32x4xbf16, #tpu.memory_space<vmem>>, vector<4x16x4xbf16>
    %16 = vector.shape_cast %15 : vector<4x16x4xbf16> to vector<64x4xbf16>
    %c1 = arith.constant 1 : index
    %c0_8 = arith.constant 0 : index
    %c0_9 = arith.constant 0 : index
    %17 = vector.load %arg5[%c1, %c0_8, %c0_9] : memref<9x4x4xbf16, #tpu.memory_space<vmem>>, vector<1x4x4xbf16>
    %18 = vector.shape_cast %17 : vector<1x4x4xbf16> to vector<4x4xbf16>
    %cst_10 = arith.constant dense<0.000000e+00> : vector<64x4xf32>
    %19 = tpu.matmul %16, %18, %cst_10 {dimension_numbers = #tpu.dot_dimension_numbers<[1], [0], [0], [1], [0, 0, 1, 1], [], []>} : vector<64x4xbf16>, vector<4x4xbf16>, vector<64x4xf32> -> vector<64x4xf32>
    %20 = arith.addf %12, %19 : vector<64x4xf32>
    %c0_i32_11 = arith.constant 0 : i32
    %21 = arith.addi %3, %c0_i32_11 : i32
    %22 = arith.index_cast %21 : i32 to index
    %c9 = arith.constant 9 : index
    %c0_12 = arith.constant 0 : index
    %23 = vector.load %arg8[%22, %c9, %c0_12] : memref<18x32x4xbf16, #tpu.memory_space<vmem>>, vector<4x16x4xbf16>
    %24 = vector.shape_cast %23 : vector<4x16x4xbf16> to vector<64x4xbf16>
    %c2 = arith.constant 2 : index
    %c0_13 = arith.constant 0 : index
    %c0_14 = arith.constant 0 : index
    %25 = vector.load %arg5[%c2, %c0_13, %c0_14] : memref<9x4x4xbf16, #tpu.memory_space<vmem>>, vector<1x4x4xbf16>
    %26 = vector.shape_cast %25 : vector<1x4x4xbf16> to vector<4x4xbf16>
    %cst_15 = arith.constant dense<0.000000e+00> : vector<64x4xf32>
    %27 = tpu.matmul %24, %26, %cst_15 {dimension_numbers = #tpu.dot_dimension_numbers<[1], [0], [0], [1], [0, 0, 1, 1], [], []>} : vector<64x4xbf16>, vector<4x4xbf16>, vector<64x4xf32> -> vector<64x4xf32>
    %28 = arith.addf %20, %27 : vector<64x4xf32>
    %c1_i32 = arith.constant 1 : i32
    %29 = arith.addi %3, %c1_i32 : i32
    %30 = arith.index_cast %29 : i32 to index
    %c7_16 = arith.constant 7 : index
    %c0_17 = arith.constant 0 : index
    %31 = vector.load %arg8[%30, %c7_16, %c0_17] : memref<18x32x4xbf16, #tpu.memory_space<vmem>>, vector<4x16x4xbf16>
    %32 = vector.shape_cast %31 : vector<4x16x4xbf16> to vector<64x4xbf16>
    %c3 = arith.constant 3 : index
    %c0_18 = arith.constant 0 : index
    %c0_19 = arith.constant 0 : index
    %33 = vector.load %arg5[%c3, %c0_18, %c0_19] : memref<9x4x4xbf16, #tpu.memory_space<vmem>>, vector<1x4x4xbf16>
    %34 = vector.shape_cast %33 : vector<1x4x4xbf16> to vector<4x4xbf16>
    %cst_20 = arith.constant dense<0.000000e+00> : vector<64x4xf32>
    %35 = tpu.matmul %32, %34, %cst_20 {dimension_numbers = #tpu.dot_dimension_numbers<[1], [0], [0], [1], [0, 0, 1, 1], [], []>} : vector<64x4xbf16>, vector<4x4xbf16>, vector<64x4xf32> -> vector<64x4xf32>
    %36 = arith.addf %28, %35 : vector<64x4xf32>
    %c1_i32_21 = arith.constant 1 : i32
    %37 = arith.addi %3, %c1_i32_21 : i32
    %38 = arith.index_cast %37 : i32 to index
    %c8_22 = arith.constant 8 : index
    %c0_23 = arith.constant 0 : index
    %39 = vector.load %arg8[%38, %c8_22, %c0_23] : memref<18x32x4xbf16, #tpu.memory_space<vmem>>, vector<4x16x4xbf16>
    %40 = vector.shape_cast %39 : vector<4x16x4xbf16> to vector<64x4xbf16>
    %c4 = arith.constant 4 : index
    %c0_24 = arith.constant 0 : index
    %c0_25 = arith.constant 0 : index
    %41 = vector.load %arg5[%c4, %c0_24, %c0_25] : memref<9x4x4xbf16, #tpu.memory_space<vmem>>, vector<1x4x4xbf16>
    %42 = vector.shape_cast %41 : vector<1x4x4xbf16> to vector<4x4xbf16>
    %cst_26 = arith.constant dense<0.000000e+00> : vector<64x4xf32>
    %43 = tpu.matmul %40, %42, %cst_26 {dimension_numbers = #tpu.dot_dimension_numbers<[1], [0], [0], [1], [0, 0, 1, 1], [], []>} : vector<64x4xbf16>, vector<4x4xbf16>, vector<64x4xf32> -> vector<64x4xf32>
    %44 = arith.addf %36, %43 : vector<64x4xf32>
    %c1_i32_27 = arith.constant 1 : i32
    %45 = arith.addi %3, %c1_i32_27 : i32
    %46 = arith.index_cast %45 : i32 to index
    %c9_28 = arith.constant 9 : index
    %c0_29 = arith.constant 0 : index
    %47 = vector.load %arg8[%46, %c9_28, %c0_29] : memref<18x32x4xbf16, #tpu.memory_space<vmem>>, vector<4x16x4xbf16>
    %48 = vector.shape_cast %47 : vector<4x16x4xbf16> to vector<64x4xbf16>
    %c5 = arith.constant 5 : index
    %c0_30 = arith.constant 0 : index
    %c0_31 = arith.constant 0 : index
    %49 = vector.load %arg5[%c5, %c0_30, %c0_31] : memref<9x4x4xbf16, #tpu.memory_space<vmem>>, vector<1x4x4xbf16>
    %50 = vector.shape_cast %49 : vector<1x4x4xbf16> to vector<4x4xbf16>
    %cst_32 = arith.constant dense<0.000000e+00> : vector<64x4xf32>
    %51 = tpu.matmul %48, %50, %cst_32 {dimension_numbers = #tpu.dot_dimension_numbers<[1], [0], [0], [1], [0, 0, 1, 1], [], []>} : vector<64x4xbf16>, vector<4x4xbf16>, vector<64x4xf32> -> vector<64x4xf32>
    %52 = arith.addf %44, %51 : vector<64x4xf32>
    %c2_i32 = arith.constant 2 : i32
    %53 = arith.addi %3, %c2_i32 : i32
    %54 = arith.index_cast %53 : i32 to index
    %c7_33 = arith.constant 7 : index
    %c0_34 = arith.constant 0 : index
    %55 = vector.load %arg8[%54, %c7_33, %c0_34] : memref<18x32x4xbf16, #tpu.memory_space<vmem>>, vector<4x16x4xbf16>
    %56 = vector.shape_cast %55 : vector<4x16x4xbf16> to vector<64x4xbf16>
    %c6 = arith.constant 6 : index
    %c0_35 = arith.constant 0 : index
    %c0_36 = arith.constant 0 : index
    %57 = vector.load %arg5[%c6, %c0_35, %c0_36] : memref<9x4x4xbf16, #tpu.memory_space<vmem>>, vector<1x4x4xbf16>
    %58 = vector.shape_cast %57 : vector<1x4x4xbf16> to vector<4x4xbf16>
    %cst_37 = arith.constant dense<0.000000e+00> : vector<64x4xf32>
    %59 = tpu.matmul %56, %58, %cst_37 {dimension_numbers = #tpu.dot_dimension_numbers<[1], [0], [0], [1], [0, 0, 1, 1], [], []>} : vector<64x4xbf16>, vector<4x4xbf16>, vector<64x4xf32> -> vector<64x4xf32>
    %60 = arith.addf %52, %59 : vector<64x4xf32>
    %c2_i32_38 = arith.constant 2 : i32
    %61 = arith.addi %3, %c2_i32_38 : i32
    %62 = arith.index_cast %61 : i32 to index
    %c8_39 = arith.constant 8 : index
    %c0_40 = arith.constant 0 : index
    %63 = vector.load %arg8[%62, %c8_39, %c0_40] : memref<18x32x4xbf16, #tpu.memory_space<vmem>>, vector<4x16x4xbf16>
    %64 = vector.shape_cast %63 : vector<4x16x4xbf16> to vector<64x4xbf16>
    %c7_41 = arith.constant 7 : index
    %c0_42 = arith.constant 0 : index
    %c0_43 = arith.constant 0 : index
    %65 = vector.load %arg5[%c7_41, %c0_42, %c0_43] : memref<9x4x4xbf16, #tpu.memory_space<vmem>>, vector<1x4x4xbf16>
    %66 = vector.shape_cast %65 : vector<1x4x4xbf16> to vector<4x4xbf16>
    %cst_44 = arith.constant dense<0.000000e+00> : vector<64x4xf32>
    %67 = tpu.matmul %64, %66, %cst_44 {dimension_numbers = #tpu.dot_dimension_numbers<[1], [0], [0], [1], [0, 0, 1, 1], [], []>} : vector<64x4xbf16>, vector<4x4xbf16>, vector<64x4xf32> -> vector<64x4xf32>
    %68 = arith.addf %60, %67 : vector<64x4xf32>
    %c2_i32_45 = arith.constant 2 : i32
    %69 = arith.addi %3, %c2_i32_45 : i32
    %70 = arith.index_cast %69 : i32 to index
    %c9_46 = arith.constant 9 : index
    %c0_47 = arith.constant 0 : index
    %71 = vector.load %arg8[%70, %c9_46, %c0_47] : memref<18x32x4xbf16, #tpu.memory_space<vmem>>, vector<4x16x4xbf16>
    %72 = vector.shape_cast %71 : vector<4x16x4xbf16> to vector<64x4xbf16>
    %c8_48 = arith.constant 8 : index
    %c0_49 = arith.constant 0 : index
    %c0_50 = arith.constant 0 : index
    %73 = vector.load %arg5[%c8_48, %c0_49, %c0_50] : memref<9x4x4xbf16, #tpu.memory_space<vmem>>, vector<1x4x4xbf16>
    %74 = vector.shape_cast %73 : vector<1x4x4xbf16> to vector<4x4xbf16>
    %cst_51 = arith.constant dense<0.000000e+00> : vector<64x4xf32>
    %75 = tpu.matmul %72, %74, %cst_51 {dimension_numbers = #tpu.dot_dimension_numbers<[1], [0], [0], [1], [0, 0, 1, 1], [], []>} : vector<64x4xbf16>, vector<4x4xbf16>, vector<64x4xf32> -> vector<64x4xf32>
    %76 = arith.addf %68, %75 : vector<64x4xf32>
    %77 = arith.truncf %76 : vector<64x4xf32> to vector<64x4xbf16>
    %c0_52 = arith.constant 0 : index
    %c0_53 = arith.constant 0 : index
    %c0_54 = arith.constant 0 : index
    %78 = vector.load %arg6[%c0_52, %c0_53, %c0_54] : memref<1x64x4xbf16, #tpu.memory_space<vmem>>, vector<1x64x4xbf16>
    %79 = vector.shape_cast %78 : vector<1x64x4xbf16> to vector<64x4xbf16>
    %80 = vector.shape_cast %77 : vector<64x4xbf16> to vector<1x64x4xbf16>
    tpu.vector_store %arg6[%c0_52, %c0_53, %c0_54], %80 {strides = array<i32>} : memref<1x64x4xbf16, #tpu.memory_space<vmem>>, vector<1x64x4xbf16>,
    %cst_55 = arith.constant dense<0.000000e+00> : vector<4xf32>
    %81 = vector.multi_reduction <add>, %76, %cst_55 [0] : vector<64x4xf32> to vector<4xf32>
    %82 = vector.shape_cast %81 : vector<4xf32> to vector<1x4xf32>
    %c0_56 = arith.constant 0 : index
    %c0_57 = arith.constant 0 : index
    %c0_58 = arith.constant 0 : index
    %83 = vector.load %arg7[%c0_56, %c0_57, %c0_58] : memref<1x2x4xf32, #tpu.memory_space<vmem>>, vector<1x1x4xf32>
    %84 = vector.shape_cast %83 : vector<1x1x4xf32> to vector<1x4xf32>
    %85 = vector.shape_cast %82 : vector<1x4xf32> to vector<1x1x4xf32>
    tpu.vector_store %arg7[%c0_56, %c0_57, %c0_58], %85 {strides = array<i32>} : memref<1x2x4xf32, #tpu.memory_space<vmem>>, vector<1x1x4xf32>,
    %86 = arith.mulf %76, %76 : vector<64x4xf32>
    %cst_59 = arith.constant dense<0.000000e+00> : vector<4xf32>
    %87 = vector.multi_reduction <add>, %86, %cst_59 [0] : vector<64x4xf32> to vector<4xf32>
    %88 = vector.shape_cast %87 : vector<4xf32> to vector<1x4xf32>
    %c0_60 = arith.constant 0 : index
    %c1_61 = arith.constant 1 : index
    %c0_62 = arith.constant 0 : index
    %89 = vector.load %arg7[%c0_60, %c1_61, %c0_62] : memref<1x2x4xf32, #tpu.memory_space<vmem>>, vector<1x1x4xf32>
    %90 = vector.shape_cast %89 : vector<1x1x4xf32> to vector<1x4xf32>
    %91 = vector.shape_cast %88 : vector<1x4xf32> to vector<1x1x4xf32>
    tpu.vector_store %arg7[%c0_60, %c1_61, %c0_62], %91 {strides = array<i32>} : memref<1x2x4xf32, #tpu.memory_space<vmem>>, vector<1x1x4xf32>,
    return
  }
  func.func @transform_0(%arg0: i32, %arg1: i32) -> (i32, i32, i32, i32) {
    %c0_i32 = arith.constant 0 : i32
    %c0_i32_0 = arith.constant 0 : i32
    %c0_i32_1 = arith.constant 0 : i32
    %c0_i32_2 = arith.constant 0 : i32
    return %arg0, %c0_i32, %c0_i32_0, %c0_i32_1 : i32, i32, i32, i32
  }
  func.func @transform_1(%arg0: i32, %arg1: i32) -> (i32, i32) {
    %c0_i32 = arith.constant 0 : i32
    %c0_i32_0 = arith.constant 0 : i32
    %c0_i32_1 = arith.constant 0 : i32
    return %c0_i32, %c0_i32_0 : i32, i32
  }
  func.func @transform_2(%arg0: i32, %arg1: i32) -> (i32, i32) {
    %c0_i32 = arith.constant 0 : i32
    %c0_i32_0 = arith.constant 0 : i32
    %c0_i32_1 = arith.constant 0 : i32
    return %c0_i32, %c0_i32_0 : i32, i32
  }
  func.func @transform_3(%arg0: i32, %arg1: i32) -> (i32, i32, i32) {
    %c0_i32 = arith.constant 0 : i32
    %c0_i32_0 = arith.constant 0 : i32
    %c0_i32_1 = arith.constant 0 : i32
    %c0_i32_2 = arith.constant 0 : i32
    return %c0_i32, %c0_i32_0, %c0_i32_1 : i32, i32, i32
  }
  func.func @transform_4(%arg0: i32, %arg1: i32) -> (i32, i32, i32) {
    %c0_i32 = arith.constant 0 : i32
    %c0_i32_0 = arith.constant 0 : i32
    return %arg0, %arg1, %c0_i32 : i32, i32, i32
  }
  func.func @transform_5(%arg0: i32, %arg1: i32) -> (i32, i32, i32) {
    %c4_i32 = arith.constant 4 : i32
    %0 = arith.muli %arg0, %c4_i32 : i32
    %1 = arith.addi %0, %arg1 : i32
    %c0_i32 = arith.constant 0 : i32
    %c0_i32_0 = arith.constant 0 : i32
    %c0_i32_1 = arith.constant 0 : i32
    return %1, %c0_i32, %c0_i32_0 : i32, i32, i32
  }
}

module attributes {stable_mosaic.version = 11 : i64} {
  func.func @_conv3x3_kernel(%arg0: i32, %arg1: i32, %arg2: memref<1x16x16x4xf32, #tpu.memory_space<vmem>>, %arg3: memref<9x4x4xbf16, #tpu.memory_space<vmem>>, %arg4: memref<1x64x4xbf16, #tpu.memory_space<vmem>>, %arg5: memref<1x2x4xf32, #tpu.memory_space<vmem>>, %arg6: memref<18x32x4xbf16, #tpu.memory_space<vmem>>) attributes {dimension_semantics = [#tpu.dimension_semantics<parallel>, #tpu.dimension_semantics<arbitrary>], iteration_bounds = array<i64: 2, 4>, scalar_prefetch = 0 : i64, scratch_operands = 1 : i64, tpu.core_type = #tpu.core_type<tc>, window_params = [{transform_indices = @transform_0, window_bounds = array<i64: 1, 16, 16, 4>}, {pipeline_mode = #tpu.pipeline_mode<synchronous>, transform_indices = @transform_1, window_bounds = array<i64: 9, 4, 4>}, {transform_indices = @transform_2, window_bounds = array<i64: 1, 64, 4>}, {transform_indices = @transform_3, window_bounds = array<i64: 1, 2, 4>}]} {
    %c0_i32 = arith.constant 0 : i32
    %0 = arith.cmpi eq, %arg1, %c0_i32 : i32
    %1 = arith.extui %0 : i1 to i32
    %c0_i32_0 = arith.constant 0 : i32
    %2 = arith.cmpi ne, %1, %c0_i32_0 : i32
    scf.if %2 {
      %cst_63 = arith.constant 0.000000e+00 : bf16
      %92 = vector.broadcast %cst_63 : bf16 to vector<18x32x4xbf16>
      %c0_64 = arith.constant 0 : index
      %c0_65 = arith.constant 0 : index
      %c0_66 = arith.constant 0 : index
      %93 = vector.load %arg6[%c0_64, %c0_65, %c0_66] : memref<18x32x4xbf16, #tpu.memory_space<vmem>>, vector<18x32x4xbf16>
      tpu.vector_store %arg6[%c0_64, %c0_65, %c0_66], %92 {strides = array<i32>} : memref<18x32x4xbf16, #tpu.memory_space<vmem>>, vector<18x32x4xbf16>,
      %c0_67 = arith.constant 0 : index
      %c0_68 = arith.constant 0 : index
      %c0_69 = arith.constant 0 : index
      %c0_70 = arith.constant 0 : index
      %94 = vector.load %arg2[%c0_67, %c0_68, %c0_69, %c0_70] : memref<1x16x16x4xf32, #tpu.memory_space<vmem>>, vector<1x16x16x4xf32>
      %95 = vector.shape_cast %94 : vector<1x16x16x4xf32> to vector<16x16x4xf32>
      %96 = arith.truncf %95 : vector<16x16x4xf32> to vector<16x16x4xbf16>
      %c1_71 = arith.constant 1 : index
      %c8_72 = arith.constant 8 : index
      %c0_73 = arith.constant 0 : index
      %97 = vector.load %arg6[%c1_71, %c8_72, %c0_73] : memref<18x32x4xbf16, #tpu.memory_space<vmem>>, vector<16x16x4xbf16>
      tpu.vector_store %arg6[%c1_71, %c8_72, %c0_73], %96 {strides = array<i32>} : memref<18x32x4xbf16, #tpu.memory_space<vmem>>, vector<16x16x4xbf16>,
    } else {
    }
    %c4_i32 = arith.constant 4 : i32
    %3 = arith.muli %arg1, %c4_i32 : i32
    %cst = arith.constant 0.000000e+00 : f32
    %4 = vector.broadcast %cst : f32 to vector<64x4xf32>
    %c0_i32_1 = arith.constant 0 : i32
    %5 = arith.addi %3, %c0_i32_1 : i32
    %6 = arith.index_cast %5 : i32 to index
    %c7 = arith.constant 7 : index
    %c0 = arith.constant 0 : index
    %7 = vector.load %arg6[%6, %c7, %c0] : memref<18x32x4xbf16, #tpu.memory_space<vmem>>, vector<4x16x4xbf16>
    %8 = vector.shape_cast %7 : vector<4x16x4xbf16> to vector<64x4xbf16>
    %c0_2 = arith.constant 0 : index
    %c0_3 = arith.constant 0 : index
    %c0_4 = arith.constant 0 : index
    %9 = vector.load %arg3[%c0_2, %c0_3, %c0_4] : memref<9x4x4xbf16, #tpu.memory_space<vmem>>, vector<1x4x4xbf16>
    %10 = vector.shape_cast %9 : vector<1x4x4xbf16> to vector<4x4xbf16>
    %cst_5 = arith.constant dense<0.000000e+00> : vector<64x4xf32>
    %11 = tpu.matmul %8, %10, %cst_5 {dimension_numbers = #tpu.dot_dimension_numbers<[1], [0], [0], [1], [0, 0, 1, 1], [], []>} : vector<64x4xbf16>, vector<4x4xbf16>, vector<64x4xf32> -> vector<64x4xf32>
    %12 = arith.addf %4, %11 : vector<64x4xf32>
    %c0_i32_6 = arith.constant 0 : i32
    %13 = arith.addi %3, %c0_i32_6 : i32
    %14 = arith.index_cast %13 : i32 to index
    %c8 = arith.constant 8 : index
    %c0_7 = arith.constant 0 : index
    %15 = vector.load %arg6[%14, %c8, %c0_7] : memref<18x32x4xbf16, #tpu.memory_space<vmem>>, vector<4x16x4xbf16>
    %16 = vector.shape_cast %15 : vector<4x16x4xbf16> to vector<64x4xbf16>
    %c1 = arith.constant 1 : index
    %c0_8 = arith.constant 0 : index
    %c0_9 = arith.constant 0 : index
    %17 = vector.load %arg3[%c1, %c0_8, %c0_9] : memref<9x4x4xbf16, #tpu.memory_space<vmem>>, vector<1x4x4xbf16>
    %18 = vector.shape_cast %17 : vector<1x4x4xbf16> to vector<4x4xbf16>
    %cst_10 = arith.constant dense<0.000000e+00> : vector<64x4xf32>
    %19 = tpu.matmul %16, %18, %cst_10 {dimension_numbers = #tpu.dot_dimension_numbers<[1], [0], [0], [1], [0, 0, 1, 1], [], []>} : vector<64x4xbf16>, vector<4x4xbf16>, vector<64x4xf32> -> vector<64x4xf32>
    %20 = arith.addf %12, %19 : vector<64x4xf32>
    %c0_i32_11 = arith.constant 0 : i32
    %21 = arith.addi %3, %c0_i32_11 : i32
    %22 = arith.index_cast %21 : i32 to index
    %c9 = arith.constant 9 : index
    %c0_12 = arith.constant 0 : index
    %23 = vector.load %arg6[%22, %c9, %c0_12] : memref<18x32x4xbf16, #tpu.memory_space<vmem>>, vector<4x16x4xbf16>
    %24 = vector.shape_cast %23 : vector<4x16x4xbf16> to vector<64x4xbf16>
    %c2 = arith.constant 2 : index
    %c0_13 = arith.constant 0 : index
    %c0_14 = arith.constant 0 : index
    %25 = vector.load %arg3[%c2, %c0_13, %c0_14] : memref<9x4x4xbf16, #tpu.memory_space<vmem>>, vector<1x4x4xbf16>
    %26 = vector.shape_cast %25 : vector<1x4x4xbf16> to vector<4x4xbf16>
    %cst_15 = arith.constant dense<0.000000e+00> : vector<64x4xf32>
    %27 = tpu.matmul %24, %26, %cst_15 {dimension_numbers = #tpu.dot_dimension_numbers<[1], [0], [0], [1], [0, 0, 1, 1], [], []>} : vector<64x4xbf16>, vector<4x4xbf16>, vector<64x4xf32> -> vector<64x4xf32>
    %28 = arith.addf %20, %27 : vector<64x4xf32>
    %c1_i32 = arith.constant 1 : i32
    %29 = arith.addi %3, %c1_i32 : i32
    %30 = arith.index_cast %29 : i32 to index
    %c7_16 = arith.constant 7 : index
    %c0_17 = arith.constant 0 : index
    %31 = vector.load %arg6[%30, %c7_16, %c0_17] : memref<18x32x4xbf16, #tpu.memory_space<vmem>>, vector<4x16x4xbf16>
    %32 = vector.shape_cast %31 : vector<4x16x4xbf16> to vector<64x4xbf16>
    %c3 = arith.constant 3 : index
    %c0_18 = arith.constant 0 : index
    %c0_19 = arith.constant 0 : index
    %33 = vector.load %arg3[%c3, %c0_18, %c0_19] : memref<9x4x4xbf16, #tpu.memory_space<vmem>>, vector<1x4x4xbf16>
    %34 = vector.shape_cast %33 : vector<1x4x4xbf16> to vector<4x4xbf16>
    %cst_20 = arith.constant dense<0.000000e+00> : vector<64x4xf32>
    %35 = tpu.matmul %32, %34, %cst_20 {dimension_numbers = #tpu.dot_dimension_numbers<[1], [0], [0], [1], [0, 0, 1, 1], [], []>} : vector<64x4xbf16>, vector<4x4xbf16>, vector<64x4xf32> -> vector<64x4xf32>
    %36 = arith.addf %28, %35 : vector<64x4xf32>
    %c1_i32_21 = arith.constant 1 : i32
    %37 = arith.addi %3, %c1_i32_21 : i32
    %38 = arith.index_cast %37 : i32 to index
    %c8_22 = arith.constant 8 : index
    %c0_23 = arith.constant 0 : index
    %39 = vector.load %arg6[%38, %c8_22, %c0_23] : memref<18x32x4xbf16, #tpu.memory_space<vmem>>, vector<4x16x4xbf16>
    %40 = vector.shape_cast %39 : vector<4x16x4xbf16> to vector<64x4xbf16>
    %c4 = arith.constant 4 : index
    %c0_24 = arith.constant 0 : index
    %c0_25 = arith.constant 0 : index
    %41 = vector.load %arg3[%c4, %c0_24, %c0_25] : memref<9x4x4xbf16, #tpu.memory_space<vmem>>, vector<1x4x4xbf16>
    %42 = vector.shape_cast %41 : vector<1x4x4xbf16> to vector<4x4xbf16>
    %cst_26 = arith.constant dense<0.000000e+00> : vector<64x4xf32>
    %43 = tpu.matmul %40, %42, %cst_26 {dimension_numbers = #tpu.dot_dimension_numbers<[1], [0], [0], [1], [0, 0, 1, 1], [], []>} : vector<64x4xbf16>, vector<4x4xbf16>, vector<64x4xf32> -> vector<64x4xf32>
    %44 = arith.addf %36, %43 : vector<64x4xf32>
    %c1_i32_27 = arith.constant 1 : i32
    %45 = arith.addi %3, %c1_i32_27 : i32
    %46 = arith.index_cast %45 : i32 to index
    %c9_28 = arith.constant 9 : index
    %c0_29 = arith.constant 0 : index
    %47 = vector.load %arg6[%46, %c9_28, %c0_29] : memref<18x32x4xbf16, #tpu.memory_space<vmem>>, vector<4x16x4xbf16>
    %48 = vector.shape_cast %47 : vector<4x16x4xbf16> to vector<64x4xbf16>
    %c5 = arith.constant 5 : index
    %c0_30 = arith.constant 0 : index
    %c0_31 = arith.constant 0 : index
    %49 = vector.load %arg3[%c5, %c0_30, %c0_31] : memref<9x4x4xbf16, #tpu.memory_space<vmem>>, vector<1x4x4xbf16>
    %50 = vector.shape_cast %49 : vector<1x4x4xbf16> to vector<4x4xbf16>
    %cst_32 = arith.constant dense<0.000000e+00> : vector<64x4xf32>
    %51 = tpu.matmul %48, %50, %cst_32 {dimension_numbers = #tpu.dot_dimension_numbers<[1], [0], [0], [1], [0, 0, 1, 1], [], []>} : vector<64x4xbf16>, vector<4x4xbf16>, vector<64x4xf32> -> vector<64x4xf32>
    %52 = arith.addf %44, %51 : vector<64x4xf32>
    %c2_i32 = arith.constant 2 : i32
    %53 = arith.addi %3, %c2_i32 : i32
    %54 = arith.index_cast %53 : i32 to index
    %c7_33 = arith.constant 7 : index
    %c0_34 = arith.constant 0 : index
    %55 = vector.load %arg6[%54, %c7_33, %c0_34] : memref<18x32x4xbf16, #tpu.memory_space<vmem>>, vector<4x16x4xbf16>
    %56 = vector.shape_cast %55 : vector<4x16x4xbf16> to vector<64x4xbf16>
    %c6 = arith.constant 6 : index
    %c0_35 = arith.constant 0 : index
    %c0_36 = arith.constant 0 : index
    %57 = vector.load %arg3[%c6, %c0_35, %c0_36] : memref<9x4x4xbf16, #tpu.memory_space<vmem>>, vector<1x4x4xbf16>
    %58 = vector.shape_cast %57 : vector<1x4x4xbf16> to vector<4x4xbf16>
    %cst_37 = arith.constant dense<0.000000e+00> : vector<64x4xf32>
    %59 = tpu.matmul %56, %58, %cst_37 {dimension_numbers = #tpu.dot_dimension_numbers<[1], [0], [0], [1], [0, 0, 1, 1], [], []>} : vector<64x4xbf16>, vector<4x4xbf16>, vector<64x4xf32> -> vector<64x4xf32>
    %60 = arith.addf %52, %59 : vector<64x4xf32>
    %c2_i32_38 = arith.constant 2 : i32
    %61 = arith.addi %3, %c2_i32_38 : i32
    %62 = arith.index_cast %61 : i32 to index
    %c8_39 = arith.constant 8 : index
    %c0_40 = arith.constant 0 : index
    %63 = vector.load %arg6[%62, %c8_39, %c0_40] : memref<18x32x4xbf16, #tpu.memory_space<vmem>>, vector<4x16x4xbf16>
    %64 = vector.shape_cast %63 : vector<4x16x4xbf16> to vector<64x4xbf16>
    %c7_41 = arith.constant 7 : index
    %c0_42 = arith.constant 0 : index
    %c0_43 = arith.constant 0 : index
    %65 = vector.load %arg3[%c7_41, %c0_42, %c0_43] : memref<9x4x4xbf16, #tpu.memory_space<vmem>>, vector<1x4x4xbf16>
    %66 = vector.shape_cast %65 : vector<1x4x4xbf16> to vector<4x4xbf16>
    %cst_44 = arith.constant dense<0.000000e+00> : vector<64x4xf32>
    %67 = tpu.matmul %64, %66, %cst_44 {dimension_numbers = #tpu.dot_dimension_numbers<[1], [0], [0], [1], [0, 0, 1, 1], [], []>} : vector<64x4xbf16>, vector<4x4xbf16>, vector<64x4xf32> -> vector<64x4xf32>
    %68 = arith.addf %60, %67 : vector<64x4xf32>
    %c2_i32_45 = arith.constant 2 : i32
    %69 = arith.addi %3, %c2_i32_45 : i32
    %70 = arith.index_cast %69 : i32 to index
    %c9_46 = arith.constant 9 : index
    %c0_47 = arith.constant 0 : index
    %71 = vector.load %arg6[%70, %c9_46, %c0_47] : memref<18x32x4xbf16, #tpu.memory_space<vmem>>, vector<4x16x4xbf16>
    %72 = vector.shape_cast %71 : vector<4x16x4xbf16> to vector<64x4xbf16>
    %c8_48 = arith.constant 8 : index
    %c0_49 = arith.constant 0 : index
    %c0_50 = arith.constant 0 : index
    %73 = vector.load %arg3[%c8_48, %c0_49, %c0_50] : memref<9x4x4xbf16, #tpu.memory_space<vmem>>, vector<1x4x4xbf16>
    %74 = vector.shape_cast %73 : vector<1x4x4xbf16> to vector<4x4xbf16>
    %cst_51 = arith.constant dense<0.000000e+00> : vector<64x4xf32>
    %75 = tpu.matmul %72, %74, %cst_51 {dimension_numbers = #tpu.dot_dimension_numbers<[1], [0], [0], [1], [0, 0, 1, 1], [], []>} : vector<64x4xbf16>, vector<4x4xbf16>, vector<64x4xf32> -> vector<64x4xf32>
    %76 = arith.addf %68, %75 : vector<64x4xf32>
    %77 = arith.truncf %76 : vector<64x4xf32> to vector<64x4xbf16>
    %c0_52 = arith.constant 0 : index
    %c0_53 = arith.constant 0 : index
    %c0_54 = arith.constant 0 : index
    %78 = vector.load %arg4[%c0_52, %c0_53, %c0_54] : memref<1x64x4xbf16, #tpu.memory_space<vmem>>, vector<1x64x4xbf16>
    %79 = vector.shape_cast %78 : vector<1x64x4xbf16> to vector<64x4xbf16>
    %80 = vector.shape_cast %77 : vector<64x4xbf16> to vector<1x64x4xbf16>
    tpu.vector_store %arg4[%c0_52, %c0_53, %c0_54], %80 {strides = array<i32>} : memref<1x64x4xbf16, #tpu.memory_space<vmem>>, vector<1x64x4xbf16>,
    %cst_55 = arith.constant dense<0.000000e+00> : vector<4xf32>
    %81 = vector.multi_reduction <add>, %76, %cst_55 [0] : vector<64x4xf32> to vector<4xf32>
    %82 = vector.shape_cast %81 : vector<4xf32> to vector<1x4xf32>
    %c0_56 = arith.constant 0 : index
    %c0_57 = arith.constant 0 : index
    %c0_58 = arith.constant 0 : index
    %83 = vector.load %arg5[%c0_56, %c0_57, %c0_58] : memref<1x2x4xf32, #tpu.memory_space<vmem>>, vector<1x1x4xf32>
    %84 = vector.shape_cast %83 : vector<1x1x4xf32> to vector<1x4xf32>
    %85 = vector.shape_cast %82 : vector<1x4xf32> to vector<1x1x4xf32>
    tpu.vector_store %arg5[%c0_56, %c0_57, %c0_58], %85 {strides = array<i32>} : memref<1x2x4xf32, #tpu.memory_space<vmem>>, vector<1x1x4xf32>,
    %86 = arith.mulf %76, %76 : vector<64x4xf32>
    %cst_59 = arith.constant dense<0.000000e+00> : vector<4xf32>
    %87 = vector.multi_reduction <add>, %86, %cst_59 [0] : vector<64x4xf32> to vector<4xf32>
    %88 = vector.shape_cast %87 : vector<4xf32> to vector<1x4xf32>
    %c0_60 = arith.constant 0 : index
    %c1_61 = arith.constant 1 : index
    %c0_62 = arith.constant 0 : index
    %89 = vector.load %arg5[%c0_60, %c1_61, %c0_62] : memref<1x2x4xf32, #tpu.memory_space<vmem>>, vector<1x1x4xf32>
    %90 = vector.shape_cast %89 : vector<1x1x4xf32> to vector<1x4xf32>
    %91 = vector.shape_cast %88 : vector<1x4xf32> to vector<1x1x4xf32>
    tpu.vector_store %arg5[%c0_60, %c1_61, %c0_62], %91 {strides = array<i32>} : memref<1x2x4xf32, #tpu.memory_space<vmem>>, vector<1x1x4xf32>,
    return
  }
  func.func @transform_0(%arg0: i32, %arg1: i32) -> (i32, i32, i32, i32) {
    %c0_i32 = arith.constant 0 : i32
    %c0_i32_0 = arith.constant 0 : i32
    %c0_i32_1 = arith.constant 0 : i32
    %c0_i32_2 = arith.constant 0 : i32
    return %arg0, %c0_i32, %c0_i32_0, %c0_i32_1 : i32, i32, i32, i32
  }
  func.func @transform_1(%arg0: i32, %arg1: i32) -> (i32, i32, i32) {
    %c0_i32 = arith.constant 0 : i32
    %c0_i32_0 = arith.constant 0 : i32
    %c0_i32_1 = arith.constant 0 : i32
    %c0_i32_2 = arith.constant 0 : i32
    return %c0_i32, %c0_i32_0, %c0_i32_1 : i32, i32, i32
  }
  func.func @transform_2(%arg0: i32, %arg1: i32) -> (i32, i32, i32) {
    %c0_i32 = arith.constant 0 : i32
    %c0_i32_0 = arith.constant 0 : i32
    return %arg0, %arg1, %c0_i32 : i32, i32, i32
  }
  func.func @transform_3(%arg0: i32, %arg1: i32) -> (i32, i32, i32) {
    %c4_i32 = arith.constant 4 : i32
    %0 = arith.muli %arg0, %c4_i32 : i32
    %1 = arith.addi %0, %arg1 : i32
    %c0_i32 = arith.constant 0 : i32
    %c0_i32_0 = arith.constant 0 : i32
    %c0_i32_1 = arith.constant 0 : i32
    return %1, %c0_i32, %c0_i32_0 : i32, i32, i32
  }
}

module attributes {stable_mosaic.version = 11 : i64} {
  func.func @_bn_add_relu_kernel(%arg0: i32, %arg1: memref<16x128xbf16, #tpu.memory_space<vmem>>, %arg2: memref<1x128xf32, #tpu.memory_space<vmem>>, %arg3: memref<1x128xf32, #tpu.memory_space<vmem>>, %arg4: memref<16x128xf32, #tpu.memory_space<vmem>>, %arg5: memref<16x128xf32, #tpu.memory_space<vmem>>) attributes {dimension_semantics = [#tpu.dimension_semantics<parallel>], iteration_bounds = array<i64: 1>, scalar_prefetch = 0 : i64, scratch_operands = 0 : i64, tpu.core_type = #tpu.core_type<tc>, window_params = [{transform_indices = @transform_0, window_bounds = array<i64: 16, 128>}, {pipeline_mode = #tpu.pipeline_mode<synchronous>, transform_indices = @transform_1, window_bounds = array<i64: 1, 128>}, {pipeline_mode = #tpu.pipeline_mode<synchronous>, transform_indices = @transform_2, window_bounds = array<i64: 1, 128>}, {transform_indices = @transform_3, window_bounds = array<i64: 16, 128>}, {transform_indices = @transform_4, window_bounds = array<i64: 16, 128>}]} {
    %c0 = arith.constant 0 : index
    %c0_0 = arith.constant 0 : index
    %0 = vector.load %arg1[%c0, %c0_0] : memref<16x128xbf16, #tpu.memory_space<vmem>>, vector<16x128xbf16>
    %1 = arith.extf %0 : vector<16x128xbf16> to vector<16x128xf32>
    %c0_1 = arith.constant 0 : index
    %c0_2 = arith.constant 0 : index
    %2 = vector.load %arg2[%c0_1, %c0_2] : memref<1x128xf32, #tpu.memory_space<vmem>>, vector<1x128xf32>
    %3 = vector.broadcast %2 : vector<1x128xf32> to vector<16x128xf32>
    %4 = arith.mulf %1, %3 : vector<16x128xf32>
    %c0_3 = arith.constant 0 : index
    %c0_4 = arith.constant 0 : index
    %5 = vector.load %arg3[%c0_3, %c0_4] : memref<1x128xf32, #tpu.memory_space<vmem>>, vector<1x128xf32>
    %6 = vector.broadcast %5 : vector<1x128xf32> to vector<16x128xf32>
    %7 = arith.addf %4, %6 : vector<16x128xf32>
    %c0_5 = arith.constant 0 : index
    %c0_6 = arith.constant 0 : index
    %8 = vector.load %arg4[%c0_5, %c0_6] : memref<16x128xf32, #tpu.memory_space<vmem>>, vector<16x128xf32>
    %9 = arith.addf %7, %8 : vector<16x128xf32>
    %cst = arith.constant 0.000000e+00 : f32
    %10 = vector.broadcast %cst : f32 to vector<16x128xf32>
    %11 = arith.maximumf %9, %10 : vector<16x128xf32>
    %c0_7 = arith.constant 0 : index
    %c0_8 = arith.constant 0 : index
    %12 = vector.load %arg5[%c0_7, %c0_8] : memref<16x128xf32, #tpu.memory_space<vmem>>, vector<16x128xf32>
    tpu.vector_store %arg5[%c0_7, %c0_8], %11 {strides = array<i32>} : memref<16x128xf32, #tpu.memory_space<vmem>>, vector<16x128xf32>,
    return
  }
  func.func @transform_0(%arg0: i32) -> (i32, i32) {
    %c0_i32 = arith.constant 0 : i32
    %c0_i32_0 = arith.constant 0 : i32
    return %arg0, %c0_i32 : i32, i32
  }
  func.func @transform_1(%arg0: i32) -> (i32, i32) {
    %c0_i32 = arith.constant 0 : i32
    %c0_i32_0 = arith.constant 0 : i32
    %c0_i32_1 = arith.constant 0 : i32
    return %c0_i32, %c0_i32_0 : i32, i32
  }
  func.func @transform_2(%arg0: i32) -> (i32, i32) {
    %c0_i32 = arith.constant 0 : i32
    %c0_i32_0 = arith.constant 0 : i32
    %c0_i32_1 = arith.constant 0 : i32
    return %c0_i32, %c0_i32_0 : i32, i32
  }
  func.func @transform_3(%arg0: i32) -> (i32, i32) {
    %c0_i32 = arith.constant 0 : i32
    %c0_i32_0 = arith.constant 0 : i32
    return %arg0, %c0_i32 : i32, i32
  }
  func.func @transform_4(%arg0: i32) -> (i32, i32) {
    %c0_i32 = arith.constant 0 : i32
    %c0_i32_0 = arith.constant 0 : i32
    return %arg0, %c0_i32 : i32, i32
  }
}

</mosaic_0001>

<bundles_post_ra>
// kernel: tile.18
= control target key start
LH: loop header
LB: loop body
LE: loop exit
PB: predicated region body
PF: predicated region fallthrough
CT: control target
= control target key end

     0   :  { %s40_s0 = inlined_call_operand.vmem [shape: f32[4], index: 0, kind: input, shape index: {}]   ;;  %s41_s1 = inlined_call_operand.vmem [shape: f32[32,4], index: 1, kind: output, shape index: {}]  }
   0x1   :  { %v4_v0 = vld [vmem:[%s40_s0] ss:$0 sm:$0xff] }
   0x2   :  { %5 = vst [vmem:[%s41_s1] sm:$0xff] %v4_v0  ;;  %12 = vst [vmem:[%s41_s1 + $0x8] sm:$0xff] %v4_v0 }
   0x3   :  { %13 = vst [vmem:[%s41_s1 + $0x10] sm:$0xff] %v4_v0  ;;  %14 = vst [vmem:[%s41_s1 + $0x18] sm:$0xff] %v4_v0 }

// kernel: tile.19
= control target key start
LH: loop header
LB: loop body
LE: loop exit
PB: predicated region body
PF: predicated region fallthrough
CT: control target
= control target key end

     0   :  { %s261_s10 = smov 124   ;;  %s262_s11 = smov 116   ;;  %vm3_vm0 = vcmask 31744   ;;  %vm9_vm1 = vcmask 1048544   ;;  %vm15_vm2 = vcmask 1015744   ;;  %vm21_vm3 = vcmask 982944   ;;  %s401_s0 = inlined_call_operand.vmem [shape: f32[32,4], index: 0, kind: input, shape index: {}]   ;;  %s402_s1 = inlined_call_operand.vmem [shape: f32[1,128], index: 1, kind: output, shape index: {}]  }
   0x1   :  { %v199_v0 = vld [vmem:[%s401_s0 + $0x1f] sm:$0x1]   ;;  %v201_v1 = vld [vmem:[%s401_s0 + $0x1d] sm:$0x1]   ;;  %v200_v2 = vld [vmem:[%s401_s0 + $0x1e] sm:$0x1]  }
   0x2   :  { %7 = vrot.lane.b32.xlu0 %v199_v0, %s261_s10  ;;  %19 = vrot.lane.b32.xlu1 %v201_v1, %s262_s11  ;;  %v202_v3 = vld [vmem:[%s401_s0 + $0x1c] sm:$0x1]   ;;  %s263_s16 = smov 120   ;;  %s264_s17 = smov 112   ;;  %v203_v4 = vld [vmem:[%s401_s0 + $0x1b] sm:$0x1]  }
   0x3   :  { %v204_v5 = vld [vmem:[%s401_s0 + $0x1a] sm:$0x1]   ;;  %s265_s22 = smov 108   ;;  %s266_s23 = smov 104   ;;  %v205_v6 = vld [vmem:[%s401_s0 + $0x19] sm:$0x1]  }
   0x4   :  { %v206_v7 = vld [vmem:[%s401_s0 + $0x18] sm:$0x1]   ;;  %s267_s28 = smov 100   ;;  %s268_s29 = smov 96   ;;  %v207_v8 = vld [vmem:[%s401_s0 + $0x17] sm:$0x1]  }
   0x5   :  { %v208_v9 = vld [vmem:[%s401_s0 + $0x16] sm:$0x1]   ;;  %v2_v10 = vld [vmem:[%s401_s0] sm:$0x1]   ;;  %s269_s7 = smov 92   ;;  %s270_s8 = smov 88  }
   0x6   :  { %13 = vrot.lane.b32.xlu0 %v200_v2, %s263_s16  ;;  %25 = vrot.lane.b32.xlu1 %v202_v3, %s264_s17  ;;  %4 = vst.msk [vmem:[#allocation0] sm:$0x1] %vm3_vm0, %v2_v10   ;;  %v209_v11 = vld [vmem:[%s401_s0 + $0x15] sm:$0x1]   ;;  %v210_v12 = vld [vmem:[%s401_s0 + $0x14] sm:$0x1]  }
   0x7   :  { %s271_s13 = smov 84   ;;  %s272_s14 = smov 80   ;;  %v211_v13 = vld [vmem:[%s401_s0 + $0x13] sm:$0x1]   ;;  %v212_v14 = vld [vmem:[%s401_s0 + $0x12] sm:$0x1]  }
   0x8   :  { %s273_s19 = smov 76   ;;  %s274_s20 = smov 72   ;;  %v213_v15 = vld [vmem:[%s401_s0 + $0x11] sm:$0x1]   ;;  %v214_v16 = vld [vmem:[%s401_s0 + $0x10] sm:$0x1]  }
   0x9   :  { %s275_s25 = smov 68   ;;  %s276_s26 = smov 64   ;;  %v215_v17 = vld [vmem:[%s401_s0 + $0xf] sm:$0x1]   ;;  %v216_v18 = vld [vmem:[%s401_s0 + $0xe] sm:$0x1]  }
   0xa   :  { %31 = vrot.lane.b32.xlu0 %v203_v4, %s265_s22  ;;  %37 = vrot.lane.b32.xlu1 %v204_v5, %s266_s23  ;;  %s277_s2 = smov 60   ;;  %s278_s3 = smov 56   ;;  %v217_v19 = vld [vmem:[%s401_s0 + $0xd] sm:$0x1]   ;;  %v218_v20 = vld [vmem:[%s401_s0 + $0xc] sm:$0x1]  }
   0xb   :  { %s280_s9 = smov 48   ;;  %v219_v21 = vld [vmem:[%s401_s0 + $0xb] sm:$0x1]   ;;  %v220_v22 = vld [vmem:[%s401_s0 + $0xa] sm:$0x1]   ;;  %s282_s15 = smov 40  }
   0xc   :  { %v221_v23 = vld [vmem:[%s401_s0 + $0x9] sm:$0x1]   ;;  %v222_v24 = vld [vmem:[%s401_s0 + $0x8] sm:$0x1]   ;;  %s284_s21 = smov 32   ;;  %s286_s27 = smov 24  }
   0xd   :  { %v223_v25 = vld [vmem:[%s401_s0 + $0x7] sm:$0x1]   ;;  %v224_v26 = vld [vmem:[%s401_s0 + $0x6] sm:$0x1]   ;;  %v225_v27 = vld [vmem:[%s401_s0 + $0x5] sm:$0x1]  }
   0xe   :  { %43 = vrot.lane.b32.xlu0 %v205_v6, %s267_s28  ;;  %49 = vrot.lane.b32.xlu1 %v206_v7, %s268_s29  ;;  %v226_v28 = vld [vmem:[%s401_s0 + $0x4] sm:$0x1]   ;;  %s288_s4 = smov 16   ;;  %v227_v29 = vld [vmem:[%s401_s0 + $0x3] sm:$0x1]   ;;  %s290_s10 = smov 8  }
   0xf   :  { %v228_v30 = vld [vmem:[%s401_s0 + $0x2] sm:$0x1]   ;;  %v229_v31 = vld [vmem:[%s401_s0 + $0x1] sm:$0x1]   ;;  %s291_s0 = smov 4   ;;  %vm27_vm4 = vcmask 950144  }
  0x10   :  { %vm33_vm5 = vcmask 917344   ;;  %vm39_vm6 = vcmask 884544   ;;  %vm45_vm7 = vcmask 851744   ;;  %vm51_vm8 = vcmask 818944  }
  0x11   :  { %vm57_vm9 = vcmask 786144   ;;  %vm63_vm10 = vcmask 753344   ;;  %vm69_vm11 = vcmask 720544   ;;  %vm75_vm12 = vcmask 687744  }
  0x12   :  { %55 = vrot.lane.b32.xlu0 %v207_v8, %s269_s7  ;;  %61 = vrot.lane.b32.xlu1 %v208_v9, %s270_s8  ;;  %s279_s8 = smov 52   ;;  %vm81_vm13 = vcmask 654944   ;;  %vm87_vm14 = vcmask 622144   ;;  %vm93_vm15 = vcmask 589344   ;;  %vm99_vm0 = vcmask 556544  }
  0x16   :  { %67 = vrot.lane.b32.xlu0 %v209_v11, %s271_s13  ;;  %73 = vrot.lane.b32.xlu1 %v210_v12, %s272_s14  ;;  %s281_s14 = smov 44  }
  0x1a   :  { %79 = vrot.lane.b32.xlu0 %v211_v13, %s273_s19  ;;  %85 = vrot.lane.b32.xlu1 %v212_v14, %s274_s20  ;;  %s283_s20 = smov 36  }
  0x1e   :  { %91 = vrot.lane.b32.xlu0 %v213_v15, %s275_s25  ;;  %97 = vrot.lane.b32.xlu1 %v214_v16, %s276_s26  ;;  %s285_s26 = smov 28  }
  0x22   :  { %103 = vrot.lane.b32.xlu0 %v215_v17, %s277_s2  ;;  %109 = vrot.lane.b32.xlu1 %v216_v18, %s278_s3  ;;  %s287_s3 = smov 20  }
  0x26   :  { %115 = vrot.lane.b32.xlu0 %v217_v19, %s279_s8  ;;  %121 = vrot.lane.b32.xlu1 %v218_v20, %s280_s9  ;;  %s289_s9 = smov 12  }
  0x2a   :  { %127 = vrot.lane.b32.xlu0 %v219_v21, %s281_s14  ;;  %133 = vrot.lane.b32.xlu1 %v220_v22, %s282_s15 }
  0x2e   :  { %139 = vrot.lane.b32.xlu0 %v221_v23, %s283_s20  ;;  %145 = vrot.lane.b32.xlu1 %v222_v24, %s284_s21 }
  0x32   :  { %151 = vrot.lane.b32.xlu0 %v223_v25, %s285_s26  ;;  %157 = vrot.lane.b32.xlu1 %v224_v26, %s286_s27 }
  0x36   :  { %163 = vrot.lane.b32.xlu0 %v225_v27, %s287_s3  ;;  %169 = vrot.lane.b32.xlu1 %v226_v28, %s288_s4 }
  0x3a   :  { %175 = vrot.lane.b32.xlu0 %v227_v29, %s289_s9  ;;  %181 = vrot.lane.b32.xlu1 %v228_v30, %s290_s10 }
  0x3e   :  { %187 = vrot.lane.b32.xlu0 %v229_v31, %s291_s0 }
  0x74   :  { %v8_v32 = vpop.permute.xlu0 %7   ;;  %v20_v33 = vpop.permute.xlu1 %19  }
  0x75   :  { %10 = vst.msk [vmem:[#allocation0] sm:$0x1] %vm9_vm1, %v8_v32   ;;  %vm105_vm1 = vcmask 523744  }
  0x78   :  { %v14_v34 = vpop.permute.xlu0 %13   ;;  %v26_v35 = vpop.permute.xlu1 %25  }
  0x79   :  { %16 = vst.msk [vmem:[#allocation0] sm:$0x1] %vm15_vm2, %v14_v34   ;;  %vm111_vm2 = vcmask 490944  }
  0x7a   :  { %22 = vst.msk [vmem:[#allocation0] sm:$0x1] %vm21_vm3, %v20_v33   ;;  %vm117_vm3 = vcmask 458144  }
  0x7b   :  { %28 = vst.msk [vmem:[#allocation0] sm:$0x1] %vm27_vm4, %v26_v35   ;;  %vm123_vm4 = vcmask 425344  }
  0x7c   :  { %v32_v36 = vpop.permute.xlu0 %31   ;;  %v38_v37 = vpop.permute.xlu1 %37  }
  0x7d   :  { %34 = vst.msk [vmem:[#allocation0] sm:$0x1] %vm33_vm5, %v32_v36   ;;  %vm129_vm5 = vcmask 392544  }
  0x7e   :  { %40 = vst.msk [vmem:[#allocation0] sm:$0x1] %vm39_vm6, %v38_v37   ;;  %vm135_vm6 = vcmask 359744  }
  0x80   :  { %v44_v38 = vpop.permute.xlu0 %43   ;;  %v50_v39 = vpop.permute.xlu1 %49  }
  0x81   :  { %46 = vst.msk [vmem:[#allocation0] sm:$0x1] %vm45_vm7, %v44_v38   ;;  %vm141_vm7 = vcmask 326944  }
  0x82   :  { %52 = vst.msk [vmem:[#allocation0] sm:$0x1] %vm51_vm8, %v50_v39   ;;  %vm147_vm8 = vcmask 294144  }
  0x84   :  { %v56_v40 = vpop.permute.xlu0 %55   ;;  %v62_v41 = vpop.permute.xlu1 %61  }
  0x85   :  { %58 = vst.msk [vmem:[#allocation0] sm:$0x1] %vm57_vm9, %v56_v40   ;;  %vm153_vm9 = vcmask 261344  }
  0x86   :  { %64 = vst.msk [vmem:[#allocation0] sm:$0x1] %vm63_vm10, %v62_v41   ;;  %vm159_vm10 = vcmask 228544  }
  0x88   :  { %v68_v42 = vpop.permute.xlu0 %67   ;;  %v74_v43 = vpop.permute.xlu1 %73  }
  0x89   :  { %70 = vst.msk [vmem:[#allocation0] sm:$0x1] %vm69_vm11, %v68_v42   ;;  %vm165_vm11 = vcmask 195744  }
  0x8a   :  { %76 = vst.msk [vmem:[#allocation0] sm:$0x1] %vm75_vm12, %v74_v43   ;;  %vm171_vm12 = vcmask 162944  }
  0x8c   :  { %v80_v44 = vpop.permute.xlu0 %79   ;;  %v86_v45 = vpop.permute.xlu1 %85  }
  0x8d   :  { %82 = vst.msk [vmem:[#allocation0] sm:$0x1] %vm81_vm13, %v80_v44   ;;  %vm177_vm13 = vcmask 130144  }
  0x8e   :  { %88 = vst.msk [vmem:[#allocation0] sm:$0x1] %vm87_vm14, %v86_v45   ;;  %vm183_vm14 = vcmask 97344  }
  0x90   :  { %v92_v46 = vpop.permute.xlu0 %91   ;;  %v98_v47 = vpop.permute.xlu1 %97  }
  0x91   :  { %94 = vst.msk [vmem:[#allocation0] sm:$0x1] %vm93_vm15, %v92_v46   ;;  %vm189_vm15 = vcmask 64544  }
  0x92   :  { %100 = vst.msk [vmem:[#allocation0] sm:$0x1] %vm99_vm0, %v98_v47  }
  0x94   :  { %v104_v48 = vpop.permute.xlu0 %103   ;;  %v110_v49 = vpop.permute.xlu1 %109  }
  0x95   :  { %106 = vst.msk [vmem:[#allocation0] sm:$0x1] %vm105_vm1, %v104_v48  }
  0x96   :  { %112 = vst.msk [vmem:[#allocation0] sm:$0x1] %vm111_vm2, %v110_v49  }
  0x98   :  { %v116_v50 = vpop.permute.xlu0 %115   ;;  %v122_v51 = vpop.permute.xlu1 %121  }
  0x99   :  { %118 = vst.msk [vmem:[#allocation0] sm:$0x1] %vm117_vm3, %v116_v50  }
  0x9a   :  { %124 = vst.msk [vmem:[#allocation0] sm:$0x1] %vm123_vm4, %v122_v51  }
  0x9c   :  { %v128_v52 = vpop.permute.xlu0 %127   ;;  %v134_v53 = vpop.permute.xlu1 %133  }
  0x9d   :  { %130 = vst.msk [vmem:[#allocation0] sm:$0x1] %vm129_vm5, %v128_v52  }
  0x9e   :  { %136 = vst.msk [vmem:[#allocation0] sm:$0x1] %vm135_vm6, %v134_v53  }
  0xa0   :  { %v140_v54 = vpop.permute.xlu0 %139   ;;  %v146_v55 = vpop.permute.xlu1 %145  }
  0xa1   :  { %142 = vst.msk [vmem:[#allocation0] sm:$0x1] %vm141_vm7, %v140_v54  }
  0xa2   :  { %148 = vst.msk [vmem:[#allocation0] sm:$0x1] %vm147_vm8, %v146_v55  }
  0xa4   :  { %v152_v56 = vpop.permute.xlu0 %151   ;;  %v158_v57 = vpop.permute.xlu1 %157  }
  0xa5   :  { %154 = vst.msk [vmem:[#allocation0] sm:$0x1] %vm153_vm9, %v152_v56  }
  0xa6   :  { %160 = vst.msk [vmem:[#allocation0] sm:$0x1] %vm159_vm10, %v158_v57  }
  0xa8   :  { %v164_v58 = vpop.permute.xlu0 %163   ;;  %v170_v59 = vpop.permute.xlu1 %169  }
  0xa9   :  { %166 = vst.msk [vmem:[#allocation0] sm:$0x1] %vm165_vm11, %v164_v58  }
  0xaa   :  { %172 = vst.msk [vmem:[#allocation0] sm:$0x1] %vm171_vm12, %v170_v59  }
  0xac   :  { %v176_v60 = vpop.permute.xlu0 %175   ;;  %v182_v61 = vpop.permute.xlu1 %181  }
  0xad   :  { %178 = vst.msk [vmem:[#allocation0] sm:$0x1] %vm177_vm13, %v176_v60  }
  0xae   :  { %184 = vst.msk [vmem:[#allocation0] sm:$0x1] %vm183_vm14, %v182_v61  }
  0xb0   :  { %v188_v62 = vpop.permute.xlu0 %187  }
  0xb1   :  { %190 = vst.msk [vmem:[#allocation0] sm:$0x1] %vm189_vm15, %v188_v62  }
  0xb8   :  { %v195_v63 = vld [vmem:[#allocation0] sm:$0x1] }
  0xb9   :  { %198 = vst [vmem:[%s402_s1] sm:$0x1] %v195_v63 }

// kernel: basic_block_forward.5
= control target key start
LH: loop header
LB: loop body
LE: loop exit
PB: predicated region body
PF: predicated region fallthrough
CT: control target
= control target key end

     0   :  { %s103_s0 = inlined_call_operand.vmem [shape: bf16[16,128], index: 0, kind: input, shape index: {}]   ;;  %s104_s1 = inlined_call_operand.vmem [shape: f32[1,128], index: 1, kind: input, shape index: {}]   ;;  %s105_s2 = inlined_call_operand.vmem [shape: f32[1,128], index: 2, kind: input, shape index: {}]   ;;  %s106_s3 = inlined_call_operand.vmem [shape: f32[16,128], index: 3, kind: input, shape index: {}]   ;;  %s107_s4 = inlined_call_operand.vmem [shape: f32[16,128], index: 4, kind: output, shape index: {}]  }
   0x1   :  { %v54_v0 = vld [vmem:[%s103_s0] sm:$0xff]   ;;  %v40_v8 = vld [vmem:[%s106_s3 + $0x8] sm:$0xff] }
   0x2   :  { %v51_v1 = vld [vmem:[%s104_s1] ss:$0 sm:$0xff]  ;;  %v55_v2 = vunpack.c.l.bf16 %v54_v0  ;;  %v56_v3 = vunpack.c.h.bf16 %v54_v0 }
   0x3   :  { %v52_v4 = vld [vmem:[%s105_s2] ss:$0 sm:$0xff] }
   0x4   :  { %v28_v5 = vmul.f32 %v55_v2, %v51_v1  ;;  %v29_v6 = vmul.f32 %v56_v3, %v51_v1  ;;  %v39_v7 = vld [vmem:[%s106_s3] sm:$0xff] }
   0x6   :  { %v37_v9 = vadd.f32 %v52_v4, %v28_v5  ;;  %v38_v10 = vadd.f32 %v52_v4, %v29_v6 }
   0x8   :  { %v41_v11 = vadd.f32 %v39_v7, %v37_v9  ;;  %v42_v12 = vadd.f32 %v40_v8, %v38_v10 }
   0xa   :  { %v43_v13 = vmax.f32 %v41_v11, 0.0  ;;  %v44_v14 = vmax.f32 %v42_v12, 0.0 }
   0xc   :  { %45 = vst [vmem:[%s107_s4] sm:$0xff] %v43_v13  ;;  %46 = vst [vmem:[%s107_s4 + $0x8] sm:$0xff] %v44_v14 }

// kernel: basic_block_forward.4
= control target key start
LH: loop header
LB: loop body
LE: loop exit
PB: predicated region body
PF: predicated region fallthrough
CT: control target
= control target key end

     0   :  { %s3077_s18 = smov 0   ;;  %s3079_s19 = smov 0   ;;  %s3834_s0 = inlined_call_operand.vmem [shape: bf16[2,16,16,4], index: 0, kind: input, shape index: {}]   ;;  %s3835_s1 = inlined_call_operand.vmem [shape: f32[1,4], index: 1, kind: input, shape index: {}]   ;;  %s3836_s2 = inlined_call_operand.vmem [shape: f32[1,4], index: 2, kind: input, shape index: {}]   ;;  %s3837_s3 = inlined_call_operand.vmem [shape: bf16[9,4,4], index: 3, kind: input, shape index: {}]   ;;  %s3838_s4 = inlined_call_operand.vmem [shape: bf16[2,256,4], index: 4, kind: output, shape index: {0}]   ;;  %s3839_s5 = inlined_call_operand.vmem [shape: f32[8,2,4], index: 5, kind: output, shape index: {1}]  }
   0x1   :  { %s3081_s20 = smov 0   ;;  %s3083_s21 = smov 0  }
   0x2   :  { %s3085_s22 = smov 0  }
   0x3 LB: > { %s25_s23 = sadd.s32 1, %s3036_s20  ;;  %s28_s24 = sadd.s32 1, %s3040_s21  ;;  %s3044_s22 = sphi %s3085_s22, %s16_s22   ;;  %s3040_s21 = sphi %s3083_s21, %s3849_s21   ;;  %s3036_s20 = sphi %s3081_s20, %s3848_s20   ;;  %s3032_s19 = sphi %s3079_s19, %s3847_s19   ;;  %s3028_s18 = sphi %s3077_s18, %s3846_s18  }
   0x4   : > { %p26_p0 = scmp.ge.s32.totalorder %s25_s23, 4  ;;  %p2482_p1 = scmp.ge.s32.totalorder %s3044_s22, 1 }
   0x5   : > { %p208_p2 = scmp.lt.s32.totalorder %s3044_s22, 9 }
   0x6   : > { %s3851_s23 = smov (%p26_p0, %s25_s23), 0  ;;  %s3853_s24 = smov (!%p26_p0, %s28_s24), %s3040_s21 }
   0x7   : > { %p209_p3 = pnand %p2482_p1, %p208_p2  ;;  %p30_p4 = scmp.ge.s32.totalorder %s3853_s24, 2 }
   0x9   : > { %s3855_s24 = smov (%p30_p4, %s3853_s24), 0  ;;  %212 = sbr.rel (%p209_p3) target bundleno = 418 (0x1a2), region = 36 }
   0xe   : > { %p246_p5 = scmp.lt.s32.totalorder %s3032_s19, 1  ;;  %s2485_s25 = sshll.u32 %s3028_s18, 3 }
   0xf   : > { %p254_p6 = scmp.lt.s32.totalorder %s2485_s25, 31  ;;  %s2488_s26 = sshll.u32 %s3032_s19, 2 }
  0x10   : > { %s3857_s19 = smov (!%p246_p5, %s3032_s19), 1  ;;  %s262_s9 = sadd.s32 %s3028_s18, %s2488_s26 }
  0x11   : > { %s3859_s25 = smov (!%p254_p6, %s2485_s25), 31  ;;  %s2682_s27 = sshll.u32 %s3857_s19, 7 }
  0x12   : > { %s2486_s28 = sshll.u32 %s3857_s19, 5  ;;  %s3113_s6 = scalar_lea.vmem %s3834_s0, %s2682_s27 }
  0x13   : > { %s257_s7 = sadd.s32 %s2486_s28, %s3859_s25  ;;  %p263_p7 = scmp.lt.s32.totalorder %s262_s9, 7 }
  0x14   : > { %s2487_s8 = sshll.u32 %s257_s7, 2  ;;  %p2490_p8 = scmp.ne.s32.totalorder %s3028_s18, 0 }
  0x15   : > { %s3119_s12 = scalar_lea.vmem %s3838_s4, %s2487_s8  ;;  %s3861_s9 = smov (!%p263_p7, %s262_s9), 7 }
  0x16   : > { %s2489_s13 = sshll.u32 %s3861_s9, 1  ;;  %273 = sbr.rel (%p2490_p8) target bundleno = 85 (0x55), region = 40 }
  0x17   : > { %s3124_s16 = scalar_lea.vmem %s3839_s5, %s2489_s13 }
  0x1b   : > { %vm274_vm0 = vcmask 27648   ;;  %v3128_v0 = vld [vmem:[%s3113_s6] sm:$0xff]   ;;  %v3136_v2 = vld [vmem:[%s3113_s6 + $0x8] sm:$0xff]   ;;  %v3046_v3 = vmov 0   ;;  %v2792_v8 = vld [vmem:[%s3113_s6 + $0x10] sm:$0xff]  }
  0x1c   : > { %v3133_v1 = vld [vmem:[%s3835_s1] ss:$0 sm:$0xff]  ;;  %280 = vst.msk [vmem:[#allocation2 + $0x14] sm:$0xf] %vm274_vm0, %v3046_v3  ;;  %275 = vst.msk [vmem:[#allocation2] sm:$0xf] %vm274_vm0, %v3046_v3  ;;  %v2729_v4 = vunpack.c.l.bf16 %v3128_v0  ;;  %v2730_v5 = vunpack.c.h.bf16 %v3128_v0  ;;  %v2733_v6 = vunpack.c.l.bf16 %v3136_v2  ;;  %v2734_v7 = vunpack.c.h.bf16 %v3136_v2 }
  0x1d   : > { %276 = vst.msk [vmem:[#allocation2 + $0x4] sm:$0xf] %vm274_vm0, %v3046_v3  ;;  %277 = vst.msk [vmem:[#allocation2 + $0x8] sm:$0xf] %vm274_vm0, %v3046_v3  ;;  %v2793_v9 = vld [vmem:[%s3113_s6 + $0x18] sm:$0xff]   ;;  %v2737_v11 = vunpack.c.l.bf16 %v2792_v8  ;;  %v2738_v12 = vunpack.c.h.bf16 %v2792_v8  ;;  %v2794_v39 = vld [vmem:[%s3113_s6 + $0x20] sm:$0xff]  }
  0x1e   : > { %278 = vst.msk [vmem:[#allocation2 + $0xc] sm:$0xf] %vm274_vm0, %v3046_v3  ;;  %279 = vst.msk [vmem:[#allocation2 + $0x10] sm:$0xf] %vm274_vm0, %v3046_v3  ;;  %v3291_v10 = vld [vmem:[%s3836_s2] ss:$0 sm:$0xff]  ;;  %v2741_v13 = vunpack.c.l.bf16 %v2793_v9  ;;  %v2742_v14 = vunpack.c.h.bf16 %v2793_v9  ;;  %v418_v15 = vmul.f32 %v2729_v4, %v3133_v1  ;;  %v419_v16 = vmul.f32 %v2730_v5, %v3133_v1 }
  0x1f   : > { %281 = vst.msk [vmem:[#allocation2 + $0x18] sm:$0xf] %vm274_vm0, %v3046_v3  ;;  %282 = vst.msk [vmem:[#allocation2 + $0x1c] sm:$0xf] %vm274_vm0, %v3046_v3  ;;  %v420_v17 = vmul.f32 %v2733_v6, %v3133_v1  ;;  %v421_v18 = vmul.f32 %v2734_v7, %v3133_v1  ;;  %v422_v19 = vmul.f32 %v2737_v11, %v3133_v1  ;;  %v2795_v40 = vld [vmem:[%s3113_s6 + $0x28] sm:$0xff]   ;;  %v2796_v45 = vld [vmem:[%s3113_s6 + $0x30] sm:$0xff]   ;;  %v2745_v51 = vunpack.c.l.bf16 %v2794_v39 }
  0x20   : > { %283 = vst.msk [vmem:[#allocation2 + $0x20] sm:$0xf] %vm274_vm0, %v3046_v3  ;;  %284 = vst.msk [vmem:[#allocation2 + $0x24] sm:$0xf] %vm274_vm0, %v3046_v3  ;;  %v423_v20 = vmul.f32 %v2738_v12, %v3133_v1  ;;  %v424_v21 = vmul.f32 %v2741_v13, %v3133_v1  ;;  %v425_v22 = vmul.f32 %v2742_v14, %v3133_v1  ;;  %v2797_v46 = vld [vmem:[%s3113_s6 + $0x38] sm:$0xff]   ;;  %v2746_v52 = vunpack.c.h.bf16 %v2794_v39 }
  0x21   : > { %285 = vst.msk [vmem:[#allocation2 + $0x28] sm:$0xf] %vm274_vm0, %v3046_v3  ;;  %286 = vst.msk [vmem:[#allocation2 + $0x2c] sm:$0xf] %vm274_vm0, %v3046_v3  ;;  %v457_v23 = vadd.f32 %v3291_v10, %v418_v15  ;;  %v458_v24 = vadd.f32 %v3291_v10, %v419_v16  ;;  %v459_v25 = vadd.f32 %v3291_v10, %v420_v17  ;;  %v2749_v53 = vunpack.c.l.bf16 %v2795_v40 }
  0x22   : > { %287 = vst.msk [vmem:[#allocation2 + $0x30] sm:$0xf] %vm274_vm0, %v3046_v3  ;;  %288 = vst.msk [vmem:[#allocation2 + $0x34] sm:$0xf] %vm274_vm0, %v3046_v3  ;;  %v460_v26 = vadd.f32 %v3291_v10, %v421_v18  ;;  %v461_v27 = vadd.f32 %v3291_v10, %v422_v19  ;;  %v462_v28 = vadd.f32 %v3291_v10, %v423_v20  ;;  %v2750_v54 = vunpack.c.h.bf16 %v2795_v40 }
  0x23   : > { %289 = vst.msk [vmem:[#allocation2 + $0x38] sm:$0xf] %vm274_vm0, %v3046_v3  ;;  %290 = vst.msk [vmem:[#allocation2 + $0x3c] sm:$0xf] %vm274_vm0, %v3046_v3  ;;  %v463_v29 = vadd.f32 %v3291_v10, %v424_v21  ;;  %v464_v30 = vadd.f32 %v3291_v10, %v425_v22  ;;  %v489_v31 = vmax.f32 %v457_v23, 0.0  ;;  %v490_v32 = vmax.f32 %v458_v24, 0.0 }
  0x24   : > { %291 = vst.msk [vmem:[#allocation2 + $0x40] sm:$0xf] %vm274_vm0, %v3046_v3  ;;  %292 = vst.msk [vmem:[#allocation2 + $0x44] sm:$0xf] %vm274_vm0, %v3046_v3  ;;  %v491_v33 = vmax.f32 %v459_v25, 0.0  ;;  %v492_v34 = vmax.f32 %v460_v26, 0.0  ;;  %v2753_v55 = vunpack.c.l.bf16 %v2796_v45  ;;  %v2754_v56 = vunpack.c.h.bf16 %v2796_v45 }
  0x25   : > { %293 = vst.msk [vmem:[#allocation2 + $0x48] sm:$0xf] %vm274_vm0, %v3046_v3  ;;  %294 = vst.msk [vmem:[#allocation2 + $0x4c] sm:$0xf] %vm274_vm0, %v3046_v3  ;;  %v493_v35 = vmax.f32 %v461_v27, 0.0  ;;  %v494_v36 = vmax.f32 %v462_v28, 0.0  ;;  %v2683_v41 = vpack.c.bf16 %v489_v31, %v489_v31  ;;  %v2684_v42 = vpack.c.bf16 %v490_v32, %v490_v32 }
  0x26   : > { %295 = vst.msk [vmem:[#allocation2 + $0x50] sm:$0xf] %vm274_vm0, %v3046_v3  ;;  %296 = vst.msk [vmem:[#allocation2 + $0x54] sm:$0xf] %vm274_vm0, %v3046_v3  ;;  %v495_v37 = vmax.f32 %v463_v29, 0.0  ;;  %v496_v38 = vmax.f32 %v464_v30, 0.0  ;;  %v2685_v43 = vpack.c.bf16 %v491_v33, %v491_v33  ;;  %v2686_v44 = vpack.c.bf16 %v492_v34, %v492_v34 }
  0x27   : > { %297 = vst.msk [vmem:[#allocation2 + $0x58] sm:$0xf] %vm274_vm0, %v3046_v3  ;;  %298 = vst.msk [vmem:[#allocation2 + $0x5c] sm:$0xf] %vm274_vm0, %v3046_v3  ;;  %v2687_v47 = vpack.c.bf16 %v493_v35, %v493_v35  ;;  %v2688_v48 = vpack.c.bf16 %v494_v36, %v494_v36  ;;  %v2757_v57 = vunpack.c.l.bf16 %v2797_v46  ;;  %v2758_v58 = vunpack.c.h.bf16 %v2797_v46  ;;  %v2798_v21 = vld [vmem:[%s3113_s6 + $0x40] sm:$0xff]   ;;  %v2799_v22 = vld [vmem:[%s3113_s6 + $0x48] sm:$0xff]  }
  0x28   : > { %299 = vst.msk [vmem:[#allocation2 + $0x60] sm:$0xf] %vm274_vm0, %v3046_v3  ;;  %300 = vst.msk [vmem:[#allocation2 + $0x64] sm:$0xf] %vm274_vm0, %v3046_v3  ;;  %v2689_v49 = vpack.c.bf16 %v495_v37, %v495_v37  ;;  %v2690_v50 = vpack.c.bf16 %v496_v38, %v496_v38  ;;  %v426_v59 = vmul.f32 %v2745_v51, %v3133_v1  ;;  %v2800_v27 = vld [vmem:[%s3113_s6 + $0x50] sm:$0xff]   ;;  %v2801_v28 = vld [vmem:[%s3113_s6 + $0x58] sm:$0xff]   ;;  %v2761_v33 = vunpack.c.l.bf16 %v2798_v21 }
  0x29   : > { %301 = vst.msk [vmem:[#allocation2 + $0x68] sm:$0xf] %vm274_vm0, %v3046_v3  ;;  %302 = vst.msk [vmem:[#allocation2 + $0x6c] sm:$0xf] %vm274_vm0, %v3046_v3  ;;  %v427_v60 = vmul.f32 %v2746_v52, %v3133_v1  ;;  %v428_v61 = vmul.f32 %v2749_v53, %v3133_v1  ;;  %v429_v62 = vmul.f32 %v2750_v54, %v3133_v1  ;;  %v2762_v34 = vunpack.c.h.bf16 %v2798_v21 }
  0x2a   : > { %303 = vst.msk [vmem:[#allocation2 + $0x70] sm:$0xf] %vm274_vm0, %v3046_v3  ;;  %304 = vst.msk [vmem:[#allocation2 + $0x74] sm:$0xf] %vm274_vm0, %v3046_v3  ;;  %v430_v63 = vmul.f32 %v2753_v55, %v3133_v1  ;;  %v431_v0 = vmul.f32 %v2754_v56, %v3133_v1  ;;  %v432_v2 = vmul.f32 %v2757_v57, %v3133_v1  ;;  %v2765_v35 = vunpack.c.l.bf16 %v2799_v22 }
  0x2b   : > { %305 = vst.msk [vmem:[#allocation2 + $0x78] sm:$0xf] %vm274_vm0, %v3046_v3  ;;  %306 = vst.msk [vmem:[#allocation2 + $0x7c] sm:$0xf] %vm274_vm0, %v3046_v3  ;;  %v465_v4 = vadd.f32 %v3291_v10, %v426_v59  ;;  %v466_v5 = vadd.f32 %v3291_v10, %v427_v60  ;;  %v467_v6 = vadd.f32 %v3291_v10, %v428_v61  ;;  %v2766_v36 = vunpack.c.h.bf16 %v2799_v22 }
  0x2c   : > { %307 = vst.msk [vmem:[#allocation2 + $0x80] sm:$0xf] %vm274_vm0, %v3046_v3  ;;  %308 = vst.msk [vmem:[#allocation2 + $0x84] sm:$0xf] %vm274_vm0, %v3046_v3  ;;  %v468_v7 = vadd.f32 %v3291_v10, %v429_v62  ;;  %v469_v8 = vadd.f32 %v3291_v10, %v430_v63  ;;  %v470_v9 = vadd.f32 %v3291_v10, %v431_v0  ;;  %v2769_v37 = vunpack.c.l.bf16 %v2800_v27 }
  0x2d   : > { %309 = vst.msk [vmem:[#allocation2 + $0x88] sm:$0xf] %vm274_vm0, %v3046_v3  ;;  %310 = vst.msk [vmem:[#allocation2 + $0x8c] sm:$0xf] %vm274_vm0, %v3046_v3  ;;  %v471_v11 = vadd.f32 %v3291_v10, %v432_v2  ;;  %v497_v13 = vmax.f32 %v465_v4, 0.0  ;;  %v498_v14 = vmax.f32 %v466_v5, 0.0  ;;  %v2770_v38 = vunpack.c.h.bf16 %v2800_v27 }
  0x2e   : > { %311 = vst.msk [vmem:[#allocation2 + $0x90] sm:$0xf] %vm274_vm0, %v3046_v3  ;;  %312 = vst.msk [vmem:[#allocation2 + $0x94] sm:$0xf] %vm274_vm0, %v3046_v3  ;;  %v499_v15 = vmax.f32 %v467_v6, 0.0  ;;  %v500_v16 = vmax.f32 %v468_v7, 0.0  ;;  %v2773_v39 = vunpack.c.l.bf16 %v2801_v28  ;;  %v2774_v40 = vunpack.c.h.bf16 %v2801_v28 }
  0x2f   : > { %313 = vst.msk [vmem:[#allocation2 + $0x98] sm:$0xf] %vm274_vm0, %v3046_v3  ;;  %314 = vst.msk [vmem:[#allocation2 + $0x9c] sm:$0xf] %vm274_vm0, %v3046_v3  ;;  %v501_v17 = vmax.f32 %v469_v8, 0.0  ;;  %v502_v18 = vmax.f32 %v470_v9, 0.0  ;;  %v2691_v23 = vpack.c.bf16 %v497_v13, %v497_v13  ;;  %v2692_v24 = vpack.c.bf16 %v498_v14, %v498_v14 }
  0x30   : > { %315 = vst.msk [vmem:[#allocation2 + $0xa0] sm:$0xf] %vm274_vm0, %v3046_v3  ;;  %316 = vst.msk [vmem:[#allocation2 + $0xa4] sm:$0xf] %vm274_vm0, %v3046_v3  ;;  %v503_v19 = vmax.f32 %v471_v11, 0.0  ;;  %v2693_v25 = vpack.c.bf16 %v499_v15, %v499_v15  ;;  %v2694_v26 = vpack.c.bf16 %v500_v16, %v500_v16  ;;  %v438_v45 = vmul.f32 %v2769_v37, %v3133_v1  ;;  %v2802_v2 = vld [vmem:[%s3113_s6 + $0x60] sm:$0xff]  }
  0x31   : > { %317 = vst.msk [vmem:[#allocation2 + $0xa8] sm:$0xf] %vm274_vm0, %v3046_v3  ;;  %318 = vst.msk [vmem:[#allocation2 + $0xac] sm:$0xf] %vm274_vm0, %v3046_v3  ;;  %v2695_v29 = vpack.c.bf16 %v501_v17, %v501_v17  ;;  %v2696_v30 = vpack.c.bf16 %v502_v18, %v502_v18  ;;  %v439_v46 = vmul.f32 %v2770_v38, %v3133_v1  ;;  %v2804_v8 = vld [vmem:[%s3113_s6 + $0x70] sm:$0xff]   ;;  %v2805_v9 = vld [vmem:[%s3113_s6 + $0x78] sm:$0xff]   ;;  %v2777_v15 = vunpack.c.l.bf16 %v2802_v2 }
  0x32   : > { %319 = vst.msk [vmem:[#allocation2 + $0xb0] sm:$0xf] %vm274_vm0, %v3046_v3  ;;  %320 = vst.msk [vmem:[#allocation2 + $0xb4] sm:$0xf] %vm274_vm0, %v3046_v3  ;;  %v2697_v31 = vpack.c.bf16 %v503_v19, %v503_v19  ;;  %v477_v53 = vadd.f32 %v3291_v10, %v438_v45  ;;  %v2778_v16 = vunpack.c.h.bf16 %v2802_v2  ;;  %v2785_v19 = vunpack.c.l.bf16 %v2804_v8 }
  0x33   : > { %321 = vst.msk [vmem:[#allocation2 + $0xb8] sm:$0xf] %vm274_vm0, %v3046_v3  ;;  %322 = vst.msk [vmem:[#allocation2 + $0xbc] sm:$0xf] %vm274_vm0, %v3046_v3  ;;  %v478_v54 = vadd.f32 %v3291_v10, %v439_v46  ;;  %v2789_v21 = vunpack.c.l.bf16 %v2805_v9  ;;  %v2790_v22 = vunpack.c.h.bf16 %v2805_v9 }
  0x34   : > { %323 = vst.msk [vmem:[#allocation2 + $0xc0] sm:$0xf] %vm274_vm0, %v3046_v3  ;;  %324 = vst.msk [vmem:[#allocation2 + $0xc4] sm:$0xf] %vm274_vm0, %v3046_v3  ;;  %v509_v61 = vmax.f32 %v477_v53, 0.0  ;;  %v446_v27 = vmul.f32 %v2785_v19, %v3133_v1 }
  0x35   : > { %325 = vst.msk [vmem:[#allocation2 + $0xc8] sm:$0xf] %vm274_vm0, %v3046_v3  ;;  %326 = vst.msk [vmem:[#allocation2 + $0xcc] sm:$0xf] %vm274_vm0, %v3046_v3  ;;  %v510_v62 = vmax.f32 %v478_v54, 0.0 }
  0x36   : > { %327 = vst.msk [vmem:[#allocation2 + $0xd0] sm:$0xf] %vm274_vm0, %v3046_v3  ;;  %328 = vst.msk [vmem:[#allocation2 + $0xd4] sm:$0xf] %vm274_vm0, %v3046_v3  ;;  %v2703_v11 = vpack.c.bf16 %v509_v61, %v509_v61 }
  0x37   : > { %329 = vst.msk [vmem:[#allocation2 + $0xd8] sm:$0xf] %vm274_vm0, %v3046_v3  ;;  %330 = vst.msk [vmem:[#allocation2 + $0xdc] sm:$0xf] %vm274_vm0, %v3046_v3 }
  0x38   : > { %331 = vst.msk [vmem:[#allocation2 + $0xe0] sm:$0xf] %vm274_vm0, %v3046_v3  ;;  %332 = vst.msk [vmem:[#allocation2 + $0xe4] sm:$0xf] %vm274_vm0, %v3046_v3 }
  0x39   : > { %333 = vst.msk [vmem:[#allocation2 + $0xe8] sm:$0xf] %vm274_vm0, %v3046_v3  ;;  %334 = vst.msk [vmem:[#allocation2 + $0xec] sm:$0xf] %vm274_vm0, %v3046_v3 }
  0x3a   : > { %335 = vst.msk [vmem:[#allocation2 + $0xf0] sm:$0xf] %vm274_vm0, %v3046_v3  ;;  %336 = vst.msk [vmem:[#allocation2 + $0xf4] sm:$0xf] %vm274_vm0, %v3046_v3 }
  0x3b   : > { %337 = vst.msk [vmem:[#allocation2 + $0xf8] sm:$0xf] %vm274_vm0, %v3046_v3  ;;  %338 = vst.msk [vmem:[#allocation2 + $0xfc] sm:$0xf] %vm274_vm0, %v3046_v3 }
  0x3c   : > { %339 = vst.msk [vmem:[#allocation2 + $0x100] sm:$0xf] %vm274_vm0, %v3046_v3  ;;  %340 = vst.msk [vmem:[#allocation2 + $0x104] sm:$0xf] %vm274_vm0, %v3046_v3 }
  0x3d   : > { %341 = vst.msk [vmem:[#allocation2 + $0x108] sm:$0xf] %vm274_vm0, %v3046_v3  ;;  %342 = vst.msk [vmem:[#allocation2 + $0x10c] sm:$0xf] %vm274_vm0, %v3046_v3 }
  0x3e   : > { %343 = vst.msk [vmem:[#allocation2 + $0x110] sm:$0xf] %vm274_vm0, %v3046_v3  ;;  %344 = vst.msk [vmem:[#allocation2 + $0x114] sm:$0xf] %vm274_vm0, %v3046_v3 }
  0x3f   : > { %345 = vst.msk [vmem:[#allocation2 + $0x118] sm:$0xf] %vm274_vm0, %v3046_v3  ;;  %346 = vst.msk [vmem:[#allocation2 + $0x11c] sm:$0xf] %vm274_vm0, %v3046_v3  ;;  %v433_v3 = vmul.f32 %v2758_v58, %v3133_v1 }
  0x40   : > { %650 = vst.msk [vmem:[#allocation2 + $0x14] sm:$0xf] %vm274_vm0, %v2683_v41  ;;  %651 = vst.msk [vmem:[#allocation2 + $0x18] sm:$0xf] %vm274_vm0, %v2684_v42  ;;  %v434_v41 = vmul.f32 %v2761_v33, %v3133_v1  ;;  %v435_v42 = vmul.f32 %v2762_v34, %v3133_v1 }
  0x41   : > { %652 = vst.msk [vmem:[#allocation2 + $0x24] sm:$0xf] %vm274_vm0, %v2685_v43  ;;  %653 = vst.msk [vmem:[#allocation2 + $0x28] sm:$0xf] %vm274_vm0, %v2686_v44  ;;  %v472_v12 = vadd.f32 %v3291_v10, %v433_v3  ;;  %v436_v43 = vmul.f32 %v2765_v35, %v3133_v1  ;;  %v437_v44 = vmul.f32 %v2766_v36, %v3133_v1  ;;  %v2803_v3 = vld [vmem:[%s3113_s6 + $0x68] sm:$0xff]  }
  0x42   : > { %654 = vst.msk [vmem:[#allocation2 + $0x34] sm:$0xf] %vm274_vm0, %v2687_v47  ;;  %655 = vst.msk [vmem:[#allocation2 + $0x38] sm:$0xf] %vm274_vm0, %v2688_v48  ;;  %v440_v47 = vmul.f32 %v2773_v39, %v3133_v1  ;;  %v441_v48 = vmul.f32 %v2774_v40, %v3133_v1  ;;  %v2781_v17 = vunpack.c.l.bf16 %v2803_v3  ;;  %v2782_v18 = vunpack.c.h.bf16 %v2803_v3 }
  0x43   : > { %656 = vst.msk [vmem:[#allocation2 + $0x44] sm:$0xf] %vm274_vm0, %v2689_v49  ;;  %657 = vst.msk [vmem:[#allocation2 + $0x48] sm:$0xf] %vm274_vm0, %v2690_v50  ;;  %v504_v20 = vmax.f32 %v472_v12, 0.0  ;;  %v473_v49 = vadd.f32 %v3291_v10, %v434_v41  ;;  %v474_v50 = vadd.f32 %v3291_v10, %v435_v42  ;;  %v475_v51 = vadd.f32 %v3291_v10, %v436_v43 }
  0x44   : > { %658 = vst.msk [vmem:[#allocation2 + $0x54] sm:$0xf] %vm274_vm0, %v2691_v23  ;;  %659 = vst.msk [vmem:[#allocation2 + $0x58] sm:$0xf] %vm274_vm0, %v2692_v24  ;;  %v476_v52 = vadd.f32 %v3291_v10, %v437_v44  ;;  %v479_v55 = vadd.f32 %v3291_v10, %v440_v47  ;;  %v480_v56 = vadd.f32 %v3291_v10, %v441_v48 }
  0x45   : > { %v2698_v32 = vpack.c.bf16 %v504_v20, %v504_v20  ;;  %660 = vst.msk [vmem:[#allocation2 + $0x64] sm:$0xf] %vm274_vm0, %v2693_v25  ;;  %661 = vst.msk [vmem:[#allocation2 + $0x68] sm:$0xf] %vm274_vm0, %v2694_v26  ;;  %v505_v57 = vmax.f32 %v473_v49, 0.0  ;;  %v506_v58 = vmax.f32 %v474_v50, 0.0  ;;  %v2704_v12 = vpack.c.bf16 %v510_v62, %v510_v62 }
  0x46   : > { %662 = vst.msk [vmem:[#allocation2 + $0x74] sm:$0xf] %vm274_vm0, %v2695_v29  ;;  %663 = vst.msk [vmem:[#allocation2 + $0x78] sm:$0xf] %vm274_vm0, %v2696_v30  ;;  %v507_v59 = vmax.f32 %v475_v51, 0.0  ;;  %v508_v60 = vmax.f32 %v476_v52, 0.0  ;;  %v2786_v20 = vunpack.c.h.bf16 %v2804_v8  ;;  %v442_v23 = vmul.f32 %v2777_v15, %v3133_v1 }
  0x47   : > { %664 = vst.msk [vmem:[#allocation2 + $0x84] sm:$0xf] %vm274_vm0, %v2697_v31  ;;  %665 = vst.msk [vmem:[#allocation2 + $0x88] sm:$0xf] %vm274_vm0, %v2698_v32  ;;  %v511_v63 = vmax.f32 %v479_v55, 0.0  ;;  %v512_v0 = vmax.f32 %v480_v56, 0.0  ;;  %v2699_v4 = vpack.c.bf16 %v505_v57, %v505_v57  ;;  %v2700_v5 = vpack.c.bf16 %v506_v58, %v506_v58 }
  0x48   : > { %v2701_v6 = vpack.c.bf16 %v507_v59, %v507_v59  ;;  %v2702_v7 = vpack.c.bf16 %v508_v60, %v508_v60  ;;  %670 = vst.msk [vmem:[#allocation2 + $0xb4] sm:$0xf] %vm274_vm0, %v2703_v11  ;;  %671 = vst.msk [vmem:[#allocation2 + $0xb8] sm:$0xf] %vm274_vm0, %v2704_v12  ;;  %v443_v24 = vmul.f32 %v2778_v16, %v3133_v1 }
  0x49   : > { %v2705_v13 = vpack.c.bf16 %v511_v63, %v511_v63  ;;  %v2706_v14 = vpack.c.bf16 %v512_v0, %v512_v0  ;;  %666 = vst.msk [vmem:[#allocation2 + $0x94] sm:$0xf] %vm274_vm0, %v2699_v4  ;;  %667 = vst.msk [vmem:[#allocation2 + $0x98] sm:$0xf] %vm274_vm0, %v2700_v5  ;;  %v444_v25 = vmul.f32 %v2781_v17, %v3133_v1 }
  0x4a   : > { %668 = vst.msk [vmem:[#allocation2 + $0xa4] sm:$0xf] %vm274_vm0, %v2701_v6  ;;  %669 = vst.msk [vmem:[#allocation2 + $0xa8] sm:$0xf] %vm274_vm0, %v2702_v7  ;;  %v445_v26 = vmul.f32 %v2782_v18, %v3133_v1  ;;  %v447_v28 = vmul.f32 %v2786_v20, %v3133_v1  ;;  %v448_v29 = vmul.f32 %v2789_v21, %v3133_v1 }
  0x4b   : > { %672 = vst.msk [vmem:[#allocation2 + $0xc4] sm:$0xf] %vm274_vm0, %v2705_v13  ;;  %673 = vst.msk [vmem:[#allocation2 + $0xc8] sm:$0xf] %vm274_vm0, %v2706_v14  ;;  %v449_v30 = vmul.f32 %v2790_v22, %v3133_v1  ;;  %v481_v31 = vadd.f32 %v3291_v10, %v442_v23  ;;  %v482_v32 = vadd.f32 %v3291_v10, %v443_v24 }
  0x4c   : > { %v483_v33 = vadd.f32 %v3291_v10, %v444_v25  ;;  %v484_v34 = vadd.f32 %v3291_v10, %v445_v26  ;;  %v485_v35 = vadd.f32 %v3291_v10, %v446_v27  ;;  %v486_v36 = vadd.f32 %v3291_v10, %v447_v28 }
  0x4d   : > { %v487_v37 = vadd.f32 %v3291_v10, %v448_v29  ;;  %v488_v38 = vadd.f32 %v3291_v10, %v449_v30  ;;  %v513_v39 = vmax.f32 %v481_v31, 0.0  ;;  %v514_v40 = vmax.f32 %v482_v32, 0.0 }
  0x4e   : > { %v515_v41 = vmax.f32 %v483_v33, 0.0  ;;  %v516_v1 = vmax.f32 %v484_v34, 0.0  ;;  %v517_v42 = vmax.f32 %v485_v35, 0.0  ;;  %v518_v43 = vmax.f32 %v486_v36, 0.0 }
  0x4f   : > { %v519_v44 = vmax.f32 %v487_v37, 0.0  ;;  %v520_v45 = vmax.f32 %v488_v38, 0.0  ;;  %v2707_v46 = vpack.c.bf16 %v513_v39, %v513_v39  ;;  %v2708_v47 = vpack.c.bf16 %v514_v40, %v514_v40 }
  0x50   : > { %v2709_v48 = vpack.c.bf16 %v515_v41, %v515_v41  ;;  %v2710_v49 = vpack.c.bf16 %v516_v1, %v516_v1  ;;  %v2711_v50 = vpack.c.bf16 %v517_v42, %v517_v42  ;;  %v2712_v51 = vpack.c.bf16 %v518_v43, %v518_v43 }
  0x51   : > { %v2713_v52 = vpack.c.bf16 %v519_v44, %v519_v44  ;;  %v2714_v53 = vpack.c.bf16 %v520_v45, %v520_v45  ;;  %674 = vst.msk [vmem:[#allocation2 + $0xd4] sm:$0xf] %vm274_vm0, %v2707_v46  ;;  %675 = vst.msk [vmem:[#allocation2 + $0xd8] sm:$0xf] %vm274_vm0, %v2708_v47 }
  0x52   : > { %676 = vst.msk [vmem:[#allocation2 + $0xe4] sm:$0xf] %vm274_vm0, %v2709_v48  ;;  %677 = vst.msk [vmem:[#allocation2 + $0xe8] sm:$0xf] %vm274_vm0, %v2710_v49 }
  0x53   : > { %678 = vst.msk [vmem:[#allocation2 + $0xf4] sm:$0xf] %vm274_vm0, %v2711_v50  ;;  %679 = vst.msk [vmem:[#allocation2 + $0xf8] sm:$0xf] %vm274_vm0, %v2712_v51 }
  0x54   : > { %680 = vst.msk [vmem:[#allocation2 + $0x104] sm:$0xf] %vm274_vm0, %v2713_v52  ;;  %681 = vst.msk [vmem:[#allocation2 + $0x108] sm:$0xf] %vm274_vm0, %v2714_v53 }
  0x55 PF: > { %v2532_v10 = vld [vmem:[%s3837_s3 + $0x2] sm:$0x3]  ;;  %vm825_vm1 = vcmask 1041408   ;;  %s2716_s29 = sshll.u32 %s3028_s18, 6  ;;  %vm812_vm2 = vcmask 31744   ;;  %vm2283_vm9 = vcmask 27648  }
  0x56   : > { %2944 = vmatprep.subr.msk.bf16.mxu1 %vm825_vm1, %v2532_v10  ;;  %2943 = vmatprep.subr.msk.bf16.mxu0 %vm825_vm1, %v2532_v10  ;;  %v827_v54 = vsel %vm825_vm1, %v2532_v10, 0  ;;  %v789_v55 = vld [vmem:[%s3837_s3] sm:$0x3]  ;;  %v2549_v56 = vld [vmem:[%s3837_s3 + $0x4] sm:$0x3]  ;;  %s3414_s9 = scalar_lea.vmem [#allocation2], %s2716_s29 }
  0x57   : > { %2942 = vmatpush3.bf16.msra.mxu1 %v827_v54  ;;  %2852 = vmatpush3.bf16.msra.mxu0 %v827_v54  ;;  %v2576_v36 = vld [vmem:[%s3837_s3 + $0x6] sm:$0x3]  ;;  %v919_v44 = vsel %vm825_vm1, %v789_v55, 0  ;;  %v1124_v45 = vsel %vm825_vm1, %v2549_v56, 0  ;;  %vm698_vm3 = vsmask.f32 256 }
  0x58   : > { %2945 = vmatprep.subr.msk.bf16.mxu1 %vm825_vm1, %v789_v55  ;;  %2946 = vmatprep.subr.msk.bf16.mxu0 %vm825_vm1, %v2549_v56  ;;  %vm699_vm4 = vsmask.f32 4368  ;;  %vm998_vm5 = vsmask.f32 3328  ;;  %vm999_vm7 = vsmask.f32 7440 }
  0x59   : > { %vm3464_vm6 = vmor %vm698_vm3, %vm699_vm4  ;;  %vm2313_vm10 = vcmask 24576  }
  0x5a   : > { %vm3488_vm8 = vmor %vm998_vm5, %vm999_vm7 }
  0x5b   : > { %v687_v57 = vld [vmem:[%s3414_s9 + $0x4] sm:$0xf]  ;;  %v688_v58 = vld [vmem:[%s3414_s9 + $0x8] sm:$0xf]  ;;  %v690_v6 = vld [vmem:[%s3414_s9 + $0x14] sm:$0xf] }
  0x5c   : > { %v693_v59 = vld [vmem:[%s3414_s9 + $0x24] sm:$0xf]  ;;  %v707_v60 = vshrl.u32 %v687_v57, 16  ;;  %v710_v61 = vshll.u32 %v687_v57, 16  ;;  %v716_v62 = vshrl.u32 %v688_v58, 16  ;;  %v719_v63 = vshll.u32 %v688_v58, 16 }
  0x5d   : > { %v694_v0 = vld [vmem:[%s3414_s9 + $0x28] sm:$0xf]  ;;  %v2533_v2 = vcombine.low %v687_v57, %v688_v58  ;;  %v751_v3 = vshrl.u32 %v693_v59, 16  ;;  %v754_v4 = vshll.u32 %v693_v59, 16  ;;  %v691_v12 = vld [vmem:[%s3414_s9 + $0x18] sm:$0xf] }
  0x5e   : > { %v760_v5 = vshrl.u32 %v694_v0, 16  ;;  %v709_v7 = vrot.slane %v707_v60, 7  ;;  %v718_v8 = vrot.slane %v716_v62, 7  ;;  %v763_v9 = vshll.u32 %v694_v0, 16  ;;  %v3437_v25 = vld [vmem:[%s3414_s9 + $0x34] sm:$0xf] }
  0x5f   : > { %v2535_v11 = vcombine.low %v693_v59, %v694_v0  ;;  %2853 = vmatprep.mubr.msk.bf16.mxu0 %vm812_vm2, %v2533_v2  ;;  %v3425_v13 = vrot.slane %v751_v3, 7  ;;  %v729_v15 = vshrl.u32 %v690_v6, 16  ;;  %v732_v16 = vshll.u32 %v690_v6, 16  ;;  %v3440_v26 = vld [vmem:[%s3414_s9 + $0x38] sm:$0xf] }
  0x60   : > { %v762_v14 = vrot.slane %v760_v5, 7  ;;  %v3427_v17 = vor.u32 %v710_v61, %v709_v7  ;;  %v714_v18 = vrot.slane %v709_v7, 4  ;;  %v721_v19 = vor.u32 %v719_v63, %v718_v8  ;;  %v686_v31 = vld [vmem:[%s3414_s9] sm:$0x8]  ;;  %v689_v37 = vld [vmem:[%s3414_s9 + $0x10] sm:$0x8] }
  0x61   : > { %2857 = vmatprep.mubr.msk.bf16.mxu1 %vm812_vm2, %v2535_v11  ;;  %v738_v20 = vshrl.u32 %v691_v12, 16  ;;  %v3431_v21 = vor.u32 %v754_v4, %v3425_v13  ;;  %v758_v22 = vrot.slane %v3425_v13, 4  ;;  %v731_v24 = vrot.slane %v729_v15, 7  ;;  %v986_v1 = vld [vmem:[%s3414_s9 + $0x4] sm:$0xf] }
  0x62   : > { %v3434_v23 = vor.u32 %v763_v9, %v762_v14  ;;  %v741_v28 = vshll.u32 %v691_v12, 16  ;;  %v2534_v29 = vcombine.low %v690_v6, %v691_v12  ;;  %v773_v30 = vshrl.u32 %v3437_v25, 16  ;;  %v987_v42 = vld [vmem:[%s3414_s9 + $0x8] sm:$0xf]  ;;  %v988_v46 = vld [vmem:[%s3414_s9 + $0xc] sm:$0x1] }
  0x63   : > { %v740_v27 = vrot.slane %v738_v20, 7  ;;  %v734_v32 = vor.u32 %v732_v16, %v731_v24  ;;  %v736_v33 = vrot.slane %v731_v24, 4  ;;  %v776_v34 = vshll.u32 %v3437_v25, 16  ;;  %v989_v56 = vld [vmem:[%s3414_s9 + $0x14] sm:$0xf] }
  0x64   : > { %v782_v35 = vshrl.u32 %v3440_v26, 16  ;;  %2854 = vmatmul.mubr.msk.bf16.vlgmr.msra.gmra.mxu0 %vm812_vm2, %v2534_v29  ;;  %v3451_v39 = vrot.slane %v773_v30, 7  ;;  %v785_v40 = vshll.u32 %v3440_v26, 16  ;;  %v2536_v41 = vcombine.low %v3437_v25, %v3440_v26  ;;  %v990_v57 = vld [vmem:[%s3414_s9 + $0x18] sm:$0xf] }
  0x65   : > { %v743_v38 = vor.u32 %v741_v28, %v740_v27  ;;  %2872 = vmatpush3.bf16.msra.mxu0 %v1124_v45  ;;  %v702_v47 = vshrl.u32 %v686_v31, 16  ;;  %v724_v48 = vshrl.u32 %v689_v37, 16  ;;  %v1002_v50 = vshrl.u32 %v986_v1, 16  ;;  %v2585_v62 = vld [vmem:[%s3837_s3 + $0x8] sm:$0x3] }
  0x66   : > { %v3458_v43 = vrot.slane %v782_v35, 7  ;;  %2858 = vmatmul.mubr.msk.bf16.vlgmr.msra.gmra.mxu1 %vm812_vm2, %v2536_v41  ;;  %v1005_v51 = vshll.u32 %v986_v1, 16  ;;  %v1011_v52 = vshll.u32 %v987_v42, 16  ;;  %v722_v10 = vsel %vm3464_vm6, %v714_v18, %v721_v19  ;;  %v991_v4 = vld [vmem:[%s3414_s9 + $0x1c] sm:$0x1]  ;;  %2948 = vmatprep.subr.msk.bf16.mxu0 %vm825_vm1, %v2585_v62 }
  0x67   : > { %2862 = vmatpush3.bf16.msra.mxu1 %v919_v44  ;;  %v2528_v53 = vrot.slane %v702_v47, 11  ;;  %v2529_v54 = vrot.slane %v724_v48, 11  ;;  %v744_v55 = vsel %vm3464_vm6, %v736_v33, %v743_v38  ;;  %v1004_v58 = vrot.slane %v1002_v50, 4  ;;  %v692_v16 = vld [vmem:[%s3414_s9 + $0x20] sm:$0x8] }
  0x68   : > { %2947 = vmatprep.subr.msk.bf16.mxu1 %vm825_vm1, %v2576_v36  ;;  %v1007_v59 = vrot.slane %v1005_v51, 5  ;;  %v1013_v60 = vrot.slane %v1011_v52, 5  ;;  %v1015_v61 = vshrl.u32 %v987_v42, 16  ;;  %v1021_v2 = vshll.u32 %v988_v46, 16  ;;  %v695_v24 = vld [vmem:[%s3414_s9 + $0x30] sm:$0x8] }
  0x69   : > { %v713_v63 = vsel %vm3464_vm6, %v2528_v53, %v3427_v17  ;;  %v735_v0 = vsel %vm3464_vm6, %v2529_v54, %v734_v32  ;;  %v1330_v3 = vsel %vm825_vm1, %v2576_v36, 0  ;;  %v1026_v12 = vshrl.u32 %v989_v56, 16  ;;  %v992_v1 = vld [vmem:[%s3414_s9 + $0x24] sm:$0xf]  ;;  %v993_v47 = vld [vmem:[%s3414_s9 + $0x28] sm:$0xf] }
  0x6a   : > { %v2541_v5 = vcombine.low %v713_v63, %v722_v10  ;;  %v2542_v6 = vcombine.low %v735_v0, %v744_v55  ;;  %v1008_v7 = vor.u32 %v1007_v59, %v1004_v58  ;;  %v1017_v8 = vrot.slane %v1015_v61, 4  ;;  %v3515_v13 = vld [vmem:[%s3837_s3 + $0xa] sm:$0x3]  ;;  %v994_v54 = vld [vmem:[%s3414_s9 + $0x2c] sm:$0x1] }
  0x6b   : > { %v1023_v11 = vrot.slane %v1021_v2, 5  ;;  %v1029_v14 = vshll.u32 %v989_v56, 16  ;;  %v1035_v15 = vshll.u32 %v990_v57, 16  ;;  %v1039_v19 = vshrl.u32 %v990_v57, 16  ;;  %v995_v26 = vld [vmem:[%s3414_s9 + $0x34] sm:$0xf] }
  0x6c   : > { %2863 = vmatprep.mubr.msk.bf16.mxu1 %vm812_vm2, %v2541_v5  ;;  %v1009_v17 = vrot.slane %v1008_v7, 4  ;;  %v1018_v18 = vor.u32 %v1017_v8, %v1013_v60  ;;  %v1045_v20 = vshll.u32 %v991_v4, 16  ;;  %v1028_v27 = vrot.slane %v1026_v12, 4  ;;  %v996_v58 = vld [vmem:[%s3414_s9 + $0x38] sm:$0xf] }
  0x6d   : > { %v1031_v28 = vrot.slane %v1029_v14, 5  ;;  %v1037_v29 = vrot.slane %v1035_v15, 5  ;;  %v1440_v30 = vsel %vm825_vm1, %v2585_v62, 0  ;;  %v1041_v33 = vrot.slane %v1039_v19, 4  ;;  %v997_v59 = vld [vmem:[%s3414_s9 + $0x3c] sm:$0x1] }
  0x6e   : > { %2864 = vmatmul.mubr.msk.bf16.vlgmr.msra.gmra.mxu1 %vm812_vm2, %v2542_v6  ;;  %v1014_v31 = vsel %vm3488_vm8, %v1009_v17, %v1013_v60  ;;  %v1019_v32 = vrot.slane %v1018_v18, 4  ;;  %v1047_v35 = vrot.slane %v1045_v20, 5  ;;  %v746_v37 = vshrl.u32 %v692_v16, 16  ;;  %v2560_v63 = vld [vmem:[%s3414_s9 + $0x10] sm:$0x8] }
  0x6f   : > { %2882 = vmatpush3.bf16.msra.mxu1 %v1330_v3  ;;  %v1032_v36 = vor.u32 %v1031_v28, %v1028_v27  ;;  %v766_v38 = vsel %vm3464_vm6, %v758_v22, %v3434_v23  ;;  %v768_v41 = vshrl.u32 %v695_v24, 16  ;;  %v1042_v44 = vor.u32 %v1041_v33, %v1037_v29  ;;  %v3543_v5 = vld [vmem:[%s3837_s3 + $0xc] sm:$0x3]  ;;  %v2561_v12 = vld [vmem:[%s3414_s9 + $0x14] sm:$0xf] }
  0x70   : > { %v1024_v42 = vsel %vm3488_vm8, %v1019_v32, %v1023_v11  ;;  %v778_v45 = vor.u32 %v776_v34, %v3451_v39  ;;  %v780_v46 = vrot.slane %v3451_v39, 4  ;;  %v2530_v48 = vrot.slane %v746_v37, 11  ;;  %2949 = vmatprep.subr.msk.bf16.mxu1 %vm825_vm1, %v3515_v13  ;;  %v2562_v18 = vld [vmem:[%s3414_s9 + $0x18] sm:$0xf]  ;;  %v2563_v33 = vld [vmem:[%s3414_s9 + $0x20] sm:$0x8] }
  0x71   : > { %v2550_v22 = vcombine.low %v1014_v31, %v1024_v42  ;;  %v1033_v23 = vrot.slane %v1032_v36, 4  ;;  %v2531_v50 = vrot.slane %v768_v41, 11  ;;  %v1043_v25 = vrot.slane %v1042_v44, 4 }
  0x72   : > { %v787_v34 = vor.u32 %v785_v40, %v3458_v43  ;;  %v1050_v39 = vshrl.u32 %v992_v1, 16  ;;  %v1053_v51 = vshll.u32 %v992_v1, 16  ;;  %v757_v53 = vsel %vm3464_vm6, %v2530_v48, %v3431_v21 }
  0x73   : > { %2873 = vmatprep.mubr.msk.bf16.mxu0 %vm812_vm2, %v2550_v22  ;;  %v1038_v52 = vsel %vm3488_vm8, %v1033_v23, %v1037_v29  ;;  %v779_v10 = vsel %vm3464_vm6, %v2531_v50, %v778_v45  ;;  %v1059_v55 = vshll.u32 %v993_v47, 16  ;;  %v1048_v40 = vsel %vm3488_vm8, %v1043_v25, %v1047_v35 }
  0x74   : > { %v2543_v43 = vcombine.low %v757_v53, %v766_v38  ;;  %v788_v56 = vsel %vm3464_vm6, %v780_v46, %v787_v34  ;;  %v1052_v57 = vrot.slane %v1050_v39, 4  ;;  %v2551_v60 = vcombine.low %v1038_v52, %v1048_v40  ;;  %v2565_v34 = vld [vmem:[%s3414_s9 + $0x28] sm:$0xf]  ;;  %v2566_v40 = vld [vmem:[%s3414_s9 + $0x30] sm:$0x8] }
  0x75   : > { %v2544_v61 = vcombine.low %v779_v10, %v788_v56  ;;  %v1055_v21 = vrot.slane %v1053_v51, 5  ;;  %v1061_v62 = vrot.slane %v1059_v55, 5  ;;  %v1063_v0 = vshrl.u32 %v993_v47, 16  ;;  %v3555_v47 = vld [vmem:[%s3414_s9 + $0x24] sm:$0xf] }
  0x76   : > { %2867 = vmatprep.mubr.msk.bf16.mxu1 %vm812_vm2, %v2543_v43  ;;  %v1069_v2 = vshll.u32 %v994_v54, 16  ;;  %v1074_v3 = vshrl.u32 %v995_v26, 16  ;;  %v1077_v4 = vshll.u32 %v995_v26, 16  ;;  %2874 = vmatmul.mubr.msk.bf16.vlgmr.msra.gmra.mxu0 %vm812_vm2, %v2551_v60  ;;  %v1083_v7 = vshll.u32 %v996_v58, 16  ;;  %v3570_v43 = vld [vmem:[%s3414_s9 + $0x34] sm:$0xf] }
  0x77   : > { %2868 = vmatmul.mubr.msk.bf16.gmra.mxu1 %vm812_vm2, %v2544_v61  ;;  %v1056_v6 = vor.u32 %v1055_v21, %v1052_v57  ;;  %v1087_v8 = vshrl.u32 %v996_v58, 16  ;;  %v1093_v11 = vshll.u32 %v997_v59, 16  ;;  %2892 = vmatpush3.bf16.msra.mxu0 %v1440_v30  ;;  %v1065_v14 = vrot.slane %v1063_v0, 4  ;;  %v2568_v60 = vld [vmem:[%s3414_s9 + $0x38] sm:$0xf] }
  0x78   : > { %v1071_v15 = vrot.slane %v1069_v2, 5  ;;  %v1076_v16 = vrot.slane %v1074_v3, 4  ;;  %v1079_v17 = vrot.slane %v1077_v4, 5  ;;  %v1085_v20 = vrot.slane %v1083_v7, 5  ;;  %2950 = vmatprep.subr.msk.bf16.mxu0 %vm825_vm1, %v3543_v5  ;;  %v2569_v0 = vld [vmem:[%s3414_s9 + $0x40] sm:$0x8] }
  0x79   : > { %v1057_v19 = vrot.slane %v1056_v6, 4  ;;  %v1089_v24 = vrot.slane %v1087_v8, 4  ;;  %v1095_v27 = vrot.slane %v1093_v11, 5  ;;  %v1066_v28 = vor.u32 %v1065_v14, %v1061_v62  ;;  %v3586_v7 = vld [vmem:[%s3414_s9 + $0x44] sm:$0xf] }
  0x7a   : > { %v1080_v29 = vor.u32 %v1079_v17, %v1076_v16  ;;  %v1216_v31 = vshrl.u32 %v2560_v63, 16  ;;  %v1221_v32 = vshrl.u32 %v2561_v12, 16  ;;  %v1224_v36 = vshll.u32 %v2561_v12, 16 }
  0x7b   : > { %v1062_v30 = vsel %vm3488_vm8, %v1057_v19, %v1061_v62  ;;  %v1090_v35 = vor.u32 %v1089_v24, %v1085_v20  ;;  %v1230_v37 = vshrl.u32 %v2562_v18, 16  ;;  %v1067_v38 = vrot.slane %v1066_v28, 4  ;;  %v3593_v19 = vld [vmem:[%s3414_s9 + $0x48] sm:$0xf] }
  0x7c   : > { %v1081_v41 = vrot.slane %v1080_v29, 4  ;;  %v2572_v1 = vrot.slane %v1216_v31, 11  ;;  %v1223_v42 = vrot.slane %v1221_v32, 7  ;;  %v1233_v46 = vshll.u32 %v2562_v18, 16 }
  0x7d   : > { %v1091_v44 = vrot.slane %v1090_v35, 4  ;;  %v1232_v45 = vrot.slane %v1230_v37, 7  ;;  %v1238_v22 = vshrl.u32 %v2563_v33, 16  ;;  %v1072_v23 = vsel %vm3488_vm8, %v1067_v38, %v1071_v15  ;;  %v2595_v37 = vld [vmem:[%s3414_s9 + $0x18] sm:$0xf] }
  0x7e   : > { %v1086_v48 = vsel %vm3488_vm8, %v1081_v41, %v1085_v20  ;;  %v1226_v50 = vor.u32 %v1224_v36, %v1223_v42  ;;  %v1228_v25 = vrot.slane %v1223_v42, 4  ;;  %v2552_v39 = vcombine.low %v1062_v30, %v1072_v23  ;;  %v2594_v36 = vld [vmem:[%s3414_s9 + $0x14] sm:$0xf] }
  0x7f   : > { %v1096_v51 = vsel %vm3488_vm8, %v1091_v44, %v1095_v27  ;;  %v1235_v52 = vor.u32 %v1233_v46, %v1232_v45  ;;  %v2573_v53 = vrot.slane %v1238_v22, 11  ;;  %v1243_v55 = vshrl.u32 %v3555_v47, 16  ;;  %v2596_v44 = vld [vmem:[%s3414_s9 + $0x1c] sm:$0x1]  ;;  %v3610_v45 = vld [vmem:[%s3837_s3 + $0xe] sm:$0x3] }
  0x80   : > { %v2553_v10 = vcombine.low %v1086_v48, %v1096_v51  ;;  %v1227_v54 = vsel %vm3464_vm6, %v2572_v1, %v1226_v50  ;;  %v1246_v26 = vshll.u32 %v3555_v47, 16  ;;  %2877 = vmatprep.mubr.msk.bf16.mxu0 %vm812_vm2, %v2552_v39  ;;  %v1252_v57 = vshrl.u32 %v2565_v34, 16  ;;  %v2597_v48 = vld [vmem:[%s3414_s9 + $0x24] sm:$0xf]  ;;  %v3622_v50 = vld [vmem:[%s3837_s3 + $0x10] sm:$0x3] }
  0x81   : > { %v1236_v56 = vsel %vm3464_vm6, %v1228_v25, %v1235_v52  ;;  %v1255_v58 = vshll.u32 %v2565_v34, 16  ;;  %v2586_v59 = vcombine.low %v2561_v12, %v2562_v18  ;;  %v1245_v21 = vrot.slane %v1243_v55, 7  ;;  %v2598_v55 = vld [vmem:[%s3414_s9 + $0x28] sm:$0xf] }
  0x82   : > { %2878 = vmatmul.mubr.msk.bf16.gmra.mxu0 %vm812_vm2, %v2553_v10  ;;  %v2577_v61 = vcombine.low %v1227_v54, %v1236_v56  ;;  %v1650_v62 = vsel %vm825_vm1, %v3515_v13, 0  ;;  %v2587_v63 = vcombine.low %v3555_v47, %v2565_v34  ;;  %v1254_v2 = vrot.slane %v1252_v57, 7  ;;  %v2599_v56 = vld [vmem:[%s3414_s9 + $0x2c] sm:$0x1] }
  0x83   : > { %2893 = vmatprep.mubr.msk.bf16.mxu0 %vm812_vm2, %v2586_v59  ;;  %v1856_v3 = vsel %vm825_vm1, %v3543_v5, 0  ;;  %v1260_v4 = vshrl.u32 %v2566_v40, 16  ;;  %v1265_v6 = vshrl.u32 %v3570_v43, 16  ;;  %v1248_v8 = vor.u32 %v1246_v26, %v1245_v21 }
  0x84   : > { %2883 = vmatprep.mubr.msk.bf16.mxu1 %vm812_vm2, %v2577_v61  ;;  %v1250_v11 = vrot.slane %v1245_v21, 4  ;;  %v1268_v13 = vshll.u32 %v3570_v43, 16  ;;  %v1274_v12 = vshrl.u32 %v2568_v60, 16  ;;  %v1257_v14 = vor.u32 %v1255_v58, %v1254_v2  ;;  %v2617_v21 = vld [vmem:[%s3414_s9 + $0x20] sm:$0x8] }
  0x85   : > { %v2574_v15 = vrot.slane %v1260_v4, 11  ;;  %v1267_v16 = vrot.slane %v1265_v6, 7  ;;  %v1277_v17 = vshll.u32 %v2568_v60, 16  ;;  %v1249_v5 = vsel %vm3464_vm6, %v2573_v53, %v1248_v8 }
  0x86   : > { %v1276_v18 = vrot.slane %v1274_v12, 7  ;;  %v1282_v20 = vshrl.u32 %v2569_v0, 16  ;;  %v1287_v24 = vshrl.u32 %v3586_v7, 16  ;;  %v1258_v27 = vsel %vm3464_vm6, %v1250_v11, %v1257_v14 }
  0x87   : > { %v1270_v28 = vor.u32 %v1268_v13, %v1267_v16  ;;  %v1272_v29 = vrot.slane %v1267_v16, 4  ;;  %v1290_v31 = vshll.u32 %v3586_v7, 16  ;;  %v2578_v32 = vcombine.low %v1249_v5, %v1258_v27  ;;  %v3643_v5 = vld [vmem:[%s3414_s9 + $0x28] sm:$0xf] }
  0x88   : > { %v1279_v33 = vor.u32 %v1277_v17, %v1276_v18  ;;  %v2575_v30 = vrot.slane %v1282_v20, 11  ;;  %v1289_v35 = vrot.slane %v1287_v24, 7  ;;  %v1296_v41 = vshrl.u32 %v3593_v19, 16 }
  0x89   : > { %v1271_v38 = vsel %vm3464_vm6, %v2574_v15, %v1270_v28  ;;  %v1299_v1 = vshll.u32 %v3593_v19, 16  ;;  %v2588_v42 = vcombine.low %v3570_v43, %v2568_v60  ;;  %2884 = vmatmul.mubr.msk.bf16.vlgmr.msra.gmra.mxu1 %vm812_vm2, %v2578_v32  ;;  %v2589_v23 = vcombine.low %v3586_v7, %v3593_v19 }
  0x8a   : > { %2894 = vmatmul.mubr.msk.bf16.vlgmr.msra.gmra.mxu0 %vm812_vm2, %v2587_v63  ;;  %v1280_v46 = vsel %vm3464_vm6, %v1272_v29, %v1279_v33  ;;  %v1292_v47 = vor.u32 %v1290_v31, %v1289_v35  ;;  %v1294_v22 = vrot.slane %v1289_v35, 4  ;;  %2902 = vmatpush3.bf16.msra.mxu1 %v1650_v62  ;;  %v1298_v34 = vrot.slane %v1296_v41, 7  ;;  %v2620_v33 = vld [vmem:[%s3414_s9 + $0x30] sm:$0x8]  ;;  %v3660_v41 = vld [vmem:[%s3414_s9 + $0x38] sm:$0xf] }
  0x8b   : > { %2912 = vmatpush3.bf16.msra.mxu0 %v1856_v3  ;;  %v2579_v25 = vcombine.low %v1271_v38, %v1280_v46  ;;  %v1528_v39 = vshrl.u32 %v2594_v36, 16  ;;  %v1531_v51 = vshll.u32 %v2594_v36, 16  ;;  %2897 = vmatprep.mubr.msk.bf16.mxu0 %vm812_vm2, %v2588_v42  ;;  %v1537_v53 = vshll.u32 %v2595_v37, 16  ;;  %v3638_v3 = vld [vmem:[%s3414_s9 + $0x24] sm:$0xf] }
  0x8c   : > { %v1293_v52 = vsel %vm3464_vm6, %v2575_v30, %v1292_v47  ;;  %v1541_v10 = vshrl.u32 %v2595_v37, 16  ;;  %v1547_v54 = vshll.u32 %v2596_v44, 16  ;;  %2951 = vmatprep.subr.msk.bf16.mxu1 %vm825_vm1, %v3610_v45  ;;  %v1301_v26 = vor.u32 %v1299_v1, %v1298_v34  ;;  %2952 = vmatprep.subr.msk.bf16.mxu0 %vm825_vm1, %v3622_v50  ;;  %v3653_v30 = vld [vmem:[%s3414_s9 + $0x34] sm:$0xf] }
  0x8d   : > { %2887 = vmatprep.mubr.msk.bf16.mxu1 %vm812_vm2, %v2579_v25  ;;  %v1530_v40 = vrot.slane %v1528_v39, 4  ;;  %v1533_v43 = vrot.slane %v1531_v51, 5  ;;  %v1552_v57 = vshrl.u32 %v2597_v48, 16  ;;  %v1539_v58 = vrot.slane %v1537_v53, 5  ;;  %v2600_v25 = vld [vmem:[%s3414_s9 + $0x34] sm:$0xf] }
  0x8e   : > { %v1543_v59 = vrot.slane %v1541_v10, 4  ;;  %v1549_v60 = vrot.slane %v1547_v54, 5  ;;  %v1555_v61 = vshll.u32 %v2597_v48, 16  ;;  %v1302_v62 = vsel %vm3464_vm6, %v1294_v22, %v1301_v26 }
  0x8f   : > { %v1534_v63 = vor.u32 %v1533_v43, %v1530_v40  ;;  %v1554_v0 = vrot.slane %v1552_v57, 4  ;;  %v1561_v2 = vshll.u32 %v2598_v55, 16  ;;  %v2580_v4 = vcombine.low %v1293_v52, %v1302_v62  ;;  %v2601_v52 = vld [vmem:[%s3414_s9 + $0x38] sm:$0xf]  ;;  %v2602_v43 = vld [vmem:[%s3414_s9 + $0x3c] sm:$0x1] }
  0x90   : > { %v1544_v6 = vor.u32 %v1543_v59, %v1539_v58  ;;  %v1557_v7 = vrot.slane %v1555_v61, 5  ;;  %v1565_v8 = vshrl.u32 %v2598_v55, 16  ;;  %v1571_v12 = vshll.u32 %v2599_v56, 16 }
  0x91   : > { %v1535_v11 = vrot.slane %v1534_v63, 4  ;;  %v1563_v13 = vrot.slane %v1561_v2, 5  ;;  %v1742_v14 = vshrl.u32 %v2617_v21, 16  ;;  %2888 = vmatmul.mubr.msk.bf16.gmra.mxu1 %vm812_vm2, %v2580_v4  ;;  %v1747_v18 = vshrl.u32 %v3638_v3, 16  ;;  %v2603_v21 = vld [vmem:[%s3414_s9 + $0x44] sm:$0xf] }
  0x92   : > { %2898 = vmatmul.mubr.msk.bf16.gmra.mxu0 %vm812_vm2, %v2589_v23  ;;  %v1545_v15 = vrot.slane %v1544_v6, 4  ;;  %v1558_v16 = vor.u32 %v1557_v7, %v1554_v0  ;;  %v1567_v17 = vrot.slane %v1565_v8, 4  ;;  %v1573_v20 = vrot.slane %v1571_v12, 5  ;;  %v2605_v12 = vld [vmem:[%s3414_s9 + $0x4c] sm:$0x1] }
  0x93   : > { %v1540_v19 = vsel %vm3488_vm8, %v1535_v11, %v1539_v58  ;;  %v2629_v24 = vrot.slane %v1742_v14, 11  ;;  %v1750_v27 = vshll.u32 %v3638_v3, 16  ;;  %v1749_v32 = vrot.slane %v1747_v18, 7 }
  0x94   : > { %v1550_v28 = vsel %vm3488_vm8, %v1545_v15, %v1549_v60  ;;  %v1559_v29 = vrot.slane %v1558_v16, 4  ;;  %v1568_v31 = vor.u32 %v1567_v17, %v1563_v13  ;;  %v1756_v36 = vshrl.u32 %v3643_v5, 16  ;;  %v2623_v16 = vld [vmem:[%s3414_s9 + $0x40] sm:$0x8] }
  0x95   : > { %v2607_v35 = vcombine.low %v1540_v19, %v1550_v28  ;;  %v1759_v37 = vshll.u32 %v3643_v5, 16  ;;  %v1966_v38 = vsel %vm825_vm1, %v3610_v45, 0  ;;  %v1752_v44 = vor.u32 %v1750_v27, %v1749_v32 }
  0x96   : > { %v1564_v1 = vsel %vm3488_vm8, %v1559_v29, %v1563_v13  ;;  %v1569_v42 = vrot.slane %v1568_v31, 4  ;;  %v1754_v46 = vrot.slane %v1749_v32, 4  ;;  %v1758_v47 = vrot.slane %v1756_v36, 7  ;;  %v3695_v36 = vld [vmem:[%s3414_s9 + $0x48] sm:$0xf] }
  0x97   : > { %2903 = vmatprep.mubr.msk.bf16.mxu1 %vm812_vm2, %v2607_v35  ;;  %v1764_v22 = vshrl.u32 %v2620_v33, 16  ;;  %v1769_v23 = vshrl.u32 %v3653_v30, 16  ;;  %v1772_v48 = vshll.u32 %v3653_v30, 16  ;;  %v1753_v34 = vsel %vm3464_vm6, %v2629_v24, %v1752_v44  ;;  %v3691_v24 = vld [vmem:[%s3414_s9 + $0x44] sm:$0xf] }
  0x98   : > { %v1574_v45 = vsel %vm3488_vm8, %v1569_v42, %v1573_v20  ;;  %v1778_v39 = vshrl.u32 %v3660_v41, 16  ;;  %v1781_v51 = vshll.u32 %v3660_v41, 16  ;;  %v1761_v10 = vor.u32 %v1759_v37, %v1758_v47  ;;  %v3702_v47 = vld [vmem:[%s3414_s9 + $0x54] sm:$0xf] }
  0x99   : > { %v2608_v53 = vcombine.low %v1564_v1, %v1574_v45  ;;  %v2630_v54 = vrot.slane %v1764_v22, 11  ;;  %v1771_v55 = vrot.slane %v1769_v23, 7  ;;  %v2176_v40 = vsel %vm825_vm1, %v3622_v50, 0  ;;  %v2604_v50 = vld [vmem:[%s3414_s9 + $0x48] sm:$0xf] }
  0x9a   : > { %v1780_v26 = vrot.slane %v1778_v39, 7  ;;  %v1576_v56 = vshrl.u32 %v2600_v25, 16  ;;  %v1579_v57 = vshll.u32 %v2600_v25, 16  ;;  %v1762_v58 = vsel %vm3464_vm6, %v1754_v46, %v1761_v10  ;;  %v2626_v46 = vld [vmem:[%s3414_s9 + $0x50] sm:$0x8] }
  0x9b   : > { %2904 = vmatmul.mubr.msk.bf16.vlgmr.msra.gmra.mxu1 %vm812_vm2, %v2608_v53  ;;  %v1774_v59 = vor.u32 %v1772_v48, %v1771_v55  ;;  %v1776_v60 = vrot.slane %v1771_v55, 4  ;;  %v1585_v61 = vshll.u32 %v2601_v52, 16  ;;  %v2634_v62 = vcombine.low %v1753_v34, %v1762_v58  ;;  %v3710_v10 = vld [vmem:[%s3414_s9 + $0x58] sm:$0xf] }
  0x9c   : > { %2922 = vmatpush3.bf16.msra.mxu1 %v1966_v38  ;;  %v1783_v63 = vor.u32 %v1781_v51, %v1780_v26  ;;  %v1578_v0 = vrot.slane %v1576_v56, 4  ;;  %v1581_v2 = vrot.slane %v1579_v57, 5  ;;  %v1589_v7 = vshrl.u32 %v2601_v52, 16 }
  0x9d   : > { %v1775_v4 = vsel %vm3464_vm6, %v2630_v54, %v1774_v59  ;;  %v1587_v6 = vrot.slane %v1585_v61, 5  ;;  %v1595_v8 = vshll.u32 %v2602_v43, 16  ;;  %2913 = vmatprep.mubr.msk.bf16.mxu0 %vm812_vm2, %v2634_v62  ;;  %v1600_v14 = vshrl.u32 %v2603_v21, 16 }
  0x9e   : > { %v1784_v11 = vsel %vm3464_vm6, %v1776_v60, %v1783_v63  ;;  %v1582_v13 = vor.u32 %v1581_v2, %v1578_v0  ;;  %v1603_v15 = vshll.u32 %v2603_v21, 16  ;;  %v1591_v18 = vrot.slane %v1589_v7, 4  ;;  %v2651_v0 = vld [vmem:[%s3414_s9 + $0x24] sm:$0xf]  ;;  %v2652_v2 = vld [vmem:[%s3414_s9 + $0x28] sm:$0xf] }
  0x9f   : > { %v2635_v17 = vcombine.low %v1775_v4, %v1784_v11  ;;  %v1597_v19 = vrot.slane %v1595_v8, 5  ;;  %v1609_v20 = vshll.u32 %v2604_v50, 16  ;;  %v1602_v28 = vrot.slane %v1600_v14, 4  ;;  %v2653_v14 = vld [vmem:[%s3414_s9 + $0x2c] sm:$0x1] }
  0xa0   : > { %v1583_v27 = vrot.slane %v1582_v13, 4  ;;  %v1605_v29 = vrot.slane %v1603_v15, 5  ;;  %v1613_v31 = vshrl.u32 %v2604_v50, 16  ;;  %v1592_v32 = vor.u32 %v1591_v18, %v1587_v6 }
  0xa1   : > { %2914 = vmatmul.mubr.msk.bf16.vlgmr.msra.gmra.mxu0 %vm812_vm2, %v2635_v17  ;;  %v1611_v33 = vrot.slane %v1609_v20, 5  ;;  %v1619_v35 = vshll.u32 %v2605_v12, 16  ;;  %v1786_v37 = vshrl.u32 %v2623_v16, 16  ;;  %v1791_v44 = vshrl.u32 %v3691_v24, 16 }
  0xa2   : > { %2932 = vmatpush3.bf16.msra.mxu0 %v2176_v40  ;;  %v1588_v38 = vsel %vm3488_vm8, %v1583_v27, %v1587_v6  ;;  %v1606_v1 = vor.u32 %v1605_v29, %v1602_v28  ;;  %v1615_v42 = vrot.slane %v1613_v31, 4  ;;  %v1593_v22 = vrot.slane %v1592_v32, 4 }
  0xa3   : > { %v1621_v23 = vrot.slane %v1619_v35, 5  ;;  %v2631_v48 = vrot.slane %v1786_v37, 11  ;;  %v1794_v25 = vshll.u32 %v3691_v24, 16  ;;  %v1793_v39 = vrot.slane %v1791_v44, 7  ;;  %v2656_v35 = vld [vmem:[%s3414_s9 + $0x3c] sm:$0x1] }
  0xa4   : > { %v1607_v45 = vrot.slane %v1606_v1, 4  ;;  %v1616_v34 = vor.u32 %v1615_v42, %v1611_v33  ;;  %v1800_v51 = vshrl.u32 %v3695_v36, 16  ;;  %v1598_v52 = vsel %vm3488_vm8, %v1593_v22, %v1597_v19  ;;  %v2654_v19 = vld [vmem:[%s3414_s9 + $0x34] sm:$0xf] }
  0xa5   : > { %v1803_v53 = vshll.u32 %v3695_v36, 16  ;;  %v1808_v54 = vshrl.u32 %v2626_v46, 16  ;;  %v1813_v55 = vshrl.u32 %v3702_v47, 16  ;;  %v2609_v26 = vcombine.low %v1588_v38, %v1598_v52  ;;  %v2658_v52 = vld [vmem:[%s3414_s9 + $0x48] sm:$0xf] }
  0xa6   : > { %v1612_v40 = vsel %vm3488_vm8, %v1607_v45, %v1611_v33  ;;  %v1617_v43 = vrot.slane %v1616_v34, 4  ;;  %v1796_v56 = vor.u32 %v1794_v25, %v1793_v39  ;;  %v1798_v57 = vrot.slane %v1793_v39, 4  ;;  %v2657_v45 = vld [vmem:[%s3414_s9 + $0x44] sm:$0xf] }
  0xa7   : > { %v1802_v58 = vrot.slane %v1800_v51, 7  ;;  %v2632_v59 = vrot.slane %v1808_v54, 11  ;;  %v1815_v60 = vrot.slane %v1813_v55, 7  ;;  %2907 = vmatprep.mubr.msk.bf16.mxu1 %vm812_vm2, %v2609_v26  ;;  %v1816_v62 = vshll.u32 %v3702_v47, 16 }
  0xa8   : > { %v1622_v61 = vsel %vm3488_vm8, %v1617_v43, %v1621_v23  ;;  %v1797_v21 = vsel %vm3464_vm6, %v2631_v48, %v1796_v56  ;;  %v1822_v63 = vshrl.u32 %v3710_v10, 16  ;;  %v1825_v7 = vshll.u32 %v3710_v10, 16  ;;  %v2659_v56 = vld [vmem:[%s3414_s9 + $0x4c] sm:$0x1] }
  0xa9   : > { %v2610_v50 = vcombine.low %v1612_v40, %v1622_v61  ;;  %v1805_v4 = vor.u32 %v1803_v53, %v1802_v58  ;;  %v1820_v6 = vrot.slane %v1815_v60, 4  ;;  %v1818_v8 = vor.u32 %v1816_v62, %v1815_v60 }
  0xaa   : > { %v1824_v11 = vrot.slane %v1822_v63, 7  ;;  %v2643_v13 = vcombine.low %v3638_v3, %v3643_v5  ;;  %v2644_v12 = vcombine.low %v3653_v30, %v3660_v41  ;;  %v2054_v16 = vshrl.u32 %v2651_v0, 16  ;;  %v2655_v5 = vld [vmem:[%s3414_s9 + $0x38] sm:$0xf] }
  0xab   : > { %2908 = vmatmul.mubr.msk.bf16.gmra.mxu1 %vm812_vm2, %v2610_v50  ;;  %v1806_v15 = vsel %vm3464_vm6, %v1798_v57, %v1805_v4  ;;  %v2057_v17 = vshll.u32 %v2651_v0, 16  ;;  %v2063_v18 = vshll.u32 %v2652_v2, 16  ;;  %v1819_v27 = vsel %vm3464_vm6, %v2632_v59, %v1818_v8  ;;  %v2661_v63 = vld [vmem:[%s3414_s9 + $0x58] sm:$0xf]  ;;  %v2662_v8 = vld [vmem:[%s3414_s9 + $0x5c] sm:$0x1] }
  0xac   : > { %v2636_v20 = vcombine.low %v1797_v21, %v1806_v15  ;;  %v1827_v28 = vor.u32 %v1825_v7, %v1824_v11  ;;  %2923 = vmatprep.mubr.msk.bf16.mxu1 %vm812_vm2, %v2643_v13  ;;  %v2067_v3 = vshrl.u32 %v2652_v2, 16  ;;  %v2056_v30 = vrot.slane %v2054_v16, 4 }
  0xad   : > { %v2059_v41 = vrot.slane %v2057_v17, 5  ;;  %v2065_v29 = vrot.slane %v2063_v18, 5  ;;  %v2073_v31 = vshll.u32 %v2653_v14, 16  ;;  %v2078_v37 = vshrl.u32 %v2654_v19, 16 }
  0xae   : > { %2917 = vmatprep.mubr.msk.bf16.mxu0 %vm812_vm2, %v2636_v20  ;;  %v1828_v32 = vsel %vm3464_vm6, %v1820_v6, %v1827_v28  ;;  %v2069_v33 = vrot.slane %v2067_v3, 4  ;;  %v2081_v38 = vshll.u32 %v2654_v19, 16  ;;  %v2087_v46 = vshll.u32 %v2655_v5, 16 }
  0xaf   : > { %v2637_v1 = vcombine.low %v1819_v27, %v1828_v32  ;;  %v2060_v42 = vor.u32 %v2059_v41, %v2056_v30  ;;  %v2075_v44 = vrot.slane %v2073_v31, 5  ;;  %v2080_v23 = vrot.slane %v2078_v37, 4 }
  0xb0   : > { %v2070_v22 = vor.u32 %v2069_v33, %v2065_v29  ;;  %v2083_v48 = vrot.slane %v2081_v38, 5  ;;  %v2091_v25 = vshrl.u32 %v2655_v5, 16  ;;  %v2089_v49 = vrot.slane %v2087_v46, 5 }
  0xb1   : > { %2918 = vmatmul.mubr.msk.bf16.gmra.mxu0 %vm812_vm2, %v2637_v1  ;;  %v2061_v34 = vrot.slane %v2060_v42, 4  ;;  %v2097_v39 = vshll.u32 %v2656_v35, 16  ;;  %v2645_v51 = vcombine.low %v3691_v24, %v3695_v36  ;;  %v2646_v26 = vcombine.low %v3702_v47, %v3710_v10  ;;  %v2660_v47 = vld [vmem:[%s3414_s9 + $0x54] sm:$0xf] }
  0xb2   : > { %v2071_v53 = vrot.slane %v2070_v22, 4  ;;  %v2084_v54 = vor.u32 %v2083_v48, %v2080_v23  ;;  %v2093_v55 = vrot.slane %v2091_v25, 4  ;;  %v2102_v57 = vshrl.u32 %v2657_v45, 16 }
  0xb3   : > { %2924 = vmatmul.mubr.msk.bf16.vlgmr.msra.gmra.mxu1 %vm812_vm2, %v2644_v12  ;;  %v2066_v40 = vsel %vm3488_vm8, %v2061_v34, %v2065_v29  ;;  %v2099_v43 = vrot.slane %v2097_v39, 5  ;;  %v2105_v58 = vshll.u32 %v2657_v45, 16  ;;  %v2111_v60 = vshll.u32 %v2658_v52, 16 }
  0xb4   : > { %v2076_v24 = vsel %vm3488_vm8, %v2071_v53, %v2075_v44  ;;  %v2085_v36 = vrot.slane %v2084_v54, 4  ;;  %v2094_v59 = vor.u32 %v2093_v55, %v2089_v49  ;;  %2927 = vmatprep.mubr.msk.bf16.mxu1 %vm812_vm2, %v2645_v51  ;;  %v2104_v61 = vrot.slane %v2102_v57, 4 }
  0xb5   : > { %v2664_v10 = vcombine.low %v2066_v40, %v2076_v24  ;;  %v2107_v21 = vrot.slane %v2105_v58, 5  ;;  %v2115_v62 = vshrl.u32 %v2658_v52, 16  ;;  %v2113_v50 = vrot.slane %v2111_v60, 5 }
  0xb6   : > { %v2090_v0 = vsel %vm3488_vm8, %v2085_v36, %v2089_v49  ;;  %v2095_v2 = vrot.slane %v2094_v59, 4  ;;  %v2121_v4 = vshll.u32 %v2659_v56, 16  ;;  %v2126_v11 = vshrl.u32 %v2660_v47, 16 }
  0xb7   : > { %2933 = vmatprep.mubr.msk.bf16.mxu0 %vm812_vm2, %v2664_v10  ;;  %v2108_v6 = vor.u32 %v2107_v21, %v2104_v61  ;;  %v2117_v7 = vrot.slane %v2115_v62, 4  ;;  %v2129_v13 = vshll.u32 %v2660_v47, 16  ;;  %v2135_v15 = vshll.u32 %v2661_v63, 16 }
  0xb8   : > { %v2100_v12 = vsel %vm3488_vm8, %v2095_v2, %v2099_v43  ;;  %v2123_v14 = vrot.slane %v2121_v4, 5  ;;  %v2139_v16 = vshrl.u32 %v2661_v63, 16  ;;  %v2128_v20 = vrot.slane %v2126_v11, 4 }
  0xb9   : > { %v2665_v17 = vcombine.low %v2090_v0, %v2100_v12  ;;  %v2109_v18 = vrot.slane %v2108_v6, 4  ;;  %v2118_v19 = vor.u32 %v2117_v7, %v2113_v50  ;;  %v2131_v27 = vrot.slane %v2129_v13, 5 }
  0xba   : > { %v2137_v28 = vrot.slane %v2135_v15, 5  ;;  %v2141_v3 = vrot.slane %v2139_v16, 4  ;;  %v2145_v5 = vshll.u32 %v2662_v8, 16 }
  0xbb   : > { %2934 = vmatmul.mubr.msk.bf16.vlgmr.msra.gmra.mxu0 %vm812_vm2, %v2665_v17  ;;  %2928 = vmatmul.mubr.msk.bf16.gmra.mxu1 %vm812_vm2, %v2646_v26  ;;  %v2114_v30 = vsel %vm3488_vm8, %v2109_v18, %v2113_v50  ;;  %v2119_v41 = vrot.slane %v2118_v19, 4  ;;  %v2132_v29 = vor.u32 %v2131_v27, %v2128_v20 }
  0xbc   : > { %v2142_v31 = vor.u32 %v2141_v3, %v2137_v28  ;;  %v2147_v32 = vrot.slane %v2145_v5, 5 }
  0xbd   : > { %v2124_v33 = vsel %vm3488_vm8, %v2119_v41, %v2123_v14  ;;  %v2133_v37 = vrot.slane %v2132_v29, 4 }
  0xbe   : > { %v2666_v35 = vcombine.low %v2114_v30, %v2124_v33  ;;  %v2143_v38 = vrot.slane %v2142_v31, 4 }
  0xbf   : > { %v2138_v1 = vsel %vm3488_vm8, %v2133_v37, %v2137_v28 }
  0xc0   : > { %2937 = vmatprep.mubr.msk.bf16.mxu0 %vm812_vm2, %v2666_v35  ;;  %v2148_v42 = vsel %vm3488_vm8, %v2143_v38, %v2147_v32 }
  0xc1   : > { %v2667_v44 = vcombine.low %v2138_v1, %v2148_v42 }
  0xc3   : > { %2938 = vmatmul.mubr.msk.bf16.gmra.mxu0 %vm812_vm2, %v2667_v44 }
 0x124   : > { %v2855_v22 = vpop.f32.mrf.mxu0 }
 0x126   : > { %v2859_v46 = vpop.f32.mrf.mxu1  ;;  %v863_v25 = vpop.f32.mrf.mxu0 }
 0x128   : > { %v879_v23 = vpop.f32.mrf.mxu1  ;;  %v2856_v49 = vpop.f32.mrf.mxu0 }
 0x12a   : > { %v2860_v48 = vpop.f32.mrf.mxu1  ;;  %v866_v52 = vpop.f32.mrf.mxu0 }
 0x12c   : > { %v3776_v45 = vpop.f32.mrf.mxu1 }
 0x12e   : > { %v2865_v34 = vpop.f32.mrf.mxu1 }
 0x12f   : > { %v964_v18 = vadd.f32 %v2865_v34, %v2855_v22 }
 0x130   : > { %v955_v39 = vpop.f32.mrf.mxu1 }
 0x131   : > { %v956_v20 = vadd.f32 %v955_v39, %v863_v25 }
 0x132   : > { %v2866_v51 = vpop.f32.mrf.mxu1 }
 0x133   : > { %v967_v3 = vadd.f32 %v2866_v51, %v2856_v49 }
 0x134   : > { %v958_v53 = vpop.f32.mrf.mxu1 }
 0x135   : > { %v959_v41 = vadd.f32 %v958_v53, %v866_v52 }
 0x136   : > { %v2875_v54 = vpop.f32.mrf.mxu0 }
 0x137   : > { %v2869_v9 = vpop.f32.mrf.mxu1  ;;  %v1193_v28 = vadd.f32 %v2875_v54, %v964_v18 }
 0x138   : > { %v1160_v55 = vpop.f32.mrf.mxu0  ;;  %v980_v33 = vadd.f32 %v2869_v9, %v2859_v46 }
 0x139   : > { %v971_v43 = vpop.f32.mrf.mxu1  ;;  %v1191_v30 = vadd.f32 %v1160_v55, %v956_v20 }
 0x13a   : > { %v2876_v26 = vpop.f32.mrf.mxu0  ;;  %v972_v44 = vadd.f32 %v971_v43, %v879_v23 }
 0x13b   : > { %v2870_v57 = vpop.f32.mrf.mxu1  ;;  %v1194_v37 = vadd.f32 %v2876_v26, %v967_v3 }
 0x13c   : > { %v1163_v40 = vpop.f32.mrf.mxu0 }
 0x13d   : > { %v974_v36 = vpop.f32.mrf.mxu1  ;;  %v1192_v1 = vadd.f32 %v1163_v40, %v959_v41 }
 0x13e   : > { %v975_v9 = vadd.f32 %v974_v36, %v3776_v45 }
 0x142   : > { %v2879_v56 = vpop.f32.mrf.mxu0 }
 0x143   : > { %v1197_v39 = vadd.f32 %v2879_v56, %v980_v33 }
 0x144   : > { %v1176_v58 = vpop.f32.mrf.mxu0 }
 0x145   : > { %v1195_v18 = vadd.f32 %v1176_v58, %v972_v44 }
 0x146   : > { %v2880_v24 = vpop.f32.mrf.mxu0 }
 0x148   : > { %v3778_v59 = vpop.f32.mrf.mxu0 }
 0x149   : > { %v2885_v60 = vpop.f32.mrf.mxu1 }
 0x14a   : > { %v2895_v47 = vpop.f32.mrf.mxu0  ;;  %v1399_v29 = vadd.f32 %v2885_v60, %v1193_v28 }
 0x14b   : > { %v1366_v10 = vpop.f32.mrf.mxu1 }
 0x14c   : > { %v1476_v61 = vpop.f32.mrf.mxu0  ;;  %v1397_v35 = vadd.f32 %v1366_v10, %v1191_v30  ;;  %v1509_v42 = vadd.f32 %v2895_v47, %v1399_v29 }
 0x14d   : > { %v2886_v21 = vpop.f32.mrf.mxu1 }
 0x14e   : > { %v2896_v62 = vpop.f32.mrf.mxu0  ;;  %v1400_v22 = vadd.f32 %v2886_v21, %v1194_v37  ;;  %v1507_v54 = vadd.f32 %v1476_v61, %v1397_v35 }
 0x14f   : > { %v1369_v63 = vpop.f32.mrf.mxu1 }
 0x150   : > { %v1479_v0 = vpop.f32.mrf.mxu0  ;;  %v1398_v49 = vadd.f32 %v1369_v63, %v1192_v1  ;;  %v1510_v26 = vadd.f32 %v2896_v62, %v1400_v22 }
 0x151   : > { %v2889_v2 = vpop.f32.mrf.mxu1 }
 0x152   : > { %v2899_v50 = vpop.f32.mrf.mxu0  ;;  %v1403_v53 = vadd.f32 %v2889_v2, %v1197_v39  ;;  %v1508_v23 = vadd.f32 %v1479_v0, %v1398_v49  ;;  %v1196_v2 = vadd.f32 %v3778_v59, %v975_v9 }
 0x153   : > { %v1382_v4 = vpop.f32.mrf.mxu1 }
 0x154   : > { %v1492_v6 = vpop.f32.mrf.mxu0  ;;  %v1401_v43 = vadd.f32 %v1382_v4, %v1195_v18  ;;  %v1513_v21 = vadd.f32 %v2899_v50, %v1403_v53 }
 0x155   : > { %v2890_v7 = vpop.f32.mrf.mxu1 }
 0x156   : > { %v2900_v11 = vpop.f32.mrf.mxu0  ;;  %v1511_v45 = vadd.f32 %v1492_v6, %v1401_v43 }
 0x157   : > { %v1385_v8 = vpop.f32.mrf.mxu1 }
 0x158   : > { %v3780_v12 = vpop.f32.mrf.mxu0  ;;  %v1402_v62 = vadd.f32 %v1385_v8, %v1196_v2 }
 0x159   : > { %3844 = vst [vmem:[#allocation3_spill] sm:$0xff] %v3780_v12  ;;  %v983_v12 = vadd.f32 %v2870_v57, %v2860_v48 }
 0x15b   : > { %v2905_v13 = vpop.f32.mrf.mxu1  ;;  %v1198_v46 = vadd.f32 %v2880_v24, %v983_v12 }
 0x15c   : > { %v1719_v51 = vadd.f32 %v2905_v13, %v1509_v42 }
 0x15d   : > { %v1686_v14 = vpop.f32.mrf.mxu1  ;;  %v1404_v57 = vadd.f32 %v2890_v7, %v1198_v46 }
 0x15e   : > { %v1717_v60 = vadd.f32 %v1686_v14, %v1507_v54 }
 0x15f   : > { %v2906_v16 = vpop.f32.mrf.mxu1  ;;  %v1514_v36 = vadd.f32 %v2900_v11, %v1404_v57 }
 0x160   : > { %v1720_v10 = vadd.f32 %v2906_v16, %v1510_v26  ;;  %v3845_v6 = vld [vmem:[#allocation3_spill] sm:$0xff] }
 0x161   : > { %v2915_v15 = vpop.f32.mrf.mxu0  ;;  %v1689_v19 = vpop.f32.mrf.mxu1  ;;  %v1512_v11 = vadd.f32 %v3845_v6, %v1402_v62 }
 0x162   : > { %v1925_v48 = vadd.f32 %v2915_v15, %v1719_v51  ;;  %v1718_v13 = vadd.f32 %v1689_v19, %v1508_v23 }
 0x163   : > { %v1892_v17 = vpop.f32.mrf.mxu0 }
 0x164   : > { %v1923_v63 = vadd.f32 %v1892_v17, %v1717_v60 }
 0x165   : > { %v2916_v27 = vpop.f32.mrf.mxu0 }
 0x166   : > { %v1926_v14 = vadd.f32 %v2916_v27, %v1720_v10 }
 0x167   : > { %v1895_v31 = vpop.f32.mrf.mxu0 }
 0x168   : > { %v1924_v7 = vadd.f32 %v1895_v31, %v1718_v13 }
 0x16b   : > { %v2909_v5 = vpop.f32.mrf.mxu1 }
 0x16c   : > { %v1723_v24 = vadd.f32 %v2909_v5, %v1513_v21 }
 0x16d   : > { %v1702_v32 = vpop.f32.mrf.mxu1 }
 0x16e   : > { %v1721_v16 = vadd.f32 %v1702_v32, %v1511_v45 }
 0x16f   : > { %v2910_v38 = vpop.f32.mrf.mxu1 }
 0x170   : > { %v1724_v28 = vadd.f32 %v2910_v38, %v1514_v36 }
 0x171   : > { %v2919_v34 = vpop.f32.mrf.mxu0  ;;  %v1705_v25 = vpop.f32.mrf.mxu1 }
 0x172   : > { %v1929_v3 = vadd.f32 %v2919_v34, %v1723_v24  ;;  %v1722_v33 = vadd.f32 %v1705_v25, %v1512_v11 }
 0x173   : > { %v1908_v55 = vpop.f32.mrf.mxu0  ;;  %v2925_v52 = vpop.f32.mrf.mxu1 }
 0x174   : > { %v2035_v20 = vadd.f32 %v2925_v52, %v1925_v48  ;;  %v1927_v31 = vadd.f32 %v1908_v55, %v1721_v16 }
 0x175   : > { %v2920_v40 = vpop.f32.mrf.mxu0  ;;  %v2002_v47 = vpop.f32.mrf.mxu1 }
 0x176   : > { %v2033_v12 = vadd.f32 %v2002_v47, %v1923_v63  ;;  %v1930_v32 = vadd.f32 %v2920_v40, %v1724_v28 }
 0x177   : > { %v1911_v56 = vpop.f32.mrf.mxu0  ;;  %v2926_v61 = vpop.f32.mrf.mxu1 }
 0x178   : > { %v2036_v17 = vadd.f32 %v2926_v61, %v1926_v14  ;;  %v1928_v53 = vadd.f32 %v1911_v56, %v1722_v33 }
 0x179   : > { %v2005_v58 = vpop.f32.mrf.mxu1 }
 0x17a   : > { %v2034_v30 = vadd.f32 %v2005_v58, %v1924_v7 }
 0x17b   : > { %v2935_v0 = vpop.f32.mrf.mxu0  ;;  %v2929_v4 = vpop.f32.mrf.mxu1 }
 0x17c   : > { %v2245_v15 = vadd.f32 %v2935_v0, %v2035_v20  ;;  %v2039_v41 = vadd.f32 %v2929_v4, %v1929_v3 }
 0x17d   : > { %v2212_v50 = vpop.f32.mrf.mxu0  ;;  %v2018_v19 = vpop.f32.mrf.mxu1 }
 0x17e   : > { %v2721_v59 = vpack.c.bf16 %v2245_v15, %v2245_v15  ;;  %v2243_v5 = vadd.f32 %v2212_v50, %v2033_v12  ;;  %v2317_v38 = vmul.f32 %v2245_v15, %v2245_v15  ;;  %v2037_v39 = vadd.f32 %v2018_v19, %v1927_v31 }
 0x17f   : > { %v2936_v8 = vpop.f32.mrf.mxu0  ;;  %v2930_v29 = vpop.f32.mrf.mxu1  ;;  %v2295_v60 = vsel %vm812_vm2, %v2245_v15, 0.0 }
 0x180   : > { %2286 = vst.msk [vmem:[%s3119_s12 + $0x8] sm:$0xf] %vm2283_vm9, %v2721_v59  ;;  %v2719_v27 = vpack.c.bf16 %v2243_v5, %v2243_v5  ;;  %v2246_v35 = vadd.f32 %v2936_v8, %v2036_v17  ;;  %v2315_v1 = vmul.f32 %v2243_v5, %v2243_v5  ;;  %v2292_v44 = vsel %vm812_vm2, %v2243_v5, 0.0 }
 0x181   : > { %v2215_v37 = vpop.f32.mrf.mxu0  ;;  %v2040_v54 = vadd.f32 %v2930_v29, %v1930_v32  ;;  %v2021_v52 = vpop.f32.mrf.mxu1  ;;  %v2326_v56 = vsel %vm812_vm2, %v2317_v38, 0.0 }
 0x182   : > { %2284 = vst.msk [vmem:[%s3119_s12] sm:$0xf] %vm2283_vm9, %v2719_v27  ;;  %v2244_v42 = vadd.f32 %v2215_v37, %v2034_v30  ;;  %v2722_v22 = vpack.c.bf16 %v2246_v35, %v2246_v35  ;;  %v2323_v9 = vsel %vm812_vm2, %v2315_v1, 0.0  ;;  %v2318_v26 = vmul.f32 %v2246_v35, %v2246_v35 }
 0x183   : > { %v2939_v34 = vpop.f32.mrf.mxu0  ;;  %v2038_v10 = vadd.f32 %v2021_v52, %v1928_v53  ;;  %v2297_v61 = vsel %vm812_vm2, %v2246_v35, 0.0 }
 0x184   : > { %v2720_v49 = vpack.c.bf16 %v2244_v42, %v2244_v42  ;;  %v2293_v51 = vsel %vm812_vm2, %v2244_v42, 0.0  ;;  %v2316_v55 = vmul.f32 %v2244_v42, %v2244_v42  ;;  %v2249_v25 = vadd.f32 %v2939_v34, %v2039_v41  ;;  %2287 = vst.msk [vmem:[%s3119_s12 + $0xc] sm:$0xf] %vm2283_vm9, %v2722_v22 }
 0x185   : > { %v2294_v18 = vadd.f32 %v2293_v51, %v2292_v44  ;;  %v2228_v46 = vpop.f32.mrf.mxu0  ;;  %v2328_v58 = vsel %vm812_vm2, %v2318_v26, 0.0 }
 0x186   : > { %2285 = vst.msk [vmem:[%s3119_s12 + $0x4] sm:$0xf] %vm2283_vm9, %v2720_v49  ;;  %v2324_v40 = vsel %vm812_vm2, %v2316_v55, 0.0  ;;  %v2725_v47 = vpack.c.bf16 %v2249_v25, %v2249_v25  ;;  %v2247_v43 = vadd.f32 %v2228_v46, %v2037_v39  ;;  %v2321_v0 = vmul.f32 %v2249_v25, %v2249_v25 }
 0x187   : > { %v2296_v23 = vadd.f32 %v2295_v60, %v2294_v18  ;;  %v2325_v48 = vadd.f32 %v2324_v40, %v2323_v9  ;;  %v2940_v57 = vpop.f32.mrf.mxu0  ;;  %v2303_v17 = vsel %vm812_vm2, %v2249_v25, 0.0 }
 0x188   : > { %2290 = vst.msk [vmem:[%s3119_s12 + $0x18] sm:$0xf] %vm2283_vm9, %v2725_v47  ;;  %v2250_v21 = vadd.f32 %v2940_v57, %v2040_v54  ;;  %v2723_v13 = vpack.c.bf16 %v2247_v43, %v2247_v43  ;;  %v2299_v24 = vsel %vm812_vm2, %v2247_v43, 0.0  ;;  %v2319_v12 = vmul.f32 %v2247_v43, %v2247_v43 }
 0x189   : > { %v2327_v63 = vadd.f32 %v2326_v56, %v2325_v48  ;;  %v2298_v20 = vadd.f32 %v2297_v61, %v2296_v23  ;;  %v2231_v2 = vpop.f32.mrf.mxu0  ;;  %v2334_v30 = vsel %vm812_vm2, %v2321_v0, 0.0 }
 0x18a   : > { %v2726_v45 = vpack.c.bf16 %v2250_v21, %v2250_v21  ;;  %2288 = vst.msk [vmem:[%s3119_s12 + $0x10] sm:$0xf] %vm2283_vm9, %v2723_v13  ;;  %v2248_v14 = vadd.f32 %v2231_v2, %v2038_v10  ;;  %v2330_v4 = vsel %vm812_vm2, %v2319_v12, 0.0  ;;  %v2322_v19 = vmul.f32 %v2250_v21, %v2250_v21 }
 0x18b   : > { %v2300_v36 = vadd.f32 %v2299_v24, %v2298_v20  ;;  %v2329_v62 = vadd.f32 %v2328_v58, %v2327_v63  ;;  %v2305_v6 = vsel %vm812_vm2, %v2250_v21, 0.0 }
 0x18c   : > { %2291 = vst.msk [vmem:[%s3119_s12 + $0x1c] sm:$0xf] %vm2283_vm9, %v2726_v45  ;;  %v2724_v15 = vpack.c.bf16 %v2248_v14, %v2248_v14  ;;  %v2301_v16 = vsel %vm812_vm2, %v2248_v14, 0.0  ;;  %v2320_v28 = vmul.f32 %v2248_v14, %v2248_v14  ;;  %v2336_v27 = vsel %vm812_vm2, %v2322_v19, 0.0 }
 0x18d   : > { %v2331_v7 = vadd.f32 %v2330_v4, %v2329_v62  ;;  %v2302_v50 = vadd.f32 %v2301_v16, %v2300_v36 }
 0x18e   : > { %2289 = vst.msk [vmem:[%s3119_s12 + $0x14] sm:$0xf] %vm2283_vm9, %v2724_v15  ;;  %v2332_v3 = vsel %vm812_vm2, %v2320_v28, 0.0 }
 0x18f   : > { %v2304_v59 = vadd.f32 %v2303_v17, %v2302_v50  ;;  %v2333_v5 = vadd.f32 %v2332_v3, %v2331_v7 }
 0x191   : > { %v2306_v11 = vadd.f32 %v2305_v6, %v2304_v59  ;;  %v2335_v8 = vadd.f32 %v2334_v30, %v2333_v5 }
 0x193   : > { %v2307_v41 = vrot.slane %v2306_v11, 4  ;;  %v2337_v29 = vadd.f32 %v2336_v27, %v2335_v8 }
 0x195   : > { %v2308_v31 = vadd.f32 %v2307_v41, %v2306_v11  ;;  %v2338_v32 = vrot.slane %v2337_v29, 4 }
 0x197   : > { %v2309_v33 = vrot.slane %v2308_v31, 2  ;;  %v2339_v35 = vadd.f32 %v2338_v32, %v2337_v29 }
 0x199   : > { %v2310_v37 = vadd.f32 %v2309_v33, %v2308_v31  ;;  %v2340_v38 = vrot.slane %v2339_v35, 2 }
 0x19b   : > { %v2311_v1 = vrot.slane %v2310_v37, 1  ;;  %v2341_v42 = vadd.f32 %v2340_v38, %v2339_v35 }
 0x19d   : > { %v2312_v44 = vadd.f32 %v2311_v1, %v2310_v37  ;;  %v2342_v22 = vrot.slane %v2341_v42, 1 }
 0x19f   : > { %2314 = vst.msk [vmem:[%s3124_s16] sm:$0x1] %vm2313_vm10, %v2312_v44  ;;  %v2343_v34 = vadd.f32 %v2342_v22, %v2341_v42 }
 0x1a1   : > { %2344 = vst.msk [vmem:[%s3124_s16 + $0x1] sm:$0x1] %vm2313_vm10, %v2343_v34 }
 0x1a2 PF: > { %s16_s22 = sadd.s32 1, %s3044_s22   ;;  %s3846_s18 = smov %s3036_s20 }
 0x1a3   : > { %p13_p9 = scmp.ge.s32.totalorder %s16_s22, 10   ;;  %s3847_s19 = smov %s3040_s21 }
 0x1a4   : > { %s3848_s20 = smov %s3851_s23  ;;  %s3849_s21 = smov %s3855_s24 }
 0x1a5   :  { %15 = sbr.rel (!%p13_p9) target bundleno = 3 (0x3), region = 94 }

// kernel: basic_block_forward.3
= control target key start
LH: loop header
LB: loop body
LE: loop exit
PB: predicated region body
PF: predicated region fallthrough
CT: control target
= control target key end

     0   :  { %s2790_s12 = smov 0   ;;  %s2792_s13 = smov 0   ;;  %s3493_s0 = inlined_call_operand.vmem [shape: f32[2,16,16,4], index: 0, kind: input, shape index: {}]   ;;  %s3494_s1 = inlined_call_operand.vmem [shape: bf16[9,4,4], index: 1, kind: input, shape index: {}]   ;;  %s3495_s2 = inlined_call_operand.vmem [shape: bf16[2,256,4], index: 2, kind: output, shape index: {0}]   ;;  %s3496_s3 = inlined_call_operand.vmem [shape: f32[8,2,4], index: 3, kind: output, shape index: {1}]  }
   0x1   :  { %s2794_s14 = smov 0   ;;  %s2796_s15 = smov 0  }
   0x2   :  { %s2798_s16 = smov 0  }
   0x3 LB: > { %s23_s17 = sadd.s32 1, %s2759_s14  ;;  %s26_s18 = sadd.s32 1, %s2763_s15  ;;  %s2767_s16 = sphi %s2798_s16, %s14_s16   ;;  %s2763_s15 = sphi %s2796_s15, %s3506_s15   ;;  %s2759_s14 = sphi %s2794_s14, %s3505_s14   ;;  %s2755_s13 = sphi %s2792_s13, %s3504_s13   ;;  %s2751_s12 = sphi %s2790_s12, %s3503_s12  }
   0x4   : > { %p24_p0 = scmp.ge.s32.totalorder %s23_s17, 4  ;;  %p2286_p1 = scmp.ge.s32.totalorder %s2767_s16, 1 }
   0x5   : > { %p158_p2 = scmp.lt.s32.totalorder %s2767_s16, 9 }
   0x6   : > { %s3508_s17 = smov (%p24_p0, %s23_s17), 0  ;;  %s3510_s18 = smov (!%p24_p0, %s26_s18), %s2763_s15 }
   0x7   : > { %p159_p3 = pnand %p2286_p1, %p158_p2  ;;  %p28_p4 = scmp.ge.s32.totalorder %s3510_s18, 2 }
   0x9   : > { %s3512_s18 = smov (%p28_p4, %s3510_s18), 0  ;;  %162 = sbr.rel (%p159_p3) target bundleno = 413 (0x19d), region = 28 }
   0xe   : > { %p192_p5 = scmp.lt.s32.totalorder %s2755_s13, 1  ;;  %s2289_s19 = sshll.u32 %s2751_s12, 3 }
   0xf   : > { %p200_p6 = scmp.lt.s32.totalorder %s2289_s19, 31  ;;  %s2292_s20 = sshll.u32 %s2755_s13, 2 }
  0x10   : > { %s3514_s13 = smov (!%p192_p5, %s2755_s13), 1  ;;  %s208_s28 = sadd.s32 %s2751_s12, %s2292_s20 }
  0x11   : > { %s3516_s19 = smov (!%p200_p6, %s2289_s19), 31  ;;  %s2484_s21 = sshll.u32 %s3514_s13, 8 }
  0x12   : > { %s2290_s22 = sshll.u32 %s3514_s13, 5  ;;  %s2826_s25 = scalar_lea.vmem %s3493_s0, %s2484_s21 }
  0x13   : > { %s203_s26 = sadd.s32 %s2290_s22, %s3516_s19  ;;  %p209_p7 = scmp.lt.s32.totalorder %s208_s28, 7 }
  0x14   : > { %s2291_s27 = sshll.u32 %s203_s26, 2  ;;  %p2294_p8 = scmp.ne.s32.totalorder %s2751_s12, 0 }
  0x15   : > { %s2832_s4 = scalar_lea.vmem %s3495_s2, %s2291_s27  ;;  %s3518_s28 = smov (!%p209_p7, %s208_s28), 7 }
  0x16   : > { %s2293_s5 = sshll.u32 %s3518_s28, 1  ;;  %219 = sbr.rel (%p2294_p8) target bundleno = 80 (0x50), region = 32 }
  0x17   : > { %s2837_s8 = scalar_lea.vmem %s3496_s3, %s2293_s5 }
  0x1b   : > { %vm220_vm0 = vcmask 27648   ;;  %v2841_v0 = vld [vmem:[%s2826_s25] sm:$0xff]  ;;  %v2844_v1 = vld [vmem:[%s2826_s25 + $0x8] sm:$0xff]  ;;  %v2847_v2 = vld [vmem:[%s2826_s25 + $0x10] sm:$0xff]  ;;  %v2769_v3 = vmov 0  }
  0x1c   : > { %226 = vst.msk [vmem:[#allocation2 + $0x14] sm:$0xf] %vm220_vm0, %v2769_v3  ;;  %221 = vst.msk [vmem:[#allocation2] sm:$0xf] %vm220_vm0, %v2769_v3  ;;  %v2485_v4 = vpack.c.bf16 %v2841_v0, %v2841_v0  ;;  %v2486_v5 = vpack.c.bf16 %v2844_v1, %v2844_v1  ;;  %v2487_v6 = vpack.c.bf16 %v2847_v2, %v2847_v2  ;;  %v296_v7 = vld [vmem:[%s2826_s25 + $0x18] sm:$0xff]  ;;  %v297_v8 = vld [vmem:[%s2826_s25 + $0x20] sm:$0xff] }
  0x1d   : > { %222 = vst.msk [vmem:[#allocation2 + $0x4] sm:$0xf] %vm220_vm0, %v2769_v3  ;;  %223 = vst.msk [vmem:[#allocation2 + $0x8] sm:$0xf] %vm220_vm0, %v2769_v3  ;;  %v298_v9 = vld [vmem:[%s2826_s25 + $0x28] sm:$0xff]  ;;  %v2488_v10 = vpack.c.bf16 %v296_v7, %v296_v7  ;;  %v2489_v11 = vpack.c.bf16 %v297_v8, %v297_v8  ;;  %v299_v13 = vld [vmem:[%s2826_s25 + $0x30] sm:$0xff] }
  0x1e   : > { %224 = vst.msk [vmem:[#allocation2 + $0xc] sm:$0xf] %vm220_vm0, %v2769_v3  ;;  %225 = vst.msk [vmem:[#allocation2 + $0x10] sm:$0xf] %vm220_vm0, %v2769_v3  ;;  %v2490_v12 = vpack.c.bf16 %v298_v9, %v298_v9  ;;  %v300_v14 = vld [vmem:[%s2826_s25 + $0x38] sm:$0xff]  ;;  %v301_v15 = vld [vmem:[%s2826_s25 + $0x40] sm:$0xff]  ;;  %v2491_v16 = vpack.c.bf16 %v299_v13, %v299_v13 }
  0x1f   : > { %227 = vst.msk [vmem:[#allocation2 + $0x18] sm:$0xf] %vm220_vm0, %v2769_v3  ;;  %228 = vst.msk [vmem:[#allocation2 + $0x1c] sm:$0xf] %vm220_vm0, %v2769_v3  ;;  %v2492_v17 = vpack.c.bf16 %v300_v14, %v300_v14  ;;  %v2493_v18 = vpack.c.bf16 %v301_v15, %v301_v15  ;;  %v302_v19 = vld [vmem:[%s2826_s25 + $0x48] sm:$0xff]  ;;  %v303_v20 = vld [vmem:[%s2826_s25 + $0x50] sm:$0xff] }
  0x20   : > { %229 = vst.msk [vmem:[#allocation2 + $0x20] sm:$0xf] %vm220_vm0, %v2769_v3  ;;  %230 = vst.msk [vmem:[#allocation2 + $0x24] sm:$0xf] %vm220_vm0, %v2769_v3  ;;  %v304_v21 = vld [vmem:[%s2826_s25 + $0x58] sm:$0xff]  ;;  %v2494_v22 = vpack.c.bf16 %v302_v19, %v302_v19  ;;  %v2495_v23 = vpack.c.bf16 %v303_v20, %v303_v20  ;;  %v305_v25 = vld [vmem:[%s2826_s25 + $0x60] sm:$0xff] }
  0x21   : > { %231 = vst.msk [vmem:[#allocation2 + $0x28] sm:$0xf] %vm220_vm0, %v2769_v3  ;;  %232 = vst.msk [vmem:[#allocation2 + $0x2c] sm:$0xf] %vm220_vm0, %v2769_v3  ;;  %v2496_v24 = vpack.c.bf16 %v304_v21, %v304_v21  ;;  %v306_v26 = vld [vmem:[%s2826_s25 + $0x68] sm:$0xff]  ;;  %v307_v27 = vld [vmem:[%s2826_s25 + $0x70] sm:$0xff]  ;;  %v2497_v28 = vpack.c.bf16 %v305_v25, %v305_v25 }
  0x22   : > { %233 = vst.msk [vmem:[#allocation2 + $0x30] sm:$0xf] %vm220_vm0, %v2769_v3  ;;  %234 = vst.msk [vmem:[#allocation2 + $0x34] sm:$0xf] %vm220_vm0, %v2769_v3  ;;  %v2498_v29 = vpack.c.bf16 %v306_v26, %v306_v26  ;;  %v2499_v30 = vpack.c.bf16 %v307_v27, %v307_v27  ;;  %v308_v31 = vld [vmem:[%s2826_s25 + $0x78] sm:$0xff]  ;;  %v309_v32 = vld [vmem:[%s2826_s25 + $0x80] sm:$0xff] }
  0x23   : > { %235 = vst.msk [vmem:[#allocation2 + $0x38] sm:$0xf] %vm220_vm0, %v2769_v3  ;;  %236 = vst.msk [vmem:[#allocation2 + $0x3c] sm:$0xf] %vm220_vm0, %v2769_v3  ;;  %v310_v33 = vld [vmem:[%s2826_s25 + $0x88] sm:$0xff]  ;;  %v2500_v34 = vpack.c.bf16 %v308_v31, %v308_v31  ;;  %v2501_v35 = vpack.c.bf16 %v309_v32, %v309_v32  ;;  %v311_v37 = vld [vmem:[%s2826_s25 + $0x90] sm:$0xff] }
  0x24   : > { %237 = vst.msk [vmem:[#allocation2 + $0x40] sm:$0xf] %vm220_vm0, %v2769_v3  ;;  %238 = vst.msk [vmem:[#allocation2 + $0x44] sm:$0xf] %vm220_vm0, %v2769_v3  ;;  %v2502_v36 = vpack.c.bf16 %v310_v33, %v310_v33  ;;  %v312_v38 = vld [vmem:[%s2826_s25 + $0x98] sm:$0xff]  ;;  %v313_v39 = vld [vmem:[%s2826_s25 + $0xa0] sm:$0xff]  ;;  %v2503_v40 = vpack.c.bf16 %v311_v37, %v311_v37 }
  0x25   : > { %239 = vst.msk [vmem:[#allocation2 + $0x48] sm:$0xf] %vm220_vm0, %v2769_v3  ;;  %240 = vst.msk [vmem:[#allocation2 + $0x4c] sm:$0xf] %vm220_vm0, %v2769_v3  ;;  %v2504_v41 = vpack.c.bf16 %v312_v38, %v312_v38  ;;  %v2505_v42 = vpack.c.bf16 %v313_v39, %v313_v39  ;;  %v314_v43 = vld [vmem:[%s2826_s25 + $0xa8] sm:$0xff]  ;;  %v315_v44 = vld [vmem:[%s2826_s25 + $0xb0] sm:$0xff] }
  0x26   : > { %241 = vst.msk [vmem:[#allocation2 + $0x50] sm:$0xf] %vm220_vm0, %v2769_v3  ;;  %242 = vst.msk [vmem:[#allocation2 + $0x54] sm:$0xf] %vm220_vm0, %v2769_v3  ;;  %v316_v45 = vld [vmem:[%s2826_s25 + $0xb8] sm:$0xff]  ;;  %v2506_v46 = vpack.c.bf16 %v314_v43, %v314_v43  ;;  %v2507_v47 = vpack.c.bf16 %v315_v44, %v315_v44  ;;  %v317_v49 = vld [vmem:[%s2826_s25 + $0xc0] sm:$0xff] }
  0x27   : > { %243 = vst.msk [vmem:[#allocation2 + $0x58] sm:$0xf] %vm220_vm0, %v2769_v3  ;;  %244 = vst.msk [vmem:[#allocation2 + $0x5c] sm:$0xf] %vm220_vm0, %v2769_v3  ;;  %v2508_v48 = vpack.c.bf16 %v316_v45, %v316_v45  ;;  %v318_v50 = vld [vmem:[%s2826_s25 + $0xc8] sm:$0xff]  ;;  %v319_v51 = vld [vmem:[%s2826_s25 + $0xd0] sm:$0xff]  ;;  %v2509_v52 = vpack.c.bf16 %v317_v49, %v317_v49 }
  0x28   : > { %245 = vst.msk [vmem:[#allocation2 + $0x60] sm:$0xf] %vm220_vm0, %v2769_v3  ;;  %246 = vst.msk [vmem:[#allocation2 + $0x64] sm:$0xf] %vm220_vm0, %v2769_v3  ;;  %v2510_v53 = vpack.c.bf16 %v318_v50, %v318_v50  ;;  %v2511_v54 = vpack.c.bf16 %v319_v51, %v319_v51  ;;  %v320_v55 = vld [vmem:[%s2826_s25 + $0xd8] sm:$0xff]  ;;  %v321_v56 = vld [vmem:[%s2826_s25 + $0xe0] sm:$0xff] }
  0x29   : > { %247 = vst.msk [vmem:[#allocation2 + $0x68] sm:$0xf] %vm220_vm0, %v2769_v3  ;;  %248 = vst.msk [vmem:[#allocation2 + $0x6c] sm:$0xf] %vm220_vm0, %v2769_v3  ;;  %v322_v57 = vld [vmem:[%s2826_s25 + $0xe8] sm:$0xff]  ;;  %v2512_v58 = vpack.c.bf16 %v320_v55, %v320_v55  ;;  %v2513_v59 = vpack.c.bf16 %v321_v56, %v321_v56  ;;  %v323_v61 = vld [vmem:[%s2826_s25 + $0xf0] sm:$0xff] }
  0x2a   : > { %249 = vst.msk [vmem:[#allocation2 + $0x70] sm:$0xf] %vm220_vm0, %v2769_v3  ;;  %250 = vst.msk [vmem:[#allocation2 + $0x74] sm:$0xf] %vm220_vm0, %v2769_v3  ;;  %v2514_v60 = vpack.c.bf16 %v322_v57, %v322_v57  ;;  %v324_v62 = vld [vmem:[%s2826_s25 + $0xf8] sm:$0xff]  ;;  %v2515_v63 = vpack.c.bf16 %v323_v61, %v323_v61 }
  0x2b   : > { %251 = vst.msk [vmem:[#allocation2 + $0x78] sm:$0xf] %vm220_vm0, %v2769_v3  ;;  %252 = vst.msk [vmem:[#allocation2 + $0x7c] sm:$0xf] %vm220_vm0, %v2769_v3  ;;  %v2516_v0 = vpack.c.bf16 %v324_v62, %v324_v62 }
  0x2c   : > { %253 = vst.msk [vmem:[#allocation2 + $0x80] sm:$0xf] %vm220_vm0, %v2769_v3  ;;  %254 = vst.msk [vmem:[#allocation2 + $0x84] sm:$0xf] %vm220_vm0, %v2769_v3 }
  0x2d   : > { %255 = vst.msk [vmem:[#allocation2 + $0x88] sm:$0xf] %vm220_vm0, %v2769_v3  ;;  %256 = vst.msk [vmem:[#allocation2 + $0x8c] sm:$0xf] %vm220_vm0, %v2769_v3 }
  0x2e   : > { %257 = vst.msk [vmem:[#allocation2 + $0x90] sm:$0xf] %vm220_vm0, %v2769_v3  ;;  %258 = vst.msk [vmem:[#allocation2 + $0x94] sm:$0xf] %vm220_vm0, %v2769_v3 }
  0x2f   : > { %259 = vst.msk [vmem:[#allocation2 + $0x98] sm:$0xf] %vm220_vm0, %v2769_v3  ;;  %260 = vst.msk [vmem:[#allocation2 + $0x9c] sm:$0xf] %vm220_vm0, %v2769_v3 }
  0x30   : > { %261 = vst.msk [vmem:[#allocation2 + $0xa0] sm:$0xf] %vm220_vm0, %v2769_v3  ;;  %262 = vst.msk [vmem:[#allocation2 + $0xa4] sm:$0xf] %vm220_vm0, %v2769_v3 }
  0x31   : > { %263 = vst.msk [vmem:[#allocation2 + $0xa8] sm:$0xf] %vm220_vm0, %v2769_v3  ;;  %264 = vst.msk [vmem:[#allocation2 + $0xac] sm:$0xf] %vm220_vm0, %v2769_v3 }
  0x32   : > { %265 = vst.msk [vmem:[#allocation2 + $0xb0] sm:$0xf] %vm220_vm0, %v2769_v3  ;;  %266 = vst.msk [vmem:[#allocation2 + $0xb4] sm:$0xf] %vm220_vm0, %v2769_v3 }
  0x33   : > { %267 = vst.msk [vmem:[#allocation2 + $0xb8] sm:$0xf] %vm220_vm0, %v2769_v3  ;;  %268 = vst.msk [vmem:[#allocation2 + $0xbc] sm:$0xf] %vm220_vm0, %v2769_v3 }
  0x34   : > { %269 = vst.msk [vmem:[#allocation2 + $0xc0] sm:$0xf] %vm220_vm0, %v2769_v3  ;;  %270 = vst.msk [vmem:[#allocation2 + $0xc4] sm:$0xf] %vm220_vm0, %v2769_v3 }
  0x35   : > { %271 = vst.msk [vmem:[#allocation2 + $0xc8] sm:$0xf] %vm220_vm0, %v2769_v3  ;;  %272 = vst.msk [vmem:[#allocation2 + $0xcc] sm:$0xf] %vm220_vm0, %v2769_v3 }
  0x36   : > { %273 = vst.msk [vmem:[#allocation2 + $0xd0] sm:$0xf] %vm220_vm0, %v2769_v3  ;;  %274 = vst.msk [vmem:[#allocation2 + $0xd4] sm:$0xf] %vm220_vm0, %v2769_v3 }
  0x37   : > { %275 = vst.msk [vmem:[#allocation2 + $0xd8] sm:$0xf] %vm220_vm0, %v2769_v3  ;;  %276 = vst.msk [vmem:[#allocation2 + $0xdc] sm:$0xf] %vm220_vm0, %v2769_v3 }
  0x38   : > { %277 = vst.msk [vmem:[#allocation2 + $0xe0] sm:$0xf] %vm220_vm0, %v2769_v3  ;;  %278 = vst.msk [vmem:[#allocation2 + $0xe4] sm:$0xf] %vm220_vm0, %v2769_v3 }
  0x39   : > { %279 = vst.msk [vmem:[#allocation2 + $0xe8] sm:$0xf] %vm220_vm0, %v2769_v3  ;;  %280 = vst.msk [vmem:[#allocation2 + $0xec] sm:$0xf] %vm220_vm0, %v2769_v3 }
  0x3a   : > { %281 = vst.msk [vmem:[#allocation2 + $0xf0] sm:$0xf] %vm220_vm0, %v2769_v3  ;;  %282 = vst.msk [vmem:[#allocation2 + $0xf4] sm:$0xf] %vm220_vm0, %v2769_v3 }
  0x3b   : > { %283 = vst.msk [vmem:[#allocation2 + $0xf8] sm:$0xf] %vm220_vm0, %v2769_v3  ;;  %284 = vst.msk [vmem:[#allocation2 + $0xfc] sm:$0xf] %vm220_vm0, %v2769_v3 }
  0x3c   : > { %285 = vst.msk [vmem:[#allocation2 + $0x100] sm:$0xf] %vm220_vm0, %v2769_v3  ;;  %286 = vst.msk [vmem:[#allocation2 + $0x104] sm:$0xf] %vm220_vm0, %v2769_v3 }
  0x3d   : > { %287 = vst.msk [vmem:[#allocation2 + $0x108] sm:$0xf] %vm220_vm0, %v2769_v3  ;;  %288 = vst.msk [vmem:[#allocation2 + $0x10c] sm:$0xf] %vm220_vm0, %v2769_v3 }
  0x3e   : > { %289 = vst.msk [vmem:[#allocation2 + $0x110] sm:$0xf] %vm220_vm0, %v2769_v3  ;;  %290 = vst.msk [vmem:[#allocation2 + $0x114] sm:$0xf] %vm220_vm0, %v2769_v3 }
  0x3f   : > { %291 = vst.msk [vmem:[#allocation2 + $0x118] sm:$0xf] %vm220_vm0, %v2769_v3  ;;  %292 = vst.msk [vmem:[#allocation2 + $0x11c] sm:$0xf] %vm220_vm0, %v2769_v3 }
  0x40   : > { %454 = vst.msk [vmem:[#allocation2 + $0x14] sm:$0xf] %vm220_vm0, %v2485_v4  ;;  %455 = vst.msk [vmem:[#allocation2 + $0x18] sm:$0xf] %vm220_vm0, %v2486_v5 }
  0x41   : > { %456 = vst.msk [vmem:[#allocation2 + $0x24] sm:$0xf] %vm220_vm0, %v2487_v6  ;;  %457 = vst.msk [vmem:[#allocation2 + $0x28] sm:$0xf] %vm220_vm0, %v2488_v10 }
  0x42   : > { %458 = vst.msk [vmem:[#allocation2 + $0x34] sm:$0xf] %vm220_vm0, %v2489_v11  ;;  %459 = vst.msk [vmem:[#allocation2 + $0x38] sm:$0xf] %vm220_vm0, %v2490_v12 }
  0x43   : > { %460 = vst.msk [vmem:[#allocation2 + $0x44] sm:$0xf] %vm220_vm0, %v2491_v16  ;;  %461 = vst.msk [vmem:[#allocation2 + $0x48] sm:$0xf] %vm220_vm0, %v2492_v17 }
  0x44   : > { %462 = vst.msk [vmem:[#allocation2 + $0x54] sm:$0xf] %vm220_vm0, %v2493_v18  ;;  %463 = vst.msk [vmem:[#allocation2 + $0x58] sm:$0xf] %vm220_vm0, %v2494_v22 }
  0x45   : > { %464 = vst.msk [vmem:[#allocation2 + $0x64] sm:$0xf] %vm220_vm0, %v2495_v23  ;;  %465 = vst.msk [vmem:[#allocation2 + $0x68] sm:$0xf] %vm220_vm0, %v2496_v24 }
  0x46   : > { %466 = vst.msk [vmem:[#allocation2 + $0x74] sm:$0xf] %vm220_vm0, %v2497_v28  ;;  %467 = vst.msk [vmem:[#allocation2 + $0x78] sm:$0xf] %vm220_vm0, %v2498_v29 }
  0x47   : > { %468 = vst.msk [vmem:[#allocation2 + $0x84] sm:$0xf] %vm220_vm0, %v2499_v30  ;;  %469 = vst.msk [vmem:[#allocation2 + $0x88] sm:$0xf] %vm220_vm0, %v2500_v34 }
  0x48   : > { %470 = vst.msk [vmem:[#allocation2 + $0x94] sm:$0xf] %vm220_vm0, %v2501_v35  ;;  %471 = vst.msk [vmem:[#allocation2 + $0x98] sm:$0xf] %vm220_vm0, %v2502_v36 }
  0x49   : > { %472 = vst.msk [vmem:[#allocation2 + $0xa4] sm:$0xf] %vm220_vm0, %v2503_v40  ;;  %473 = vst.msk [vmem:[#allocation2 + $0xa8] sm:$0xf] %vm220_vm0, %v2504_v41 }
  0x4a   : > { %474 = vst.msk [vmem:[#allocation2 + $0xb4] sm:$0xf] %vm220_vm0, %v2505_v42  ;;  %475 = vst.msk [vmem:[#allocation2 + $0xb8] sm:$0xf] %vm220_vm0, %v2506_v46 }
  0x4b   : > { %476 = vst.msk [vmem:[#allocation2 + $0xc4] sm:$0xf] %vm220_vm0, %v2507_v47  ;;  %477 = vst.msk [vmem:[#allocation2 + $0xc8] sm:$0xf] %vm220_vm0, %v2508_v48 }
  0x4c   : > { %478 = vst.msk [vmem:[#allocation2 + $0xd4] sm:$0xf] %vm220_vm0, %v2509_v52  ;;  %479 = vst.msk [vmem:[#allocation2 + $0xd8] sm:$0xf] %vm220_vm0, %v2510_v53 }
  0x4d   : > { %480 = vst.msk [vmem:[#allocation2 + $0xe4] sm:$0xf] %vm220_vm0, %v2511_v54  ;;  %481 = vst.msk [vmem:[#allocation2 + $0xe8] sm:$0xf] %vm220_vm0, %v2512_v58 }
  0x4e   : > { %482 = vst.msk [vmem:[#allocation2 + $0xf4] sm:$0xf] %vm220_vm0, %v2513_v59  ;;  %483 = vst.msk [vmem:[#allocation2 + $0xf8] sm:$0xf] %vm220_vm0, %v2514_v60 }
  0x4f   : > { %484 = vst.msk [vmem:[#allocation2 + $0x104] sm:$0xf] %vm220_vm0, %v2515_v63  ;;  %485 = vst.msk [vmem:[#allocation2 + $0x108] sm:$0xf] %vm220_vm0, %v2516_v0 }
  0x50 PF: > { %v2334_v1 = vld [vmem:[%s3494_s1 + $0x2] sm:$0x3]  ;;  %vm629_vm1 = vcmask 1041408   ;;  %s2518_s11 = sshll.u32 %s2751_s12, 6  ;;  %vm616_vm2 = vcmask 31744   ;;  %vm2087_vm9 = vcmask 27648  }
  0x51   : > { %2667 = vmatprep.subr.msk.bf16.mxu1 %vm629_vm1, %v2334_v1  ;;  %2666 = vmatprep.subr.msk.bf16.mxu0 %vm629_vm1, %v2334_v1  ;;  %v631_v2 = vsel %vm629_vm1, %v2334_v1, 0  ;;  %v593_v3 = vld [vmem:[%s3494_s1] sm:$0x3]  ;;  %v2351_v4 = vld [vmem:[%s3494_s1 + $0x4] sm:$0x3]  ;;  %s3073_s22 = scalar_lea.vmem [#allocation2], %s2518_s11 }
  0x52   : > { %2665 = vmatpush3.bf16.msra.mxu1 %v631_v2  ;;  %2575 = vmatpush3.bf16.msra.mxu0 %v631_v2  ;;  %v2378_v46 = vld [vmem:[%s3494_s1 + $0x6] sm:$0x3]  ;;  %v723_v55 = vsel %vm629_vm1, %v593_v3, 0  ;;  %v928_v56 = vsel %vm629_vm1, %v2351_v4, 0  ;;  %vm502_vm3 = vsmask.f32 256 }
  0x53   : > { %2668 = vmatprep.subr.msk.bf16.mxu1 %vm629_vm1, %v593_v3  ;;  %2669 = vmatprep.subr.msk.bf16.mxu0 %vm629_vm1, %v2351_v4  ;;  %vm503_vm4 = vsmask.f32 4368  ;;  %vm802_vm5 = vsmask.f32 3328  ;;  %vm803_vm7 = vsmask.f32 7440 }
  0x54   : > { %vm3123_vm6 = vmor %vm502_vm3, %vm503_vm4  ;;  %vm2117_vm10 = vcmask 24576  }
  0x55   : > { %vm3147_vm8 = vmor %vm802_vm5, %vm803_vm7 }
  0x56   : > { %v491_v5 = vld [vmem:[%s3073_s22 + $0x4] sm:$0xf]  ;;  %v492_v6 = vld [vmem:[%s3073_s22 + $0x8] sm:$0xf]  ;;  %v494_v17 = vld [vmem:[%s3073_s22 + $0x14] sm:$0xf] }
  0x57   : > { %v497_v7 = vld [vmem:[%s3073_s22 + $0x24] sm:$0xf]  ;;  %v511_v8 = vshrl.u32 %v491_v5, 16  ;;  %v514_v9 = vshll.u32 %v491_v5, 16  ;;  %v520_v10 = vshrl.u32 %v492_v6, 16  ;;  %v523_v11 = vshll.u32 %v492_v6, 16 }
  0x58   : > { %v498_v12 = vld [vmem:[%s3073_s22 + $0x28] sm:$0xf]  ;;  %v2335_v13 = vcombine.low %v491_v5, %v492_v6  ;;  %v555_v14 = vshrl.u32 %v497_v7, 16  ;;  %v558_v15 = vshll.u32 %v497_v7, 16  ;;  %v495_v22 = vld [vmem:[%s3073_s22 + $0x18] sm:$0xf] }
  0x59   : > { %v564_v16 = vshrl.u32 %v498_v12, 16  ;;  %v513_v18 = vrot.slane %v511_v8, 7  ;;  %v522_v19 = vrot.slane %v520_v10, 7  ;;  %v567_v20 = vshll.u32 %v498_v12, 16  ;;  %v3096_v35 = vld [vmem:[%s3073_s22 + $0x34] sm:$0xf] }
  0x5a   : > { %v2337_v21 = vcombine.low %v497_v7, %v498_v12  ;;  %2576 = vmatprep.mubr.msk.bf16.mxu0 %vm616_vm2, %v2335_v13  ;;  %v3084_v23 = vrot.slane %v555_v14, 7  ;;  %v533_v25 = vshrl.u32 %v494_v17, 16  ;;  %v536_v26 = vshll.u32 %v494_v17, 16  ;;  %v3099_v36 = vld [vmem:[%s3073_s22 + $0x38] sm:$0xf] }
  0x5b   : > { %v566_v24 = vrot.slane %v564_v16, 7  ;;  %v3086_v27 = vor.u32 %v514_v9, %v513_v18  ;;  %v518_v28 = vrot.slane %v513_v18, 4  ;;  %v525_v29 = vor.u32 %v523_v11, %v522_v19  ;;  %v490_v41 = vld [vmem:[%s3073_s22] sm:$0x8]  ;;  %v493_v47 = vld [vmem:[%s3073_s22 + $0x10] sm:$0x8] }
  0x5c   : > { %2580 = vmatprep.mubr.msk.bf16.mxu1 %vm616_vm2, %v2337_v21  ;;  %v542_v30 = vshrl.u32 %v495_v22, 16  ;;  %v3090_v31 = vor.u32 %v558_v15, %v3084_v23  ;;  %v562_v32 = vrot.slane %v3084_v23, 4  ;;  %v535_v34 = vrot.slane %v533_v25, 7  ;;  %v790_v52 = vld [vmem:[%s3073_s22 + $0x4] sm:$0xf] }
  0x5d   : > { %v3093_v33 = vor.u32 %v567_v20, %v566_v24  ;;  %v545_v38 = vshll.u32 %v495_v22, 16  ;;  %v2336_v39 = vcombine.low %v494_v17, %v495_v22  ;;  %v577_v40 = vshrl.u32 %v3096_v35, 16  ;;  %v791_v53 = vld [vmem:[%s3073_s22 + $0x8] sm:$0xf]  ;;  %v792_v57 = vld [vmem:[%s3073_s22 + $0xc] sm:$0x1] }
  0x5e   : > { %v544_v37 = vrot.slane %v542_v30, 7  ;;  %v538_v42 = vor.u32 %v536_v26, %v535_v34  ;;  %v540_v43 = vrot.slane %v535_v34, 4  ;;  %v580_v44 = vshll.u32 %v3096_v35, 16  ;;  %v793_v4 = vld [vmem:[%s3073_s22 + $0x14] sm:$0xf] }
  0x5f   : > { %v586_v45 = vshrl.u32 %v3099_v36, 16  ;;  %2577 = vmatmul.mubr.msk.bf16.vlgmr.msra.gmra.mxu0 %vm616_vm2, %v2336_v39  ;;  %v3110_v49 = vrot.slane %v577_v40, 7  ;;  %v589_v50 = vshll.u32 %v3099_v36, 16  ;;  %v2338_v51 = vcombine.low %v3096_v35, %v3099_v36  ;;  %v794_v5 = vld [vmem:[%s3073_s22 + $0x18] sm:$0xf] }
  0x60   : > { %v547_v48 = vor.u32 %v545_v38, %v544_v37  ;;  %2595 = vmatpush3.bf16.msra.mxu0 %v928_v56  ;;  %v506_v58 = vshrl.u32 %v490_v41, 16  ;;  %v528_v59 = vshrl.u32 %v493_v47, 16  ;;  %v806_v61 = vshrl.u32 %v790_v52, 16  ;;  %v2387_v10 = vld [vmem:[%s3494_s1 + $0x8] sm:$0x3] }
  0x61   : > { %v3117_v54 = vrot.slane %v586_v45, 7  ;;  %2581 = vmatmul.mubr.msk.bf16.vlgmr.msra.gmra.mxu1 %vm616_vm2, %v2338_v51  ;;  %v809_v62 = vshll.u32 %v790_v52, 16  ;;  %v815_v63 = vshll.u32 %v791_v53, 16  ;;  %v526_v1 = vsel %vm3123_vm6, %v518_v28, %v525_v29  ;;  %v795_v15 = vld [vmem:[%s3073_s22 + $0x1c] sm:$0x1]  ;;  %2671 = vmatprep.subr.msk.bf16.mxu0 %vm629_vm1, %v2387_v10 }
  0x62   : > { %2585 = vmatpush3.bf16.msra.mxu1 %v723_v55  ;;  %v2330_v0 = vrot.slane %v506_v58, 11  ;;  %v2331_v2 = vrot.slane %v528_v59, 11  ;;  %v548_v3 = vsel %vm3123_vm6, %v540_v43, %v547_v48  ;;  %v808_v6 = vrot.slane %v806_v61, 4  ;;  %v496_v26 = vld [vmem:[%s3073_s22 + $0x20] sm:$0x8] }
  0x63   : > { %2670 = vmatprep.subr.msk.bf16.mxu1 %vm629_vm1, %v2378_v46  ;;  %v811_v7 = vrot.slane %v809_v62, 5  ;;  %v817_v8 = vrot.slane %v815_v63, 5  ;;  %v819_v9 = vshrl.u32 %v791_v53, 16  ;;  %v825_v13 = vshll.u32 %v792_v57, 16  ;;  %v499_v34 = vld [vmem:[%s3073_s22 + $0x30] sm:$0x8] }
  0x64   : > { %v517_v11 = vsel %vm3123_vm6, %v2330_v0, %v3086_v27  ;;  %v539_v12 = vsel %vm3123_vm6, %v2331_v2, %v538_v42  ;;  %v1134_v14 = vsel %vm629_vm1, %v2378_v46, 0  ;;  %v830_v22 = vshrl.u32 %v793_v4, 16  ;;  %v796_v52 = vld [vmem:[%s3073_s22 + $0x24] sm:$0xf]  ;;  %v797_v58 = vld [vmem:[%s3073_s22 + $0x28] sm:$0xf] }
  0x65   : > { %v2343_v16 = vcombine.low %v517_v11, %v526_v1  ;;  %v2344_v17 = vcombine.low %v539_v12, %v548_v3  ;;  %v812_v18 = vor.u32 %v811_v7, %v808_v6  ;;  %v821_v19 = vrot.slane %v819_v9, 4  ;;  %v3174_v23 = vld [vmem:[%s3494_s1 + $0xa] sm:$0x3]  ;;  %v798_v2 = vld [vmem:[%s3073_s22 + $0x2c] sm:$0x1] }
  0x66   : > { %v827_v21 = vrot.slane %v825_v13, 5  ;;  %v833_v24 = vshll.u32 %v793_v4, 16  ;;  %v839_v25 = vshll.u32 %v794_v5, 16  ;;  %v843_v29 = vshrl.u32 %v794_v5, 16  ;;  %v799_v36 = vld [vmem:[%s3073_s22 + $0x34] sm:$0xf] }
  0x67   : > { %2586 = vmatprep.mubr.msk.bf16.mxu1 %vm616_vm2, %v2343_v16  ;;  %v813_v27 = vrot.slane %v812_v18, 4  ;;  %v822_v28 = vor.u32 %v821_v19, %v817_v8  ;;  %v849_v30 = vshll.u32 %v795_v15, 16  ;;  %v832_v37 = vrot.slane %v830_v22, 4  ;;  %v800_v6 = vld [vmem:[%s3073_s22 + $0x38] sm:$0xf] }
  0x68   : > { %v835_v38 = vrot.slane %v833_v24, 5  ;;  %v841_v39 = vrot.slane %v839_v25, 5  ;;  %v1244_v40 = vsel %vm629_vm1, %v2387_v10, 0  ;;  %v845_v43 = vrot.slane %v843_v29, 4  ;;  %v801_v7 = vld [vmem:[%s3073_s22 + $0x3c] sm:$0x1] }
  0x69   : > { %2587 = vmatmul.mubr.msk.bf16.vlgmr.msra.gmra.mxu1 %vm616_vm2, %v2344_v17  ;;  %v818_v41 = vsel %vm3147_vm8, %v813_v27, %v817_v8  ;;  %v823_v42 = vrot.slane %v822_v28, 4  ;;  %v851_v45 = vrot.slane %v849_v30, 5  ;;  %v550_v47 = vshrl.u32 %v496_v26, 16  ;;  %v2362_v11 = vld [vmem:[%s3073_s22 + $0x10] sm:$0x8] }
  0x6a   : > { %2605 = vmatpush3.bf16.msra.mxu1 %v1134_v14  ;;  %v836_v46 = vor.u32 %v835_v38, %v832_v37  ;;  %v570_v48 = vsel %vm3123_vm6, %v562_v32, %v3093_v33  ;;  %v572_v51 = vshrl.u32 %v499_v34, 16  ;;  %v846_v55 = vor.u32 %v845_v43, %v841_v39  ;;  %v3202_v16 = vld [vmem:[%s3494_s1 + $0xc] sm:$0x3]  ;;  %v2363_v22 = vld [vmem:[%s3073_s22 + $0x14] sm:$0xf] }
  0x6b   : > { %v828_v53 = vsel %vm3147_vm8, %v823_v42, %v827_v21  ;;  %v582_v56 = vor.u32 %v580_v44, %v3110_v49  ;;  %v584_v57 = vrot.slane %v3110_v49, 4  ;;  %v2332_v59 = vrot.slane %v550_v47, 11  ;;  %2672 = vmatprep.subr.msk.bf16.mxu1 %vm629_vm1, %v3174_v23  ;;  %v2364_v28 = vld [vmem:[%s3073_s22 + $0x18] sm:$0xf]  ;;  %v2365_v43 = vld [vmem:[%s3073_s22 + $0x20] sm:$0x8] }
  0x6c   : > { %v2352_v32 = vcombine.low %v818_v41, %v828_v53  ;;  %v837_v33 = vrot.slane %v836_v46, 4  ;;  %v2333_v61 = vrot.slane %v572_v51, 11  ;;  %v847_v35 = vrot.slane %v846_v55, 4 }
  0x6d   : > { %v591_v44 = vor.u32 %v589_v50, %v3117_v54  ;;  %v854_v49 = vshrl.u32 %v796_v52, 16  ;;  %v857_v62 = vshll.u32 %v796_v52, 16  ;;  %v561_v0 = vsel %vm3123_vm6, %v2332_v59, %v3090_v31 }
  0x6e   : > { %2596 = vmatprep.mubr.msk.bf16.mxu0 %vm616_vm2, %v2352_v32  ;;  %v842_v63 = vsel %vm3147_vm8, %v837_v33, %v841_v39  ;;  %v583_v1 = vsel %vm3123_vm6, %v2333_v61, %v582_v56  ;;  %v863_v3 = vshll.u32 %v797_v58, 16  ;;  %v852_v50 = vsel %vm3147_vm8, %v847_v35, %v851_v45 }
  0x6f   : > { %v2345_v54 = vcombine.low %v561_v0, %v570_v48  ;;  %v592_v4 = vsel %vm3123_vm6, %v584_v57, %v591_v44  ;;  %v856_v5 = vrot.slane %v854_v49, 4  ;;  %v2353_v8 = vcombine.low %v842_v63, %v852_v50  ;;  %v2367_v44 = vld [vmem:[%s3073_s22 + $0x28] sm:$0xf]  ;;  %v2368_v50 = vld [vmem:[%s3073_s22 + $0x30] sm:$0x8] }
  0x70   : > { %v2346_v9 = vcombine.low %v583_v1, %v592_v4  ;;  %v859_v31 = vrot.slane %v857_v62, 5  ;;  %v865_v10 = vrot.slane %v863_v3, 5  ;;  %v867_v12 = vshrl.u32 %v797_v58, 16  ;;  %v3214_v58 = vld [vmem:[%s3073_s22 + $0x24] sm:$0xf] }
  0x71   : > { %2590 = vmatprep.mubr.msk.bf16.mxu1 %vm616_vm2, %v2345_v54  ;;  %v873_v13 = vshll.u32 %v798_v2, 16  ;;  %v878_v14 = vshrl.u32 %v799_v36, 16  ;;  %v881_v15 = vshll.u32 %v799_v36, 16  ;;  %2597 = vmatmul.mubr.msk.bf16.vlgmr.msra.gmra.mxu0 %vm616_vm2, %v2353_v8  ;;  %v887_v18 = vshll.u32 %v800_v6, 16  ;;  %v3229_v54 = vld [vmem:[%s3073_s22 + $0x34] sm:$0xf] }
  0x72   : > { %2591 = vmatmul.mubr.msk.bf16.gmra.mxu1 %vm616_vm2, %v2346_v9  ;;  %v860_v17 = vor.u32 %v859_v31, %v856_v5  ;;  %v891_v19 = vshrl.u32 %v800_v6, 16  ;;  %v897_v21 = vshll.u32 %v801_v7, 16  ;;  %2615 = vmatpush3.bf16.msra.mxu0 %v1244_v40  ;;  %v869_v24 = vrot.slane %v867_v12, 4  ;;  %v2370_v8 = vld [vmem:[%s3073_s22 + $0x38] sm:$0xf] }
  0x73   : > { %v875_v25 = vrot.slane %v873_v13, 5  ;;  %v880_v26 = vrot.slane %v878_v14, 4  ;;  %v883_v27 = vrot.slane %v881_v15, 5  ;;  %v889_v30 = vrot.slane %v887_v18, 5  ;;  %2673 = vmatprep.subr.msk.bf16.mxu0 %vm629_vm1, %v3202_v16  ;;  %v2371_v12 = vld [vmem:[%s3073_s22 + $0x40] sm:$0x8] }
  0x74   : > { %v861_v29 = vrot.slane %v860_v17, 4  ;;  %v893_v34 = vrot.slane %v891_v19, 4  ;;  %v899_v37 = vrot.slane %v897_v21, 5  ;;  %v870_v38 = vor.u32 %v869_v24, %v865_v10  ;;  %v3245_v18 = vld [vmem:[%s3073_s22 + $0x44] sm:$0xf] }
  0x75   : > { %v884_v39 = vor.u32 %v883_v27, %v880_v26  ;;  %v1020_v41 = vshrl.u32 %v2362_v11, 16  ;;  %v1025_v42 = vshrl.u32 %v2363_v22, 16  ;;  %v1028_v46 = vshll.u32 %v2363_v22, 16 }
  0x76   : > { %v866_v40 = vsel %vm3147_vm8, %v861_v29, %v865_v10  ;;  %v894_v45 = vor.u32 %v893_v34, %v889_v30  ;;  %v1034_v47 = vshrl.u32 %v2364_v28, 16  ;;  %v871_v48 = vrot.slane %v870_v38, 4  ;;  %v3252_v29 = vld [vmem:[%s3073_s22 + $0x48] sm:$0xf] }
  0x77   : > { %v885_v51 = vrot.slane %v884_v39, 4  ;;  %v2374_v52 = vrot.slane %v1020_v41, 11  ;;  %v1027_v53 = vrot.slane %v1025_v42, 7  ;;  %v1037_v57 = vshll.u32 %v2364_v28, 16 }
  0x78   : > { %v895_v55 = vrot.slane %v894_v45, 4  ;;  %v1036_v56 = vrot.slane %v1034_v47, 7  ;;  %v1042_v32 = vshrl.u32 %v2365_v43, 16  ;;  %v876_v33 = vsel %vm3147_vm8, %v871_v48, %v875_v25  ;;  %v2397_v47 = vld [vmem:[%s3073_s22 + $0x18] sm:$0xf] }
  0x79   : > { %v890_v59 = vsel %vm3147_vm8, %v885_v51, %v889_v30  ;;  %v1030_v61 = vor.u32 %v1028_v46, %v1027_v53  ;;  %v1032_v35 = vrot.slane %v1027_v53, 4  ;;  %v2354_v49 = vcombine.low %v866_v40, %v876_v33  ;;  %v2396_v46 = vld [vmem:[%s3073_s22 + $0x14] sm:$0xf] }
  0x7a   : > { %v900_v62 = vsel %vm3147_vm8, %v895_v55, %v899_v37  ;;  %v1039_v63 = vor.u32 %v1037_v57, %v1036_v56  ;;  %v2375_v0 = vrot.slane %v1042_v32, 11  ;;  %v1047_v3 = vshrl.u32 %v3214_v58, 16  ;;  %v2398_v55 = vld [vmem:[%s3073_s22 + $0x1c] sm:$0x1]  ;;  %v3269_v56 = vld [vmem:[%s3494_s1 + $0xe] sm:$0x3] }
  0x7b   : > { %v2355_v1 = vcombine.low %v890_v59, %v900_v62  ;;  %v1031_v2 = vsel %vm3123_vm6, %v2374_v52, %v1030_v61  ;;  %v1050_v36 = vshll.u32 %v3214_v58, 16  ;;  %2600 = vmatprep.mubr.msk.bf16.mxu0 %vm616_vm2, %v2354_v49  ;;  %v1056_v5 = vshrl.u32 %v2367_v44, 16  ;;  %v2399_v59 = vld [vmem:[%s3073_s22 + $0x24] sm:$0xf]  ;;  %v3281_v61 = vld [vmem:[%s3494_s1 + $0x10] sm:$0x3] }
  0x7c   : > { %v1040_v4 = vsel %vm3123_vm6, %v1032_v35, %v1039_v63  ;;  %v1059_v6 = vshll.u32 %v2367_v44, 16  ;;  %v2388_v7 = vcombine.low %v2363_v22, %v2364_v28  ;;  %v1049_v31 = vrot.slane %v1047_v3, 7  ;;  %v2400_v3 = vld [vmem:[%s3073_s22 + $0x28] sm:$0xf] }
  0x7d   : > { %2601 = vmatmul.mubr.msk.bf16.gmra.mxu0 %vm616_vm2, %v2355_v1  ;;  %v2379_v9 = vcombine.low %v1031_v2, %v1040_v4  ;;  %v1454_v10 = vsel %vm629_vm1, %v3174_v23, 0  ;;  %v2389_v11 = vcombine.low %v3214_v58, %v2367_v44  ;;  %v1058_v13 = vrot.slane %v1056_v5, 7  ;;  %v2401_v4 = vld [vmem:[%s3073_s22 + $0x2c] sm:$0x1] }
  0x7e   : > { %2616 = vmatprep.mubr.msk.bf16.mxu0 %vm616_vm2, %v2388_v7  ;;  %v1660_v14 = vsel %vm629_vm1, %v3202_v16, 0  ;;  %v1064_v15 = vshrl.u32 %v2368_v50, 16  ;;  %v1069_v17 = vshrl.u32 %v3229_v54, 16  ;;  %v1052_v19 = vor.u32 %v1050_v36, %v1049_v31 }
  0x7f   : > { %2606 = vmatprep.mubr.msk.bf16.mxu1 %vm616_vm2, %v2379_v9  ;;  %v1054_v21 = vrot.slane %v1049_v31, 4  ;;  %v1072_v23 = vshll.u32 %v3229_v54, 16  ;;  %v1078_v22 = vshrl.u32 %v2370_v8, 16  ;;  %v1061_v24 = vor.u32 %v1059_v6, %v1058_v13  ;;  %v2419_v31 = vld [vmem:[%s3073_s22 + $0x20] sm:$0x8] }
  0x80   : > { %v2376_v25 = vrot.slane %v1064_v15, 11  ;;  %v1071_v26 = vrot.slane %v1069_v17, 7  ;;  %v1081_v27 = vshll.u32 %v2370_v8, 16  ;;  %v1053_v16 = vsel %vm3123_vm6, %v2375_v0, %v1052_v19 }
  0x81   : > { %v1080_v28 = vrot.slane %v1078_v22, 7  ;;  %v1086_v30 = vshrl.u32 %v2371_v12, 16  ;;  %v1091_v34 = vshrl.u32 %v3245_v18, 16  ;;  %v1062_v37 = vsel %vm3123_vm6, %v1054_v21, %v1061_v24 }
  0x82   : > { %v1074_v38 = vor.u32 %v1072_v23, %v1071_v26  ;;  %v1076_v39 = vrot.slane %v1071_v26, 4  ;;  %v1094_v41 = vshll.u32 %v3245_v18, 16  ;;  %v2380_v42 = vcombine.low %v1053_v16, %v1062_v37  ;;  %v3302_v16 = vld [vmem:[%s3073_s22 + $0x28] sm:$0xf] }
  0x83   : > { %v1083_v43 = vor.u32 %v1081_v27, %v1080_v28  ;;  %v2377_v40 = vrot.slane %v1086_v30, 11  ;;  %v1093_v45 = vrot.slane %v1091_v34, 7  ;;  %v1100_v51 = vshrl.u32 %v3252_v29, 16 }
  0x84   : > { %v1075_v48 = vsel %vm3123_vm6, %v2376_v25, %v1074_v38  ;;  %v1103_v52 = vshll.u32 %v3252_v29, 16  ;;  %v2390_v53 = vcombine.low %v3229_v54, %v2370_v8  ;;  %2607 = vmatmul.mubr.msk.bf16.vlgmr.msra.gmra.mxu1 %vm616_vm2, %v2380_v42  ;;  %v2391_v33 = vcombine.low %v3245_v18, %v3252_v29 }
  0x85   : > { %2617 = vmatmul.mubr.msk.bf16.vlgmr.msra.gmra.mxu0 %vm616_vm2, %v2389_v11  ;;  %v1084_v57 = vsel %vm3123_vm6, %v1076_v39, %v1083_v43  ;;  %v1096_v58 = vor.u32 %v1094_v41, %v1093_v45  ;;  %v1098_v32 = vrot.slane %v1093_v45, 4  ;;  %2625 = vmatpush3.bf16.msra.mxu1 %v1454_v10  ;;  %v1102_v44 = vrot.slane %v1100_v51, 7  ;;  %v2422_v43 = vld [vmem:[%s3073_s22 + $0x30] sm:$0x8]  ;;  %v3319_v51 = vld [vmem:[%s3073_s22 + $0x38] sm:$0xf] }
  0x86   : > { %2635 = vmatpush3.bf16.msra.mxu0 %v1660_v14  ;;  %v2381_v35 = vcombine.low %v1075_v48, %v1084_v57  ;;  %v1332_v49 = vshrl.u32 %v2396_v46, 16  ;;  %v1335_v62 = vshll.u32 %v2396_v46, 16  ;;  %2620 = vmatprep.mubr.msk.bf16.mxu0 %vm616_vm2, %v2390_v53  ;;  %v1341_v0 = vshll.u32 %v2397_v47, 16  ;;  %v3297_v14 = vld [vmem:[%s3073_s22 + $0x24] sm:$0xf] }
  0x87   : > { %v1097_v63 = vsel %vm3123_vm6, %v2377_v40, %v1096_v58  ;;  %v1345_v1 = vshrl.u32 %v2397_v47, 16  ;;  %v1351_v2 = vshll.u32 %v2398_v55, 16  ;;  %2674 = vmatprep.subr.msk.bf16.mxu1 %vm629_vm1, %v3269_v56  ;;  %v1105_v36 = vor.u32 %v1103_v52, %v1102_v44  ;;  %2675 = vmatprep.subr.msk.bf16.mxu0 %vm629_vm1, %v3281_v61  ;;  %v3312_v40 = vld [vmem:[%s3073_s22 + $0x34] sm:$0xf] }
  0x88   : > { %2610 = vmatprep.mubr.msk.bf16.mxu1 %vm616_vm2, %v2381_v35  ;;  %v1334_v50 = vrot.slane %v1332_v49, 4  ;;  %v1337_v54 = vrot.slane %v1335_v62, 5  ;;  %v1356_v5 = vshrl.u32 %v2399_v59, 16  ;;  %v1343_v6 = vrot.slane %v1341_v0, 5  ;;  %v2402_v35 = vld [vmem:[%s3073_s22 + $0x34] sm:$0xf] }
  0x89   : > { %v1347_v7 = vrot.slane %v1345_v1, 4  ;;  %v1353_v8 = vrot.slane %v1351_v2, 5  ;;  %v1359_v9 = vshll.u32 %v2399_v59, 16  ;;  %v1106_v10 = vsel %vm3123_vm6, %v1098_v32, %v1105_v36 }
  0x8a   : > { %v1338_v11 = vor.u32 %v1337_v54, %v1334_v50  ;;  %v1358_v12 = vrot.slane %v1356_v5, 4  ;;  %v1365_v13 = vshll.u32 %v2400_v3, 16  ;;  %v2382_v15 = vcombine.low %v1097_v63, %v1106_v10  ;;  %v2403_v63 = vld [vmem:[%s3073_s22 + $0x38] sm:$0xf]  ;;  %v2404_v54 = vld [vmem:[%s3073_s22 + $0x3c] sm:$0x1] }
  0x8b   : > { %v1348_v17 = vor.u32 %v1347_v7, %v1343_v6  ;;  %v1361_v18 = vrot.slane %v1359_v9, 5  ;;  %v1369_v19 = vshrl.u32 %v2400_v3, 16  ;;  %v1375_v22 = vshll.u32 %v2401_v4, 16 }
  0x8c   : > { %v1339_v21 = vrot.slane %v1338_v11, 4  ;;  %v1367_v23 = vrot.slane %v1365_v13, 5  ;;  %v1546_v24 = vshrl.u32 %v2419_v31, 16  ;;  %2611 = vmatmul.mubr.msk.bf16.gmra.mxu1 %vm616_vm2, %v2382_v15  ;;  %v1551_v28 = vshrl.u32 %v3297_v14, 16  ;;  %v2405_v31 = vld [vmem:[%s3073_s22 + $0x44] sm:$0xf] }
  0x8d   : > { %2621 = vmatmul.mubr.msk.bf16.gmra.mxu0 %vm616_vm2, %v2391_v33  ;;  %v1349_v25 = vrot.slane %v1348_v17, 4  ;;  %v1362_v26 = vor.u32 %v1361_v18, %v1358_v12  ;;  %v1371_v27 = vrot.slane %v1369_v19, 4  ;;  %v1377_v30 = vrot.slane %v1375_v22, 5  ;;  %v2407_v22 = vld [vmem:[%s3073_s22 + $0x4c] sm:$0x1] }
  0x8e   : > { %v1344_v29 = vsel %vm3147_vm8, %v1339_v21, %v1343_v6  ;;  %v2431_v34 = vrot.slane %v1546_v24, 11  ;;  %v1554_v37 = vshll.u32 %v3297_v14, 16  ;;  %v1553_v42 = vrot.slane %v1551_v28, 7 }
  0x8f   : > { %v1354_v38 = vsel %vm3147_vm8, %v1349_v25, %v1353_v8  ;;  %v1363_v39 = vrot.slane %v1362_v26, 4  ;;  %v1372_v41 = vor.u32 %v1371_v27, %v1367_v23  ;;  %v1560_v46 = vshrl.u32 %v3302_v16, 16  ;;  %v2425_v26 = vld [vmem:[%s3073_s22 + $0x40] sm:$0x8] }
  0x90   : > { %v2409_v45 = vcombine.low %v1344_v29, %v1354_v38  ;;  %v1563_v47 = vshll.u32 %v3302_v16, 16  ;;  %v1770_v48 = vsel %vm629_vm1, %v3269_v56, 0  ;;  %v1556_v55 = vor.u32 %v1554_v37, %v1553_v42 }
  0x91   : > { %v1368_v52 = vsel %vm3147_vm8, %v1363_v39, %v1367_v23  ;;  %v1373_v53 = vrot.slane %v1372_v41, 4  ;;  %v1558_v57 = vrot.slane %v1553_v42, 4  ;;  %v1562_v58 = vrot.slane %v1560_v46, 7  ;;  %v3354_v46 = vld [vmem:[%s3073_s22 + $0x48] sm:$0xf] }
  0x92   : > { %2626 = vmatprep.mubr.msk.bf16.mxu1 %vm616_vm2, %v2409_v45  ;;  %v1568_v32 = vshrl.u32 %v2422_v43, 16  ;;  %v1573_v33 = vshrl.u32 %v3312_v40, 16  ;;  %v1576_v59 = vshll.u32 %v3312_v40, 16  ;;  %v1557_v44 = vsel %vm3123_vm6, %v2431_v34, %v1556_v55  ;;  %v3350_v34 = vld [vmem:[%s3073_s22 + $0x44] sm:$0xf] }
  0x93   : > { %v1378_v56 = vsel %vm3147_vm8, %v1373_v53, %v1377_v30  ;;  %v1582_v49 = vshrl.u32 %v3319_v51, 16  ;;  %v1585_v62 = vshll.u32 %v3319_v51, 16  ;;  %v1565_v1 = vor.u32 %v1563_v47, %v1562_v58  ;;  %v3361_v58 = vld [vmem:[%s3073_s22 + $0x54] sm:$0xf] }
  0x94   : > { %v2410_v0 = vcombine.low %v1368_v52, %v1378_v56  ;;  %v2432_v2 = vrot.slane %v1568_v32, 11  ;;  %v1575_v3 = vrot.slane %v1573_v33, 7  ;;  %v1980_v50 = vsel %vm629_vm1, %v3281_v61, 0  ;;  %v2406_v61 = vld [vmem:[%s3073_s22 + $0x48] sm:$0xf] }
  0x95   : > { %v1584_v36 = vrot.slane %v1582_v49, 7  ;;  %v1380_v4 = vshrl.u32 %v2402_v35, 16  ;;  %v1383_v5 = vshll.u32 %v2402_v35, 16  ;;  %v1566_v6 = vsel %vm3123_vm6, %v1558_v57, %v1565_v1  ;;  %v2428_v57 = vld [vmem:[%s3073_s22 + $0x50] sm:$0x8] }
  0x96   : > { %2627 = vmatmul.mubr.msk.bf16.vlgmr.msra.gmra.mxu1 %vm616_vm2, %v2410_v0  ;;  %v1578_v7 = vor.u32 %v1576_v59, %v1575_v3  ;;  %v1580_v8 = vrot.slane %v1575_v3, 4  ;;  %v1389_v9 = vshll.u32 %v2403_v63, 16  ;;  %v2436_v10 = vcombine.low %v1557_v44, %v1566_v6  ;;  %v3369_v1 = vld [vmem:[%s3073_s22 + $0x58] sm:$0xf] }
  0x97   : > { %2645 = vmatpush3.bf16.msra.mxu1 %v1770_v48  ;;  %v1587_v11 = vor.u32 %v1585_v62, %v1584_v36  ;;  %v1382_v12 = vrot.slane %v1380_v4, 4  ;;  %v1385_v13 = vrot.slane %v1383_v5, 5  ;;  %v1393_v18 = vshrl.u32 %v2403_v63, 16 }
  0x98   : > { %v1579_v15 = vsel %vm3123_vm6, %v2432_v2, %v1578_v7  ;;  %v1391_v17 = vrot.slane %v1389_v9, 5  ;;  %v1399_v19 = vshll.u32 %v2404_v54, 16  ;;  %2636 = vmatprep.mubr.msk.bf16.mxu0 %vm616_vm2, %v2436_v10  ;;  %v1404_v24 = vshrl.u32 %v2405_v31, 16 }
  0x99   : > { %v1588_v21 = vsel %vm3123_vm6, %v1580_v8, %v1587_v11  ;;  %v1386_v23 = vor.u32 %v1385_v13, %v1382_v12  ;;  %v1407_v25 = vshll.u32 %v2405_v31, 16  ;;  %v1395_v28 = vrot.slane %v1393_v18, 4  ;;  %v2453_v12 = vld [vmem:[%s3073_s22 + $0x24] sm:$0xf]  ;;  %v2454_v13 = vld [vmem:[%s3073_s22 + $0x28] sm:$0xf] }
  0x9a   : > { %v2437_v27 = vcombine.low %v1579_v15, %v1588_v21  ;;  %v1401_v29 = vrot.slane %v1399_v19, 5  ;;  %v1413_v30 = vshll.u32 %v2406_v61, 16  ;;  %v1406_v38 = vrot.slane %v1404_v24, 4  ;;  %v2455_v24 = vld [vmem:[%s3073_s22 + $0x2c] sm:$0x1] }
  0x9b   : > { %v1387_v37 = vrot.slane %v1386_v23, 4  ;;  %v1409_v39 = vrot.slane %v1407_v25, 5  ;;  %v1417_v41 = vshrl.u32 %v2406_v61, 16  ;;  %v1396_v42 = vor.u32 %v1395_v28, %v1391_v17 }
  0x9c   : > { %2637 = vmatmul.mubr.msk.bf16.vlgmr.msra.gmra.mxu0 %vm616_vm2, %v2437_v27  ;;  %v1415_v43 = vrot.slane %v1413_v30, 5  ;;  %v1423_v45 = vshll.u32 %v2407_v22, 16  ;;  %v1590_v47 = vshrl.u32 %v2425_v26, 16  ;;  %v1595_v55 = vshrl.u32 %v3350_v34, 16 }
  0x9d   : > { %2655 = vmatpush3.bf16.msra.mxu0 %v1980_v50  ;;  %v1392_v48 = vsel %vm3147_vm8, %v1387_v37, %v1391_v17  ;;  %v1410_v52 = vor.u32 %v1409_v39, %v1406_v38  ;;  %v1419_v53 = vrot.slane %v1417_v41, 4  ;;  %v1397_v32 = vrot.slane %v1396_v42, 4 }
  0x9e   : > { %v1425_v33 = vrot.slane %v1423_v45, 5  ;;  %v2433_v59 = vrot.slane %v1590_v47, 11  ;;  %v1598_v35 = vshll.u32 %v3350_v34, 16  ;;  %v1597_v49 = vrot.slane %v1595_v55, 7  ;;  %v2458_v45 = vld [vmem:[%s3073_s22 + $0x3c] sm:$0x1] }
  0x9f   : > { %v1411_v56 = vrot.slane %v1410_v52, 4  ;;  %v1420_v44 = vor.u32 %v1419_v53, %v1415_v43  ;;  %v1604_v62 = vshrl.u32 %v3354_v46, 16  ;;  %v1402_v63 = vsel %vm3147_vm8, %v1397_v32, %v1401_v29  ;;  %v2456_v29 = vld [vmem:[%s3073_s22 + $0x34] sm:$0xf] }
  0xa0   : > { %v1607_v0 = vshll.u32 %v3354_v46, 16  ;;  %v1612_v2 = vshrl.u32 %v2428_v57, 16  ;;  %v1617_v3 = vshrl.u32 %v3361_v58, 16  ;;  %v2411_v36 = vcombine.low %v1392_v48, %v1402_v63  ;;  %v2460_v63 = vld [vmem:[%s3073_s22 + $0x48] sm:$0xf] }
  0xa1   : > { %v1416_v50 = vsel %vm3147_vm8, %v1411_v56, %v1415_v43  ;;  %v1421_v54 = vrot.slane %v1420_v44, 4  ;;  %v1600_v4 = vor.u32 %v1598_v35, %v1597_v49  ;;  %v1602_v5 = vrot.slane %v1597_v49, 4  ;;  %v2459_v56 = vld [vmem:[%s3073_s22 + $0x44] sm:$0xf] }
  0xa2   : > { %v1606_v6 = vrot.slane %v1604_v62, 7  ;;  %v2434_v7 = vrot.slane %v1612_v2, 11  ;;  %v1619_v8 = vrot.slane %v1617_v3, 7  ;;  %2630 = vmatprep.mubr.msk.bf16.mxu1 %vm616_vm2, %v2411_v36  ;;  %v1620_v10 = vshll.u32 %v3361_v58, 16 }
  0xa3   : > { %v1426_v9 = vsel %vm3147_vm8, %v1421_v54, %v1425_v33  ;;  %v1601_v31 = vsel %vm3123_vm6, %v2433_v59, %v1600_v4  ;;  %v1626_v11 = vshrl.u32 %v3369_v1, 16  ;;  %v1629_v18 = vshll.u32 %v3369_v1, 16  ;;  %v2461_v4 = vld [vmem:[%s3073_s22 + $0x4c] sm:$0x1] }
  0xa4   : > { %v2412_v61 = vcombine.low %v1416_v50, %v1426_v9  ;;  %v1609_v15 = vor.u32 %v1607_v0, %v1606_v6  ;;  %v1624_v17 = vrot.slane %v1619_v8, 4  ;;  %v1622_v19 = vor.u32 %v1620_v10, %v1619_v8 }
  0xa5   : > { %v1628_v21 = vrot.slane %v1626_v11, 7  ;;  %v2445_v23 = vcombine.low %v3297_v14, %v3302_v16  ;;  %v2446_v22 = vcombine.low %v3312_v40, %v3319_v51  ;;  %v1858_v26 = vshrl.u32 %v2453_v12, 16  ;;  %v2457_v16 = vld [vmem:[%s3073_s22 + $0x38] sm:$0xf] }
  0xa6   : > { %2631 = vmatmul.mubr.msk.bf16.gmra.mxu1 %vm616_vm2, %v2412_v61  ;;  %v1610_v25 = vsel %vm3123_vm6, %v1602_v5, %v1609_v15  ;;  %v1861_v27 = vshll.u32 %v2453_v12, 16  ;;  %v1867_v28 = vshll.u32 %v2454_v13, 16  ;;  %v1623_v37 = vsel %vm3123_vm6, %v2434_v7, %v1622_v19  ;;  %v2463_v11 = vld [vmem:[%s3073_s22 + $0x58] sm:$0xf]  ;;  %v2464_v19 = vld [vmem:[%s3073_s22 + $0x5c] sm:$0x1] }
  0xa7   : > { %v2438_v30 = vcombine.low %v1601_v31, %v1610_v25  ;;  %v1631_v38 = vor.u32 %v1629_v18, %v1628_v21  ;;  %2646 = vmatprep.mubr.msk.bf16.mxu1 %vm616_vm2, %v2445_v23  ;;  %v1871_v14 = vshrl.u32 %v2454_v13, 16  ;;  %v1860_v40 = vrot.slane %v1858_v26, 4 }
  0xa8   : > { %v1863_v51 = vrot.slane %v1861_v27, 5  ;;  %v1869_v39 = vrot.slane %v1867_v28, 5  ;;  %v1877_v41 = vshll.u32 %v2455_v24, 16  ;;  %v1882_v47 = vshrl.u32 %v2456_v29, 16 }
  0xa9   : > { %2640 = vmatprep.mubr.msk.bf16.mxu0 %vm616_vm2, %v2438_v30  ;;  %v1632_v42 = vsel %vm3123_vm6, %v1624_v17, %v1631_v38  ;;  %v1873_v43 = vrot.slane %v1871_v14, 4  ;;  %v1885_v48 = vshll.u32 %v2456_v29, 16  ;;  %v1891_v57 = vshll.u32 %v2457_v16, 16 }
  0xaa   : > { %v2439_v52 = vcombine.low %v1623_v37, %v1632_v42  ;;  %v1864_v53 = vor.u32 %v1863_v51, %v1860_v40  ;;  %v1879_v55 = vrot.slane %v1877_v41, 5  ;;  %v1884_v33 = vrot.slane %v1882_v47, 4 }
  0xab   : > { %v1874_v32 = vor.u32 %v1873_v43, %v1869_v39  ;;  %v1887_v59 = vrot.slane %v1885_v48, 5  ;;  %v1895_v35 = vshrl.u32 %v2457_v16, 16  ;;  %v1893_v60 = vrot.slane %v1891_v57, 5 }
  0xac   : > { %2641 = vmatmul.mubr.msk.bf16.gmra.mxu0 %vm616_vm2, %v2439_v52  ;;  %v1865_v44 = vrot.slane %v1864_v53, 4  ;;  %v1901_v49 = vshll.u32 %v2458_v45, 16  ;;  %v2447_v62 = vcombine.low %v3350_v34, %v3354_v46  ;;  %v2448_v36 = vcombine.low %v3361_v58, %v3369_v1  ;;  %v2462_v58 = vld [vmem:[%s3073_s22 + $0x54] sm:$0xf] }
  0xad   : > { %v1875_v0 = vrot.slane %v1874_v32, 4  ;;  %v1888_v2 = vor.u32 %v1887_v59, %v1884_v33  ;;  %v1897_v3 = vrot.slane %v1895_v35, 4  ;;  %v1906_v5 = vshrl.u32 %v2459_v56, 16 }
  0xae   : > { %2647 = vmatmul.mubr.msk.bf16.vlgmr.msra.gmra.mxu1 %vm616_vm2, %v2446_v22  ;;  %v1870_v50 = vsel %vm3147_vm8, %v1865_v44, %v1869_v39  ;;  %v1903_v54 = vrot.slane %v1901_v49, 5  ;;  %v1909_v6 = vshll.u32 %v2459_v56, 16  ;;  %v1915_v8 = vshll.u32 %v2460_v63, 16 }
  0xaf   : > { %v1880_v34 = vsel %vm3147_vm8, %v1875_v0, %v1879_v55  ;;  %v1889_v46 = vrot.slane %v1888_v2, 4  ;;  %v1898_v7 = vor.u32 %v1897_v3, %v1893_v60  ;;  %2650 = vmatprep.mubr.msk.bf16.mxu1 %vm616_vm2, %v2447_v62  ;;  %v1908_v9 = vrot.slane %v1906_v5, 4 }
  0xb0   : > { %v2466_v1 = vcombine.low %v1870_v50, %v1880_v34  ;;  %v1911_v31 = vrot.slane %v1909_v6, 5  ;;  %v1919_v10 = vshrl.u32 %v2460_v63, 16  ;;  %v1917_v61 = vrot.slane %v1915_v8, 5 }
  0xb1   : > { %v1894_v12 = vsel %vm3147_vm8, %v1889_v46, %v1893_v60  ;;  %v1899_v13 = vrot.slane %v1898_v7, 4  ;;  %v1925_v15 = vshll.u32 %v2461_v4, 16  ;;  %v1930_v21 = vshrl.u32 %v2462_v58, 16 }
  0xb2   : > { %2656 = vmatprep.mubr.msk.bf16.mxu0 %vm616_vm2, %v2466_v1  ;;  %v1912_v17 = vor.u32 %v1911_v31, %v1908_v9  ;;  %v1921_v18 = vrot.slane %v1919_v10, 4  ;;  %v1933_v23 = vshll.u32 %v2462_v58, 16  ;;  %v1939_v25 = vshll.u32 %v2463_v11, 16 }
  0xb3   : > { %v1904_v22 = vsel %vm3147_vm8, %v1899_v13, %v1903_v54  ;;  %v1927_v24 = vrot.slane %v1925_v15, 5  ;;  %v1943_v26 = vshrl.u32 %v2463_v11, 16  ;;  %v1932_v30 = vrot.slane %v1930_v21, 4 }
  0xb4   : > { %v2467_v27 = vcombine.low %v1894_v12, %v1904_v22  ;;  %v1913_v28 = vrot.slane %v1912_v17, 4  ;;  %v1922_v29 = vor.u32 %v1921_v18, %v1917_v61  ;;  %v1935_v37 = vrot.slane %v1933_v23, 5 }
  0xb5   : > { %v1941_v38 = vrot.slane %v1939_v25, 5  ;;  %v1945_v14 = vrot.slane %v1943_v26, 4  ;;  %v1949_v16 = vshll.u32 %v2464_v19, 16 }
  0xb6   : > { %2657 = vmatmul.mubr.msk.bf16.vlgmr.msra.gmra.mxu0 %vm616_vm2, %v2467_v27  ;;  %2651 = vmatmul.mubr.msk.bf16.gmra.mxu1 %vm616_vm2, %v2448_v36  ;;  %v1918_v40 = vsel %vm3147_vm8, %v1913_v28, %v1917_v61  ;;  %v1923_v51 = vrot.slane %v1922_v29, 4  ;;  %v1936_v39 = vor.u32 %v1935_v37, %v1932_v30 }
  0xb7   : > { %v1946_v41 = vor.u32 %v1945_v14, %v1941_v38  ;;  %v1951_v42 = vrot.slane %v1949_v16, 5 }
  0xb8   : > { %v1928_v43 = vsel %vm3147_vm8, %v1923_v51, %v1927_v24  ;;  %v1937_v47 = vrot.slane %v1936_v39, 4 }
  0xb9   : > { %v2468_v45 = vcombine.low %v1918_v40, %v1928_v43  ;;  %v1947_v48 = vrot.slane %v1946_v41, 4 }
  0xba   : > { %v1942_v52 = vsel %vm3147_vm8, %v1937_v47, %v1941_v38 }
  0xbb   : > { %2660 = vmatprep.mubr.msk.bf16.mxu0 %vm616_vm2, %v2468_v45  ;;  %v1952_v53 = vsel %vm3147_vm8, %v1947_v48, %v1951_v42 }
  0xbc   : > { %v2469_v55 = vcombine.low %v1942_v52, %v1952_v53 }
  0xbe   : > { %2661 = vmatmul.mubr.msk.bf16.gmra.mxu0 %vm616_vm2, %v2469_v55 }
 0x11f   : > { %v2578_v32 = vpop.f32.mrf.mxu0 }
 0x121   : > { %v2582_v57 = vpop.f32.mrf.mxu1  ;;  %v667_v35 = vpop.f32.mrf.mxu0 }
 0x123   : > { %v683_v33 = vpop.f32.mrf.mxu1  ;;  %v2579_v60 = vpop.f32.mrf.mxu0 }
 0x125   : > { %v2583_v59 = vpop.f32.mrf.mxu1  ;;  %v670_v63 = vpop.f32.mrf.mxu0 }
 0x127   : > { %v3435_v56 = vpop.f32.mrf.mxu1 }
 0x129   : > { %v2588_v44 = vpop.f32.mrf.mxu1 }
 0x12a   : > { %v768_v28 = vadd.f32 %v2588_v44, %v2578_v32 }
 0x12b   : > { %v759_v49 = vpop.f32.mrf.mxu1 }
 0x12c   : > { %v760_v30 = vadd.f32 %v759_v49, %v667_v35 }
 0x12d   : > { %v2589_v62 = vpop.f32.mrf.mxu1 }
 0x12e   : > { %v771_v14 = vadd.f32 %v2589_v62, %v2579_v60 }
 0x12f   : > { %v762_v0 = vpop.f32.mrf.mxu1 }
 0x130   : > { %v763_v51 = vadd.f32 %v762_v0, %v670_v63 }
 0x131   : > { %v2598_v2 = vpop.f32.mrf.mxu0 }
 0x132   : > { %v2592_v20 = vpop.f32.mrf.mxu1  ;;  %v997_v38 = vadd.f32 %v2598_v2, %v768_v28 }
 0x133   : > { %v964_v3 = vpop.f32.mrf.mxu0  ;;  %v784_v43 = vadd.f32 %v2592_v20, %v2582_v57 }
 0x134   : > { %v775_v54 = vpop.f32.mrf.mxu1  ;;  %v995_v40 = vadd.f32 %v964_v3, %v760_v30 }
 0x135   : > { %v2599_v36 = vpop.f32.mrf.mxu0  ;;  %v776_v55 = vadd.f32 %v775_v54, %v683_v33 }
 0x136   : > { %v2593_v5 = vpop.f32.mrf.mxu1  ;;  %v998_v47 = vadd.f32 %v2599_v36, %v771_v14 }
 0x137   : > { %v967_v50 = vpop.f32.mrf.mxu0 }
 0x138   : > { %v778_v46 = vpop.f32.mrf.mxu1  ;;  %v996_v52 = vadd.f32 %v967_v50, %v763_v51 }
 0x139   : > { %v779_v20 = vadd.f32 %v778_v46, %v3435_v56 }
 0x13d   : > { %v2602_v4 = vpop.f32.mrf.mxu0 }
 0x13e   : > { %v1001_v49 = vadd.f32 %v2602_v4, %v784_v43 }
 0x13f   : > { %v980_v6 = vpop.f32.mrf.mxu0 }
 0x140   : > { %v999_v28 = vadd.f32 %v980_v6, %v776_v55 }
 0x141   : > { %v2603_v34 = vpop.f32.mrf.mxu0 }
 0x143   : > { %v3437_v7 = vpop.f32.mrf.mxu0 }
 0x144   : > { %v2608_v8 = vpop.f32.mrf.mxu1 }
 0x145   : > { %v2618_v58 = vpop.f32.mrf.mxu0  ;;  %v1203_v39 = vadd.f32 %v2608_v8, %v997_v38 }
 0x146   : > { %v1170_v1 = vpop.f32.mrf.mxu1 }
 0x147   : > { %v1280_v9 = vpop.f32.mrf.mxu0  ;;  %v1201_v45 = vadd.f32 %v1170_v1, %v995_v40  ;;  %v1313_v53 = vadd.f32 %v2618_v58, %v1203_v39 }
 0x148   : > { %v2609_v31 = vpop.f32.mrf.mxu1 }
 0x149   : > { %v2619_v10 = vpop.f32.mrf.mxu0  ;;  %v1204_v32 = vadd.f32 %v2609_v31, %v998_v47  ;;  %v1311_v2 = vadd.f32 %v1280_v9, %v1201_v45 }
 0x14a   : > { %v1173_v11 = vpop.f32.mrf.mxu1 }
 0x14b   : > { %v1283_v12 = vpop.f32.mrf.mxu0  ;;  %v1202_v60 = vadd.f32 %v1173_v11, %v996_v52  ;;  %v1314_v36 = vadd.f32 %v2619_v10, %v1204_v32 }
 0x14c   : > { %v2612_v13 = vpop.f32.mrf.mxu1 }
 0x14d   : > { %v2622_v61 = vpop.f32.mrf.mxu0  ;;  %v1207_v0 = vadd.f32 %v2612_v13, %v1001_v49  ;;  %v1312_v33 = vadd.f32 %v1283_v12, %v1202_v60  ;;  %v1000_v13 = vadd.f32 %v3437_v7, %v779_v20 }
 0x14e   : > { %v1186_v15 = vpop.f32.mrf.mxu1 }
 0x14f   : > { %v1296_v17 = vpop.f32.mrf.mxu0  ;;  %v1205_v54 = vadd.f32 %v1186_v15, %v999_v28  ;;  %v1317_v31 = vadd.f32 %v2622_v61, %v1207_v0 }
 0x150   : > { %v2613_v18 = vpop.f32.mrf.mxu1 }
 0x151   : > { %v2623_v21 = vpop.f32.mrf.mxu0  ;;  %v1315_v56 = vadd.f32 %v1296_v17, %v1205_v54 }
 0x152   : > { %v1189_v19 = vpop.f32.mrf.mxu1 }
 0x153   : > { %v3439_v22 = vpop.f32.mrf.mxu0  ;;  %v1206_v10 = vadd.f32 %v1189_v19, %v1000_v13 }
 0x154   : > { %3501 = vst [vmem:[#allocation3_spill] sm:$0xff] %v3439_v22  ;;  %v787_v22 = vadd.f32 %v2593_v5, %v2583_v59 }
 0x156   : > { %v2628_v23 = vpop.f32.mrf.mxu1  ;;  %v1002_v57 = vadd.f32 %v2603_v34, %v787_v22 }
 0x157   : > { %v1523_v62 = vadd.f32 %v2628_v23, %v1313_v53 }
 0x158   : > { %v1490_v24 = vpop.f32.mrf.mxu1  ;;  %v1208_v5 = vadd.f32 %v2613_v18, %v1002_v57 }
 0x159   : > { %v1521_v8 = vadd.f32 %v1490_v24, %v1311_v2 }
 0x15a   : > { %v2629_v26 = vpop.f32.mrf.mxu1  ;;  %v1318_v46 = vadd.f32 %v2623_v21, %v1208_v5 }
 0x15b   : > { %v1524_v1 = vadd.f32 %v2629_v26, %v1314_v36  ;;  %v3502_v17 = vld [vmem:[#allocation3_spill] sm:$0xff] }
 0x15c   : > { %v2638_v25 = vpop.f32.mrf.mxu0  ;;  %v1493_v29 = vpop.f32.mrf.mxu1  ;;  %v1316_v21 = vadd.f32 %v3502_v17, %v1206_v10 }
 0x15d   : > { %v1729_v59 = vadd.f32 %v2638_v25, %v1523_v62  ;;  %v1522_v23 = vadd.f32 %v1493_v29, %v1312_v33 }
 0x15e   : > { %v1696_v27 = vpop.f32.mrf.mxu0 }
 0x15f   : > { %v1727_v11 = vadd.f32 %v1696_v27, %v1521_v8 }
 0x160   : > { %v2639_v37 = vpop.f32.mrf.mxu0 }
 0x161   : > { %v1730_v24 = vadd.f32 %v2639_v37, %v1524_v1 }
 0x162   : > { %v1699_v41 = vpop.f32.mrf.mxu0 }
 0x163   : > { %v1728_v18 = vadd.f32 %v1699_v41, %v1522_v23 }
 0x166   : > { %v2632_v16 = vpop.f32.mrf.mxu1 }
 0x167   : > { %v1527_v34 = vadd.f32 %v2632_v16, %v1317_v31 }
 0x168   : > { %v1506_v42 = vpop.f32.mrf.mxu1 }
 0x169   : > { %v1525_v26 = vadd.f32 %v1506_v42, %v1315_v56 }
 0x16a   : > { %v2633_v48 = vpop.f32.mrf.mxu1 }
 0x16b   : > { %v1528_v38 = vadd.f32 %v2633_v48, %v1318_v46 }
 0x16c   : > { %v2642_v44 = vpop.f32.mrf.mxu0  ;;  %v1509_v35 = vpop.f32.mrf.mxu1 }
 0x16d   : > { %v1733_v14 = vadd.f32 %v2642_v44, %v1527_v34  ;;  %v1526_v43 = vadd.f32 %v1509_v35, %v1316_v21 }
 0x16e   : > { %v1712_v3 = vpop.f32.mrf.mxu0  ;;  %v2648_v63 = vpop.f32.mrf.mxu1 }
 0x16f   : > { %v1839_v30 = vadd.f32 %v2648_v63, %v1729_v59  ;;  %v1731_v41 = vadd.f32 %v1712_v3, %v1525_v26 }
 0x170   : > { %v2643_v50 = vpop.f32.mrf.mxu0  ;;  %v1806_v58 = vpop.f32.mrf.mxu1 }
 0x171   : > { %v1837_v22 = vadd.f32 %v1806_v58, %v1727_v11  ;;  %v1734_v42 = vadd.f32 %v2643_v50, %v1528_v38 }
 0x172   : > { %v1715_v4 = vpop.f32.mrf.mxu0  ;;  %v2649_v9 = vpop.f32.mrf.mxu1 }
 0x173   : > { %v1840_v27 = vadd.f32 %v2649_v9, %v1730_v24  ;;  %v1732_v0 = vadd.f32 %v1715_v4, %v1526_v43 }
 0x174   : > { %v1809_v6 = vpop.f32.mrf.mxu1 }
 0x175   : > { %v1838_v40 = vadd.f32 %v1809_v6, %v1728_v18 }
 0x176   : > { %v2658_v12 = vpop.f32.mrf.mxu0  ;;  %v2652_v15 = vpop.f32.mrf.mxu1 }
 0x177   : > { %v2049_v25 = vadd.f32 %v2658_v12, %v1839_v30  ;;  %v1843_v51 = vadd.f32 %v2652_v15, %v1733_v14 }
 0x178   : > { %v2016_v61 = vpop.f32.mrf.mxu0  ;;  %v1822_v29 = vpop.f32.mrf.mxu1 }
 0x179   : > { %v2523_v7 = vpack.c.bf16 %v2049_v25, %v2049_v25  ;;  %v2047_v16 = vadd.f32 %v2016_v61, %v1837_v22  ;;  %v2121_v48 = vmul.f32 %v2049_v25, %v2049_v25  ;;  %v1841_v49 = vadd.f32 %v1822_v29, %v1731_v41 }
 0x17a   : > { %v2659_v19 = vpop.f32.mrf.mxu0  ;;  %v2653_v39 = vpop.f32.mrf.mxu1  ;;  %v2099_v8 = vsel %vm616_vm2, %v2049_v25, 0.0 }
 0x17b   : > { %2090 = vst.msk [vmem:[%s2832_s4 + $0x8] sm:$0xf] %vm2087_vm9, %v2523_v7  ;;  %v2521_v37 = vpack.c.bf16 %v2047_v16, %v2047_v16  ;;  %v2050_v45 = vadd.f32 %v2659_v19, %v1840_v27  ;;  %v2119_v52 = vmul.f32 %v2047_v16, %v2047_v16  ;;  %v2096_v55 = vsel %vm616_vm2, %v2047_v16, 0.0 }
 0x17c   : > { %v2019_v47 = vpop.f32.mrf.mxu0  ;;  %v1844_v2 = vadd.f32 %v2653_v39, %v1734_v42  ;;  %v1825_v63 = vpop.f32.mrf.mxu1  ;;  %v2130_v4 = vsel %vm616_vm2, %v2121_v48, 0.0 }
 0x17d   : > { %2088 = vst.msk [vmem:[%s2832_s4] sm:$0xf] %vm2087_vm9, %v2521_v37  ;;  %v2048_v53 = vadd.f32 %v2019_v47, %v1838_v40  ;;  %v2524_v32 = vpack.c.bf16 %v2050_v45, %v2050_v45  ;;  %v2127_v20 = vsel %vm616_vm2, %v2119_v52, 0.0  ;;  %v2122_v36 = vmul.f32 %v2050_v45, %v2050_v45 }
 0x17e   : > { %v2662_v44 = vpop.f32.mrf.mxu0  ;;  %v1842_v1 = vadd.f32 %v1825_v63, %v1732_v0  ;;  %v2101_v9 = vsel %vm616_vm2, %v2050_v45, 0.0 }
 0x17f   : > { %v2522_v60 = vpack.c.bf16 %v2048_v53, %v2048_v53  ;;  %v2097_v62 = vsel %vm616_vm2, %v2048_v53, 0.0  ;;  %v2120_v3 = vmul.f32 %v2048_v53, %v2048_v53  ;;  %v2053_v35 = vadd.f32 %v2662_v44, %v1843_v51  ;;  %2091 = vst.msk [vmem:[%s2832_s4 + $0xc] sm:$0xf] %vm2087_vm9, %v2524_v32 }
 0x180   : > { %v2098_v28 = vadd.f32 %v2097_v62, %v2096_v55  ;;  %v2032_v57 = vpop.f32.mrf.mxu0  ;;  %v2132_v6 = vsel %vm616_vm2, %v2122_v36, 0.0 }
 0x181   : > { %2089 = vst.msk [vmem:[%s2832_s4 + $0x4] sm:$0xf] %vm2087_vm9, %v2522_v60  ;;  %v2128_v50 = vsel %vm616_vm2, %v2120_v3, 0.0  ;;  %v2527_v58 = vpack.c.bf16 %v2053_v35, %v2053_v35  ;;  %v2051_v54 = vadd.f32 %v2032_v57, %v1841_v49  ;;  %v2125_v12 = vmul.f32 %v2053_v35, %v2053_v35 }
 0x182   : > { %v2100_v33 = vadd.f32 %v2099_v8, %v2098_v28  ;;  %v2129_v59 = vadd.f32 %v2128_v50, %v2127_v20  ;;  %v2663_v5 = vpop.f32.mrf.mxu0  ;;  %v2107_v27 = vsel %vm616_vm2, %v2053_v35, 0.0 }
 0x183   : > { %2094 = vst.msk [vmem:[%s2832_s4 + $0x18] sm:$0xf] %vm2087_vm9, %v2527_v58  ;;  %v2054_v31 = vadd.f32 %v2663_v5, %v1844_v2  ;;  %v2525_v23 = vpack.c.bf16 %v2051_v54, %v2051_v54  ;;  %v2103_v34 = vsel %vm616_vm2, %v2051_v54, 0.0  ;;  %v2123_v22 = vmul.f32 %v2051_v54, %v2051_v54 }
 0x184   : > { %v2131_v11 = vadd.f32 %v2130_v4, %v2129_v59  ;;  %v2102_v30 = vadd.f32 %v2101_v9, %v2100_v33  ;;  %v2035_v13 = vpop.f32.mrf.mxu0  ;;  %v2138_v40 = vsel %vm616_vm2, %v2125_v12, 0.0 }
 0x185   : > { %v2528_v56 = vpack.c.bf16 %v2054_v31, %v2054_v31  ;;  %2092 = vst.msk [vmem:[%s2832_s4 + $0x10] sm:$0xf] %vm2087_vm9, %v2525_v23  ;;  %v2052_v24 = vadd.f32 %v2035_v13, %v1842_v1  ;;  %v2134_v15 = vsel %vm616_vm2, %v2123_v22, 0.0  ;;  %v2126_v29 = vmul.f32 %v2054_v31, %v2054_v31 }
 0x186   : > { %v2104_v46 = vadd.f32 %v2103_v34, %v2102_v30  ;;  %v2133_v10 = vadd.f32 %v2132_v6, %v2131_v11  ;;  %v2109_v17 = vsel %vm616_vm2, %v2054_v31, 0.0 }
 0x187   : > { %2095 = vst.msk [vmem:[%s2832_s4 + $0x1c] sm:$0xf] %vm2087_vm9, %v2528_v56  ;;  %v2526_v25 = vpack.c.bf16 %v2052_v24, %v2052_v24  ;;  %v2105_v26 = vsel %vm616_vm2, %v2052_v24, 0.0  ;;  %v2124_v38 = vmul.f32 %v2052_v24, %v2052_v24  ;;  %v2140_v37 = vsel %vm616_vm2, %v2126_v29, 0.0 }
 0x188   : > { %v2135_v18 = vadd.f32 %v2134_v15, %v2133_v10  ;;  %v2106_v61 = vadd.f32 %v2105_v26, %v2104_v46 }
 0x189   : > { %2093 = vst.msk [vmem:[%s2832_s4 + $0x14] sm:$0xf] %vm2087_vm9, %v2526_v25  ;;  %v2136_v14 = vsel %vm616_vm2, %v2124_v38, 0.0 }
 0x18a   : > { %v2108_v7 = vadd.f32 %v2107_v27, %v2106_v61  ;;  %v2137_v16 = vadd.f32 %v2136_v14, %v2135_v18 }
 0x18c   : > { %v2110_v21 = vadd.f32 %v2109_v17, %v2108_v7  ;;  %v2139_v19 = vadd.f32 %v2138_v40, %v2137_v16 }
 0x18e   : > { %v2111_v51 = vrot.slane %v2110_v21, 4  ;;  %v2141_v39 = vadd.f32 %v2140_v37, %v2139_v19 }
 0x190   : > { %v2112_v41 = vadd.f32 %v2111_v51, %v2110_v21  ;;  %v2142_v42 = vrot.slane %v2141_v39, 4 }
 0x192   : > { %v2113_v43 = vrot.slane %v2112_v41, 2  ;;  %v2143_v45 = vadd.f32 %v2142_v42, %v2141_v39 }
 0x194   : > { %v2114_v47 = vadd.f32 %v2113_v43, %v2112_v41  ;;  %v2144_v48 = vrot.slane %v2143_v45, 2 }
 0x196   : > { %v2115_v52 = vrot.slane %v2114_v47, 1  ;;  %v2145_v53 = vadd.f32 %v2144_v48, %v2143_v45 }
 0x198   : > { %v2116_v55 = vadd.f32 %v2115_v52, %v2114_v47  ;;  %v2146_v32 = vrot.slane %v2145_v53, 1 }
 0x19a   : > { %2118 = vst.msk [vmem:[%s2837_s8] sm:$0x1] %vm2117_vm10, %v2116_v55  ;;  %v2147_v44 = vadd.f32 %v2146_v32, %v2145_v53 }
 0x19c   : > { %2148 = vst.msk [vmem:[%s2837_s8 + $0x1] sm:$0x1] %vm2117_vm10, %v2147_v44 }
 0x19d PF: > { %s14_s16 = sadd.s32 1, %s2767_s16   ;;  %s3503_s12 = smov %s2759_s14 }
 0x19e   : > { %p11_p9 = scmp.ge.s32.totalorder %s14_s16, 10   ;;  %s3504_s13 = smov %s2763_s15 }
 0x19f   : > { %s3505_s14 = smov %s3508_s17  ;;  %s3506_s15 = smov %s3512_s18 }
 0x1a0   :  { %13 = sbr.rel (!%p11_p9) target bundleno = 3 (0x3), region = 86 }

</bundles_post_ra>
